<compile_context>
chip_gen: v7x
topology: tpu7x:2x2x1
jax: 0.10.0
libtpu: 0.0.40
codegen_flags: <defaults>
</compile_context>

<pallas_src>
import jax
import jax.numpy as jnp
from jax import lax
from jax.experimental import pallas as pl
from jax.experimental.pallas import tpu as pltpu

_BN_EPS = 1e-5
_LANE = 128


def _round_up(x, m):
    return (x + m - 1) // m * m


def _vmem_caps():
    """(vmem_limit_bytes, tile-selection budget) derived from the chip."""
    try:
        info = pltpu.get_tpu_info()
        cap = int(getattr(info, "vmem_capacity_bytes", 128 << 20))
    except Exception:
        cap = 128 << 20
    limit = min(int(cap * 0.65), 100 << 20)   # headroom vs. physical VMEM
    budget = int(limit * 0.7)                 # headroom inside the limit
    return limit, budget


def _pick_tile_h(h, w, cin, c1, c2, budget_bytes):
    """Largest sublane-aligned divisor of h whose VMEM footprint fits budget."""
    def est(th):
        x_blk = (th + 2) * w * _round_up(9 * cin, _LANE) * 2        # bf16 in
        o_blk = th * w * _round_up(c2, _LANE) * 4                   # f32 out
        h1 = (th + 2) * _round_up(w + 2, 16) * _round_up(c1, _LANE) * 2
        acc = _round_up(th * w, 8) * _round_up(c2, _LANE) * 4
        wgt = (_round_up(9 * cin, 8) * _round_up(c1, _LANE) * 2
               + 9 * _round_up(c1, 8) * _round_up(c2, _LANE) * 2)
        return 2 * (x_blk + o_blk) + h1 + acc + 2 * wgt             # dbl-buffered io

    cands = [th for th in range(8, h + 1, 8) if h % th == 0]        # sublane aligned
    if not cands:
        cands = [th for th in range(1, h + 1) if h % th == 0]
    best = cands[0]
    for th in cands:
        if est(th) <= budget_bytes and th >= best:
            best = th
    return best


def _fused_doubleconv_kernel(x_ref, w1_ref, b1_ref, w2_ref, b2_ref,
                             o_ref, h1_ref, acc_ref):
    """Fused [conv3x3+BN+ReLU] x2 for one (batch, H-tile) grid step.

    x_ref  : (1, 1, TH+2, W, 9*Cin)  bf16 im2col rows (incl. 1-row halo each side)
    w1_ref : (9*Cin, C1)             bf16, BN1 scale folded
    b1_ref : (1, C1)                 f32 folded bias
    w2_ref : (9, C1, C2)             bf16 per-tap weights, BN2 scale folded
    b2_ref : (1, C2)                 f32 folded bias
    o_ref  : (1, TH, W, C2)          f32 output tile (unpadded channels)
    h1_ref : (TH+2, W+2, C1)         bf16 scratch: stage-1 activation + zero W-halo
    acc_ref: (TH*W, C2)              f32 scratch: stage-2 tap accumulator
    """
    th = o_ref.shape[1]
    w = o_ref.shape[2]
    c1 = h1_ref.shape[2]
    k1 = x_ref.shape[4]
    j = pl.program_id(1)

    # ---- stage 1: single MXU matmul over pre-packed im2col channels ----------
    xin = x_ref[0, 0].reshape((th + 2) * w, k1)
    a1 = jnp.dot(xin, w1_ref[...], preferred_element_type=jnp.float32)
    a1 = jnp.maximum(a1 + b1_ref[...], 0.0)
    h1_ref[:, 1:w + 1, :] = a1.reshape(th + 2, w, c1).astype(h1_ref.dtype)

    # conv-2's zero padding in W lives in the scratch border columns.
    zero_col = jnp.zeros((th + 2, 1, c1), h1_ref.dtype)
    h1_ref[:, 0:1, :] = zero_col
    h1_ref[:, w + 1:w + 2, :] = zero_col

    # At the image top/bottom the halo rows of conv-2's input are zeros
    # (conv-2's padding), not ReLU(b1) of a zero im2col row.
    zero_row = jnp.zeros((1, w + 2, c1), h1_ref.dtype)

    @pl.when(j == 0)
    def _():
        h1_ref[0:1, :, :] = zero_row

    @pl.when(j == pl.num_programs(1) - 1)
    def _():
        h1_ref[th + 1:th + 2, :, :] = zero_row

    # ---- stage 2: 9 tap-wise accumulating matmuls (no big-K concat) ----------
    for kh in range(3):
        for kw in range(3):
            lhs = h1_ref[kh:kh + th, kw:kw + w, :].reshape(th * w, c1)
            tap = jnp.dot(lhs, w2_ref[kh * 3 + kw],
                          preferred_element_type=jnp.float32)
            if kh == 0 and kw == 0:
                acc_ref[...] = tap
            else:
                acc_ref[...] += tap

    y = jnp.maximum(acc_ref[...] + b2_ref[...], 0.0)        # f32 epilogue
    o_ref[0] = y.reshape(th, w, -1).astype(o_ref.dtype)


def _fold_bn(w_hwio, conv_b, bn):
    """Fold eval-mode BatchNorm into conv weight/bias."""
    scale = bn["gamma"] / jnp.sqrt(bn["var"] + _BN_EPS)
    bias = (conv_b - bn["mean"]) * scale + bn["beta"]
    return w_hwio * scale, bias


def inconv_forward(x_nchw, params, *, tile_h=None):
    """Matches InConv(in_ch, out_ch).forward(x) with NCHW input/output."""
    n, cin, h, w = x_nchw.shape
    c1 = params["w1"].shape[-1]
    c2 = params["w2"].shape[-1]

    limit, budget = _vmem_caps()
    if tile_h is None:
        tile_h = _pick_tile_h(h, w, cin, c1, c2, budget)
    assert h % tile_h == 0, (h, tile_h)
    n_tiles = h // tile_h

    x = jnp.transpose(x_nchw, (0, 2, 3, 1))                  # NCHW -> NHWC

    # Fold BN (eval mode) and lay out weights for the kernel.
    w1, b1 = _fold_bn(params["w1"], params["b1"], params["bn1"])
    w2, b2 = _fold_bn(params["w2"], params["b2"], params["bn2"])
    w1 = w1.reshape(9 * cin, c1).astype(jnp.bfloat16)        # tap-major (kh*3+kw, ci)
    b1 = b1.reshape(1, c1).astype(jnp.float32)
    w2 = w2.reshape(9, c1, c2).astype(jnp.bfloat16)
    b2 = b2.reshape(1, c2).astype(jnp.float32)

    # Host-side stage-1 pre-pack: zero-pad, im2col (lane-dense 9*Cin channels),
    # add conv-2's zero halo rows, and gather overlapping (tile_h+2)-row tiles
    # so the Pallas pipeline sees disjoint O(tile) blocks.
    xp = jnp.pad(x, ((0, 0), (1, 1), (1, 1), (0, 0))).astype(jnp.bfloat16)
    cols = [xp[:, kh:kh + h, kw:kw + w, :] for kh in range(3) for kw in range(3)]
    col = jnp.concatenate(cols, axis=-1)                     # (N, H, W, 9*Cin)
    colp = jnp.pad(col, ((0, 0), (1, 1), (0, 0), (0, 0)))    # zero rows -1 and H
    row_idx = (jnp.arange(n_tiles)[:, None] * tile_h
               + jnp.arange(tile_h + 2)[None, :])
    xt = jnp.take(colp, row_idx, axis=1)                     # (N, T, TH+2, W, 9*Cin)

    out = pl.pallas_call(
        _fused_doubleconv_kernel,
        out_shape=jax.ShapeDtypeStruct((n, h, w, c2), jnp.float32),
        grid=(n, n_tiles),
        in_specs=[
            pl.BlockSpec((1, 1, tile_h + 2, w, 9 * cin),
                         lambda i, j: (i, j, 0, 0, 0)),
            pl.BlockSpec((9 * cin, c1), lambda i, j: (0, 0)),
            pl.BlockSpec((1, c1), lambda i, j: (0, 0)),
            pl.BlockSpec((9, c1, c2), lambda i, j: (0, 0, 0)),
            pl.BlockSpec((1, c2), lambda i, j: (0, 0)),
        ],
        out_specs=pl.BlockSpec((1, tile_h, w, c2), lambda i, j: (i, j, 0, 0)),
        scratch_shapes=[
            pltpu.VMEM((tile_h + 2, w + 2, c1), jnp.bfloat16),   # stage-1 act
            pltpu.VMEM((tile_h * w, c2), jnp.float32),           # stage-2 acc
        ],
        compiler_params=pltpu.CompilerParams(
            dimension_semantics=("parallel", "parallel"),
            vmem_limit_bytes=limit),
    )(xt, w1, b1, w2, b2)

    return jnp.transpose(out, (0, 3, 1, 2))                  # NHWC -> NCHW


def init_inconv_params(key, in_ch, out_ch, dtype=jnp.float32):
    """Deterministic synthetic parameters (PyTorch-style uniform conv init)."""
    def conv_init(kw_, kb_, cin, cout):
        bound = float(1.0 / (cin * 9) ** 0.5)
        w = jax.random.uniform(kw_, (3, 3, cin, cout), dtype, -bound, bound)
        b = jax.random.uniform(kb_, (cout,), dtype, -bound, bound)
        return w, b

    k1, k2, k3, k4 = jax.random.split(key, 4)
    w1, b1 = conv_init(k1, k2, in_ch, out_ch)
    w2, b2 = conv_init(k3, k4, out_ch, out_ch)
    bn = dict(gamma=jnp.ones((out_ch,), dtype), beta=jnp.zeros((out_ch,), dtype),
              mean=jnp.zeros((out_ch,), dtype), var=jnp.ones((out_ch,), dtype))
    return dict(w1=w1, b1=b1, bn1=bn, w2=w2, b2=b2, bn2=bn)


# ----------------------- pure-JAX reference (matching precision) --------------

def _conv_ref(x_nhwc, w_hwio, conv_b, bn):
    scale = bn["gamma"] / jnp.sqrt(bn["var"] + _BN_EPS)
    bias = (conv_b - bn["mean"]) * scale + bn["beta"]
    y = lax.conv_general_dilated(
        x_nhwc.astype(jnp.bfloat16), (w_hwio * scale).astype(jnp.bfloat16),
        window_strides=(1, 1), padding=((1, 1), (1, 1)),
        dimension_numbers=("NHWC", "HWIO", "NHWC"),
        preferred_element_type=jnp.float32)
    return jnp.maximum(y + bias.reshape(1, 1, 1, -1), 0.0)


def inconv_reference(x_nchw, params):
    x = jnp.transpose(x_nchw, (0, 2, 3, 1))
    x = _conv_ref(x, params["w1"], params["b1"], params["bn1"])
    x = x.astype(jnp.bfloat16)   # match the kernel's bf16 stage-1 activation
    x = _conv_ref(x, params["w2"], params["b2"], params["bn2"])
    return jnp.transpose(x, (0, 3, 1, 2))


if __name__ == "__main__":
    key = jax.random.PRNGKey(0)
    kx, kp = jax.random.split(key)
    n, in_ch, out_ch, h, w = 2, 4, 8, 16, 16

    x = jax.random.normal(kx, (n, in_ch, h, w), jnp.float32)
    params = init_inconv_params(kp, in_ch, out_ch)

    y_ref = jax.block_until_ready(inconv_reference(x, params))

    # tile_h=8 -> grid=(2, 2): exercises the multi-tile halo path.
    # tile_h=None -> auto (VMEM-budget) pick: exercises the single-tile path.
    for th in (8, None):
        y = jax.block_until_ready(inconv_forward(x, params, tile_h=th))
        assert y.shape == (n, out_ch, h, w), y.shape
        max_err = float(jnp.max(jnp.abs(y - y_ref)))
        assert jnp.allclose(y, y_ref, atol=2e-2, rtol=2e-2), \
            f"mismatch (tile_h={th}): {max_err}"

    print("KERNEL_OK")
</pallas_src>

<mosaic_0001>
module attributes {stable_mosaic.version = 11 : i64} {
  func.func @_fused_doubleconv_kernel(%arg0: i32, %arg1: i32, %arg2: memref<1x1x10x16x36xbf16, #tpu.memory_space<vmem>>, %arg3: memref<36x8xbf16, #tpu.memory_space<vmem>>, %arg4: memref<1x8xf32, #tpu.memory_space<vmem>>, %arg5: memref<9x8x8xbf16, #tpu.memory_space<vmem>>, %arg6: memref<1x8xf32, #tpu.memory_space<vmem>>, %arg7: memref<1x8x16x8xf32, #tpu.memory_space<vmem>>, %arg8: memref<10x18x8xbf16, #tpu.memory_space<vmem>>, %arg9: memref<128x8xf32, #tpu.memory_space<vmem>>) attributes {dimension_semantics = [#tpu.dimension_semantics<parallel>, #tpu.dimension_semantics<parallel>], iteration_bounds = array<i64: 2, 2>, scalar_prefetch = 0 : i64, scratch_operands = 2 : i64, tpu.core_type = #tpu.core_type<tc>, window_params = [{transform_indices = @transform_0, window_bounds = array<i64: 1, 1, 10, 16, 36>}, {pipeline_mode = #tpu.pipeline_mode<synchronous>, transform_indices = @transform_1, window_bounds = array<i64: 36, 8>}, {pipeline_mode = #tpu.pipeline_mode<synchronous>, transform_indices = @transform_2, window_bounds = array<i64: 1, 8>}, {pipeline_mode = #tpu.pipeline_mode<synchronous>, transform_indices = @transform_3, window_bounds = array<i64: 9, 8, 8>}, {pipeline_mode = #tpu.pipeline_mode<synchronous>, transform_indices = @transform_4, window_bounds = array<i64: 1, 8>}, {transform_indices = @transform_5, window_bounds = array<i64: 1, 8, 16, 8>}]} {
    %c0 = arith.constant 0 : index
    %c0_0 = arith.constant 0 : index
    %c0_1 = arith.constant 0 : index
    %c0_2 = arith.constant 0 : index
    %c0_3 = arith.constant 0 : index
    %0 = vector.load %arg2[%c0, %c0_0, %c0_1, %c0_2, %c0_3] : memref<1x1x10x16x36xbf16, #tpu.memory_space<vmem>>, vector<1x1x10x16x36xbf16>
    %1 = vector.shape_cast %0 : vector<1x1x10x16x36xbf16> to vector<10x16x36xbf16>
    %2 = vector.shape_cast %1 : vector<10x16x36xbf16> to vector<160x36xbf16>
    %c0_4 = arith.constant 0 : index
    %c0_5 = arith.constant 0 : index
    %3 = vector.load %arg3[%c0_4, %c0_5] : memref<36x8xbf16, #tpu.memory_space<vmem>>, vector<36x8xbf16>
    %cst = arith.constant dense<0.000000e+00> : vector<160x8xf32>
    %4 = tpu.matmul %2, %3, %cst {dimension_numbers = #tpu.dot_dimension_numbers<[1], [0], [0], [1], [0, 0, 1, 1], [], []>} : vector<160x36xbf16>, vector<36x8xbf16>, vector<160x8xf32> -> vector<160x8xf32>
    %c0_6 = arith.constant 0 : index
    %c0_7 = arith.constant 0 : index
    %5 = vector.load %arg4[%c0_6, %c0_7] : memref<1x8xf32, #tpu.memory_space<vmem>>, vector<1x8xf32>
    %6 = vector.broadcast %5 : vector<1x8xf32> to vector<160x8xf32>
    %7 = arith.addf %4, %6 : vector<160x8xf32>
    %cst_8 = arith.constant 0.000000e+00 : f32
    %8 = vector.broadcast %cst_8 : f32 to vector<160x8xf32>
    %9 = arith.maximumf %7, %8 : vector<160x8xf32>
    %10 = vector.shape_cast %9 : vector<160x8xf32> to vector<10x16x8xf32>
    %11 = arith.truncf %10 : vector<10x16x8xf32> to vector<10x16x8xbf16>
    %c0_9 = arith.constant 0 : index
    %c1 = arith.constant 1 : index
    %c0_10 = arith.constant 0 : index
    %12 = vector.load %arg8[%c0_9, %c1, %c0_10] : memref<10x18x8xbf16, #tpu.memory_space<vmem>>, vector<10x16x8xbf16>
    tpu.vector_store %arg8[%c0_9, %c1, %c0_10], %11 {strides = array<i32>} : memref<10x18x8xbf16, #tpu.memory_space<vmem>>, vector<10x16x8xbf16>,
    %cst_11 = arith.constant 0.000000e+00 : bf16
    %13 = vector.broadcast %cst_11 : bf16 to vector<10x1x8xbf16>
    %c0_12 = arith.constant 0 : index
    %c0_13 = arith.constant 0 : index
    %c0_14 = arith.constant 0 : index
    %14 = vector.load %arg8[%c0_12, %c0_13, %c0_14] : memref<10x18x8xbf16, #tpu.memory_space<vmem>>, vector<10x1x8xbf16>
    tpu.vector_store %arg8[%c0_12, %c0_13, %c0_14], %13 {strides = array<i32>} : memref<10x18x8xbf16, #tpu.memory_space<vmem>>, vector<10x1x8xbf16>,
    %c0_15 = arith.constant 0 : index
    %c17 = arith.constant 17 : index
    %c0_16 = arith.constant 0 : index
    %15 = vector.load %arg8[%c0_15, %c17, %c0_16] : memref<10x18x8xbf16, #tpu.memory_space<vmem>>, vector<10x1x8xbf16>
    tpu.vector_store %arg8[%c0_15, %c17, %c0_16], %13 {strides = array<i32>} : memref<10x18x8xbf16, #tpu.memory_space<vmem>>, vector<10x1x8xbf16>,
    %cst_17 = arith.constant 0.000000e+00 : bf16
    %16 = vector.broadcast %cst_17 : bf16 to vector<1x18x8xbf16>
    %c0_i32 = arith.constant 0 : i32
    %17 = arith.cmpi eq, %arg1, %c0_i32 : i32
    %18 = arith.extui %17 : i1 to i32
    %c0_i32_18 = arith.constant 0 : i32
    %19 = arith.cmpi ne, %18, %c0_i32_18 : i32
    scf.if %19 {
      %c0_119 = arith.constant 0 : index
      %c0_120 = arith.constant 0 : index
      %c0_121 = arith.constant 0 : index
      %103 = vector.load %arg8[%c0_119, %c0_120, %c0_121] : memref<10x18x8xbf16, #tpu.memory_space<vmem>>, vector<1x18x8xbf16>
      tpu.vector_store %arg8[%c0_119, %c0_120, %c0_121], %16 {strides = array<i32>} : memref<10x18x8xbf16, #tpu.memory_space<vmem>>, vector<1x18x8xbf16>,
    } else {
    }
    %c1_i32 = arith.constant 1 : i32
    %20 = arith.cmpi eq, %arg1, %c1_i32 : i32
    %21 = arith.extui %20 : i1 to i32
    %c0_i32_19 = arith.constant 0 : i32
    %22 = arith.cmpi ne, %21, %c0_i32_19 : i32
    scf.if %22 {
      %c9 = arith.constant 9 : index
      %c0_119 = arith.constant 0 : index
      %c0_120 = arith.constant 0 : index
      %103 = vector.load %arg8[%c9, %c0_119, %c0_120] : memref<10x18x8xbf16, #tpu.memory_space<vmem>>, vector<1x18x8xbf16>
      tpu.vector_store %arg8[%c9, %c0_119, %c0_120], %16 {strides = array<i32>} : memref<10x18x8xbf16, #tpu.memory_space<vmem>>, vector<1x18x8xbf16>,
    } else {
    }
    %c0_20 = arith.constant 0 : index
    %c0_21 = arith.constant 0 : index
    %c0_22 = arith.constant 0 : index
    %23 = vector.load %arg8[%c0_20, %c0_21, %c0_22] : memref<10x18x8xbf16, #tpu.memory_space<vmem>>, vector<8x16x8xbf16>
    %24 = vector.shape_cast %23 : vector<8x16x8xbf16> to vector<128x8xbf16>
    %c0_23 = arith.constant 0 : index
    %c0_24 = arith.constant 0 : index
    %c0_25 = arith.constant 0 : index
    %25 = vector.load %arg5[%c0_23, %c0_24, %c0_25] : memref<9x8x8xbf16, #tpu.memory_space<vmem>>, vector<1x8x8xbf16>
    %26 = vector.shape_cast %25 : vector<1x8x8xbf16> to vector<8x8xbf16>
    %cst_26 = arith.constant dense<0.000000e+00> : vector<128x8xf32>
    %27 = tpu.matmul %24, %26, %cst_26 {dimension_numbers = #tpu.dot_dimension_numbers<[1], [0], [0], [1], [0, 0, 1, 1], [], []>} : vector<128x8xbf16>, vector<8x8xbf16>, vector<128x8xf32> -> vector<128x8xf32>
    %c0_27 = arith.constant 0 : index
    %c0_28 = arith.constant 0 : index
    %28 = vector.load %arg9[%c0_27, %c0_28] : memref<128x8xf32, #tpu.memory_space<vmem>>, vector<128x8xf32>
    tpu.vector_store %arg9[%c0_27, %c0_28], %27 {strides = array<i32>} : memref<128x8xf32, #tpu.memory_space<vmem>>, vector<128x8xf32>,
    %c0_29 = arith.constant 0 : index
    %c1_30 = arith.constant 1 : index
    %c0_31 = arith.constant 0 : index
    %29 = vector.load %arg8[%c0_29, %c1_30, %c0_31] : memref<10x18x8xbf16, #tpu.memory_space<vmem>>, vector<8x16x8xbf16>
    %30 = vector.shape_cast %29 : vector<8x16x8xbf16> to vector<128x8xbf16>
    %c1_32 = arith.constant 1 : index
    %c0_33 = arith.constant 0 : index
    %c0_34 = arith.constant 0 : index
    %31 = vector.load %arg5[%c1_32, %c0_33, %c0_34] : memref<9x8x8xbf16, #tpu.memory_space<vmem>>, vector<1x8x8xbf16>
    %32 = vector.shape_cast %31 : vector<1x8x8xbf16> to vector<8x8xbf16>
    %cst_35 = arith.constant dense<0.000000e+00> : vector<128x8xf32>
    %33 = tpu.matmul %30, %32, %cst_35 {dimension_numbers = #tpu.dot_dimension_numbers<[1], [0], [0], [1], [0, 0, 1, 1], [], []>} : vector<128x8xbf16>, vector<8x8xbf16>, vector<128x8xf32> -> vector<128x8xf32>
    %c0_36 = arith.constant 0 : index
    %c0_37 = arith.constant 0 : index
    %34 = vector.load %arg9[%c0_36, %c0_37] : memref<128x8xf32, #tpu.memory_space<vmem>>, vector<128x8xf32>
    %35 = arith.addf %34, %33 : vector<128x8xf32>
    %c0_38 = arith.constant 0 : index
    %c0_39 = arith.constant 0 : index
    %36 = vector.load %arg9[%c0_38, %c0_39] : memref<128x8xf32, #tpu.memory_space<vmem>>, vector<128x8xf32>
    tpu.vector_store %arg9[%c0_38, %c0_39], %35 {strides = array<i32>} : memref<128x8xf32, #tpu.memory_space<vmem>>, vector<128x8xf32>,
    %c0_40 = arith.constant 0 : index
    %c2 = arith.constant 2 : index
    %c0_41 = arith.constant 0 : index
    %37 = vector.load %arg8[%c0_40, %c2, %c0_41] : memref<10x18x8xbf16, #tpu.memory_space<vmem>>, vector<8x16x8xbf16>
    %38 = vector.shape_cast %37 : vector<8x16x8xbf16> to vector<128x8xbf16>
    %c2_42 = arith.constant 2 : index
    %c0_43 = arith.constant 0 : index
    %c0_44 = arith.constant 0 : index
    %39 = vector.load %arg5[%c2_42, %c0_43, %c0_44] : memref<9x8x8xbf16, #tpu.memory_space<vmem>>, vector<1x8x8xbf16>
    %40 = vector.shape_cast %39 : vector<1x8x8xbf16> to vector<8x8xbf16>
    %cst_45 = arith.constant dense<0.000000e+00> : vector<128x8xf32>
    %41 = tpu.matmul %38, %40, %cst_45 {dimension_numbers = #tpu.dot_dimension_numbers<[1], [0], [0], [1], [0, 0, 1, 1], [], []>} : vector<128x8xbf16>, vector<8x8xbf16>, vector<128x8xf32> -> vector<128x8xf32>
    %c0_46 = arith.constant 0 : index
    %c0_47 = arith.constant 0 : index
    %42 = vector.load %arg9[%c0_46, %c0_47] : memref<128x8xf32, #tpu.memory_space<vmem>>, vector<128x8xf32>
    %43 = arith.addf %42, %41 : vector<128x8xf32>
    %c0_48 = arith.constant 0 : index
    %c0_49 = arith.constant 0 : index
    %44 = vector.load %arg9[%c0_48, %c0_49] : memref<128x8xf32, #tpu.memory_space<vmem>>, vector<128x8xf32>
    tpu.vector_store %arg9[%c0_48, %c0_49], %43 {strides = array<i32>} : memref<128x8xf32, #tpu.memory_space<vmem>>, vector<128x8xf32>,
    %c1_50 = arith.constant 1 : index
    %c0_51 = arith.constant 0 : index
    %c0_52 = arith.constant 0 : index
    %45 = vector.load %arg8[%c1_50, %c0_51, %c0_52] : memref<10x18x8xbf16, #tpu.memory_space<vmem>>, vector<8x16x8xbf16>
    %46 = vector.shape_cast %45 : vector<8x16x8xbf16> to vector<128x8xbf16>
    %c3 = arith.constant 3 : index
    %c0_53 = arith.constant 0 : index
    %c0_54 = arith.constant 0 : index
    %47 = vector.load %arg5[%c3, %c0_53, %c0_54] : memref<9x8x8xbf16, #tpu.memory_space<vmem>>, vector<1x8x8xbf16>
    %48 = vector.shape_cast %47 : vector<1x8x8xbf16> to vector<8x8xbf16>
    %cst_55 = arith.constant dense<0.000000e+00> : vector<128x8xf32>
    %49 = tpu.matmul %46, %48, %cst_55 {dimension_numbers = #tpu.dot_dimension_numbers<[1], [0], [0], [1], [0, 0, 1, 1], [], []>} : vector<128x8xbf16>, vector<8x8xbf16>, vector<128x8xf32> -> vector<128x8xf32>
    %c0_56 = arith.constant 0 : index
    %c0_57 = arith.constant 0 : index
    %50 = vector.load %arg9[%c0_56, %c0_57] : memref<128x8xf32, #tpu.memory_space<vmem>>, vector<128x8xf32>
    %51 = arith.addf %50, %49 : vector<128x8xf32>
    %c0_58 = arith.constant 0 : index
    %c0_59 = arith.constant 0 : index
    %52 = vector.load %arg9[%c0_58, %c0_59] : memref<128x8xf32, #tpu.memory_space<vmem>>, vector<128x8xf32>
    tpu.vector_store %arg9[%c0_58, %c0_59], %51 {strides = array<i32>} : memref<128x8xf32, #tpu.memory_space<vmem>>, vector<128x8xf32>,
    %c1_60 = arith.constant 1 : index
    %c1_61 = arith.constant 1 : index
    %c0_62 = arith.constant 0 : index
    %53 = vector.load %arg8[%c1_60, %c1_61, %c0_62] : memref<10x18x8xbf16, #tpu.memory_space<vmem>>, vector<8x16x8xbf16>
    %54 = vector.shape_cast %53 : vector<8x16x8xbf16> to vector<128x8xbf16>
    %c4 = arith.constant 4 : index
    %c0_63 = arith.constant 0 : index
    %c0_64 = arith.constant 0 : index
    %55 = vector.load %arg5[%c4, %c0_63, %c0_64] : memref<9x8x8xbf16, #tpu.memory_space<vmem>>, vector<1x8x8xbf16>
    %56 = vector.shape_cast %55 : vector<1x8x8xbf16> to vector<8x8xbf16>
    %cst_65 = arith.constant dense<0.000000e+00> : vector<128x8xf32>
    %57 = tpu.matmul %54, %56, %cst_65 {dimension_numbers = #tpu.dot_dimension_numbers<[1], [0], [0], [1], [0, 0, 1, 1], [], []>} : vector<128x8xbf16>, vector<8x8xbf16>, vector<128x8xf32> -> vector<128x8xf32>
    %c0_66 = arith.constant 0 : index
    %c0_67 = arith.constant 0 : index
    %58 = vector.load %arg9[%c0_66, %c0_67] : memref<128x8xf32, #tpu.memory_space<vmem>>, vector<128x8xf32>
    %59 = arith.addf %58, %57 : vector<128x8xf32>
    %c0_68 = arith.constant 0 : index
    %c0_69 = arith.constant 0 : index
    %60 = vector.load %arg9[%c0_68, %c0_69] : memref<128x8xf32, #tpu.memory_space<vmem>>, vector<128x8xf32>
    tpu.vector_store %arg9[%c0_68, %c0_69], %59 {strides = array<i32>} : memref<128x8xf32, #tpu.memory_space<vmem>>, vector<128x8xf32>,
    %c1_70 = arith.constant 1 : index
    %c2_71 = arith.constant 2 : index
    %c0_72 = arith.constant 0 : index
    %61 = vector.load %arg8[%c1_70, %c2_71, %c0_72] : memref<10x18x8xbf16, #tpu.memory_space<vmem>>, vector<8x16x8xbf16>
    %62 = vector.shape_cast %61 : vector<8x16x8xbf16> to vector<128x8xbf16>
    %c5 = arith.constant 5 : index
    %c0_73 = arith.constant 0 : index
    %c0_74 = arith.constant 0 : index
    %63 = vector.load %arg5[%c5, %c0_73, %c0_74] : memref<9x8x8xbf16, #tpu.memory_space<vmem>>, vector<1x8x8xbf16>
    %64 = vector.shape_cast %63 : vector<1x8x8xbf16> to vector<8x8xbf16>
    %cst_75 = arith.constant dense<0.000000e+00> : vector<128x8xf32>
    %65 = tpu.matmul %62, %64, %cst_75 {dimension_numbers = #tpu.dot_dimension_numbers<[1], [0], [0], [1], [0, 0, 1, 1], [], []>} : vector<128x8xbf16>, vector<8x8xbf16>, vector<128x8xf32> -> vector<128x8xf32>
    %c0_76 = arith.constant 0 : index
    %c0_77 = arith.constant 0 : index
    %66 = vector.load %arg9[%c0_76, %c0_77] : memref<128x8xf32, #tpu.memory_space<vmem>>, vector<128x8xf32>
    %67 = arith.addf %66, %65 : vector<128x8xf32>
    %c0_78 = arith.constant 0 : index
    %c0_79 = arith.constant 0 : index
    %68 = vector.load %arg9[%c0_78, %c0_79] : memref<128x8xf32, #tpu.memory_space<vmem>>, vector<128x8xf32>
    tpu.vector_store %arg9[%c0_78, %c0_79], %67 {strides = array<i32>} : memref<128x8xf32, #tpu.memory_space<vmem>>, vector<128x8xf32>,
    %c2_80 = arith.constant 2 : index
    %c0_81 = arith.constant 0 : index
    %c0_82 = arith.constant 0 : index
    %69 = vector.load %arg8[%c2_80, %c0_81, %c0_82] : memref<10x18x8xbf16, #tpu.memory_space<vmem>>, vector<8x16x8xbf16>
    %70 = vector.shape_cast %69 : vector<8x16x8xbf16> to vector<128x8xbf16>
    %c6 = arith.constant 6 : index
    %c0_83 = arith.constant 0 : index
    %c0_84 = arith.constant 0 : index
    %71 = vector.load %arg5[%c6, %c0_83, %c0_84] : memref<9x8x8xbf16, #tpu.memory_space<vmem>>, vector<1x8x8xbf16>
    %72 = vector.shape_cast %71 : vector<1x8x8xbf16> to vector<8x8xbf16>
    %cst_85 = arith.constant dense<0.000000e+00> : vector<128x8xf32>
    %73 = tpu.matmul %70, %72, %cst_85 {dimension_numbers = #tpu.dot_dimension_numbers<[1], [0], [0], [1], [0, 0, 1, 1], [], []>} : vector<128x8xbf16>, vector<8x8xbf16>, vector<128x8xf32> -> vector<128x8xf32>
    %c0_86 = arith.constant 0 : index
    %c0_87 = arith.constant 0 : index
    %74 = vector.load %arg9[%c0_86, %c0_87] : memref<128x8xf32, #tpu.memory_space<vmem>>, vector<128x8xf32>
    %75 = arith.addf %74, %73 : vector<128x8xf32>
    %c0_88 = arith.constant 0 : index
    %c0_89 = arith.constant 0 : index
    %76 = vector.load %arg9[%c0_88, %c0_89] : memref<128x8xf32, #tpu.memory_space<vmem>>, vector<128x8xf32>
    tpu.vector_store %arg9[%c0_88, %c0_89], %75 {strides = array<i32>} : memref<128x8xf32, #tpu.memory_space<vmem>>, vector<128x8xf32>,
    %c2_90 = arith.constant 2 : index
    %c1_91 = arith.constant 1 : index
    %c0_92 = arith.constant 0 : index
    %77 = vector.load %arg8[%c2_90, %c1_91, %c0_92] : memref<10x18x8xbf16, #tpu.memory_space<vmem>>, vector<8x16x8xbf16>
    %78 = vector.shape_cast %77 : vector<8x16x8xbf16> to vector<128x8xbf16>
    %c7 = arith.constant 7 : index
    %c0_93 = arith.constant 0 : index
    %c0_94 = arith.constant 0 : index
    %79 = vector.load %arg5[%c7, %c0_93, %c0_94] : memref<9x8x8xbf16, #tpu.memory_space<vmem>>, vector<1x8x8xbf16>
    %80 = vector.shape_cast %79 : vector<1x8x8xbf16> to vector<8x8xbf16>
    %cst_95 = arith.constant dense<0.000000e+00> : vector<128x8xf32>
    %81 = tpu.matmul %78, %80, %cst_95 {dimension_numbers = #tpu.dot_dimension_numbers<[1], [0], [0], [1], [0, 0, 1, 1], [], []>} : vector<128x8xbf16>, vector<8x8xbf16>, vector<128x8xf32> -> vector<128x8xf32>
    %c0_96 = arith.constant 0 : index
    %c0_97 = arith.constant 0 : index
    %82 = vector.load %arg9[%c0_96, %c0_97] : memref<128x8xf32, #tpu.memory_space<vmem>>, vector<128x8xf32>
    %83 = arith.addf %82, %81 : vector<128x8xf32>
    %c0_98 = arith.constant 0 : index
    %c0_99 = arith.constant 0 : index
    %84 = vector.load %arg9[%c0_98, %c0_99] : memref<128x8xf32, #tpu.memory_space<vmem>>, vector<128x8xf32>
    tpu.vector_store %arg9[%c0_98, %c0_99], %83 {strides = array<i32>} : memref<128x8xf32, #tpu.memory_space<vmem>>, vector<128x8xf32>,
    %c2_100 = arith.constant 2 : index
    %c2_101 = arith.constant 2 : index
    %c0_102 = arith.constant 0 : index
    %85 = vector.load %arg8[%c2_100, %c2_101, %c0_102] : memref<10x18x8xbf16, #tpu.memory_space<vmem>>, vector<8x16x8xbf16>
    %86 = vector.shape_cast %85 : vector<8x16x8xbf16> to vector<128x8xbf16>
    %c8 = arith.constant 8 : index
    %c0_103 = arith.constant 0 : index
    %c0_104 = arith.constant 0 : index
    %87 = vector.load %arg5[%c8, %c0_103, %c0_104] : memref<9x8x8xbf16, #tpu.memory_space<vmem>>, vector<1x8x8xbf16>
    %88 = vector.shape_cast %87 : vector<1x8x8xbf16> to vector<8x8xbf16>
    %cst_105 = arith.constant dense<0.000000e+00> : vector<128x8xf32>
    %89 = tpu.matmul %86, %88, %cst_105 {dimension_numbers = #tpu.dot_dimension_numbers<[1], [0], [0], [1], [0, 0, 1, 1], [], []>} : vector<128x8xbf16>, vector<8x8xbf16>, vector<128x8xf32> -> vector<128x8xf32>
    %c0_106 = arith.constant 0 : index
    %c0_107 = arith.constant 0 : index
    %90 = vector.load %arg9[%c0_106, %c0_107] : memref<128x8xf32, #tpu.memory_space<vmem>>, vector<128x8xf32>
    %91 = arith.addf %90, %89 : vector<128x8xf32>
    %c0_108 = arith.constant 0 : index
    %c0_109 = arith.constant 0 : index
    %92 = vector.load %arg9[%c0_108, %c0_109] : memref<128x8xf32, #tpu.memory_space<vmem>>, vector<128x8xf32>
    tpu.vector_store %arg9[%c0_108, %c0_109], %91 {strides = array<i32>} : memref<128x8xf32, #tpu.memory_space<vmem>>, vector<128x8xf32>,
    %c0_110 = arith.constant 0 : index
    %c0_111 = arith.constant 0 : index
    %93 = vector.load %arg9[%c0_110, %c0_111] : memref<128x8xf32, #tpu.memory_space<vmem>>, vector<128x8xf32>
    %c0_112 = arith.constant 0 : index
    %c0_113 = arith.constant 0 : index
    %94 = vector.load %arg6[%c0_112, %c0_113] : memref<1x8xf32, #tpu.memory_space<vmem>>, vector<1x8xf32>
    %95 = vector.broadcast %94 : vector<1x8xf32> to vector<128x8xf32>
    %96 = arith.addf %93, %95 : vector<128x8xf32>
    %cst_114 = arith.constant 0.000000e+00 : f32
    %97 = vector.broadcast %cst_114 : f32 to vector<128x8xf32>
    %98 = arith.maximumf %96, %97 : vector<128x8xf32>
    %99 = vector.shape_cast %98 : vector<128x8xf32> to vector<8x16x8xf32>
    %c0_115 = arith.constant 0 : index
    %c0_116 = arith.constant 0 : index
    %c0_117 = arith.constant 0 : index
    %c0_118 = arith.constant 0 : index
    %100 = vector.load %arg7[%c0_115, %c0_116, %c0_117, %c0_118] : memref<1x8x16x8xf32, #tpu.memory_space<vmem>>, vector<1x8x16x8xf32>
    %101 = vector.shape_cast %100 : vector<1x8x16x8xf32> to vector<8x16x8xf32>
    %102 = vector.shape_cast %99 : vector<8x16x8xf32> to vector<1x8x16x8xf32>
    tpu.vector_store %arg7[%c0_115, %c0_116, %c0_117, %c0_118], %102 {strides = array<i32>} : memref<1x8x16x8xf32, #tpu.memory_space<vmem>>, vector<1x8x16x8xf32>,
    return
  }
  func.func @transform_0(%arg0: i32, %arg1: i32) -> (i32, i32, i32, i32, i32) {
    %c0_i32 = arith.constant 0 : i32
    %c0_i32_0 = arith.constant 0 : i32
    %c0_i32_1 = arith.constant 0 : i32
    %c0_i32_2 = arith.constant 0 : i32
    return %arg0, %arg1, %c0_i32, %c0_i32_0, %c0_i32_1 : i32, i32, i32, i32, i32
  }
  func.func @transform_1(%arg0: i32, %arg1: i32) -> (i32, i32) {
    %c0_i32 = arith.constant 0 : i32
    %c0_i32_0 = arith.constant 0 : i32
    %c0_i32_1 = arith.constant 0 : i32
    return %c0_i32, %c0_i32_0 : i32, i32
  }
  func.func @transform_2(%arg0: i32, %arg1: i32) -> (i32, i32) {
    %c0_i32 = arith.constant 0 : i32
    %c0_i32_0 = arith.constant 0 : i32
    %c0_i32_1 = arith.constant 0 : i32
    return %c0_i32, %c0_i32_0 : i32, i32
  }
  func.func @transform_3(%arg0: i32, %arg1: i32) -> (i32, i32, i32) {
    %c0_i32 = arith.constant 0 : i32
    %c0_i32_0 = arith.constant 0 : i32
    %c0_i32_1 = arith.constant 0 : i32
    %c0_i32_2 = arith.constant 0 : i32
    return %c0_i32, %c0_i32_0, %c0_i32_1 : i32, i32, i32
  }
  func.func @transform_4(%arg0: i32, %arg1: i32) -> (i32, i32) {
    %c0_i32 = arith.constant 0 : i32
    %c0_i32_0 = arith.constant 0 : i32
    %c0_i32_1 = arith.constant 0 : i32
    return %c0_i32, %c0_i32_0 : i32, i32
  }
  func.func @transform_5(%arg0: i32, %arg1: i32) -> (i32, i32, i32, i32) {
    %c0_i32 = arith.constant 0 : i32
    %c0_i32_0 = arith.constant 0 : i32
    %c0_i32_1 = arith.constant 0 : i32
    return %arg0, %arg1, %c0_i32, %c0_i32_0 : i32, i32, i32, i32
  }
}

</mosaic_0001>

<bundles_post_ra>
// kernel: tpu_custom_call.1
= control target key start
LH: loop header
LB: loop body
LE: loop exit
PB: predicated region body
PF: predicated region fallthrough
CT: control target
= control target key end

     0   :  { %s6189_s0 = inlined_call_operand.hbm [shape: bf16[2,2,10,16,36], index: 0, kind: input, shape index: {}]   ;;  %s6190_s1 = inlined_call_operand.hbm [shape: bf16[36,8], index: 1, kind: input, shape index: {}]   ;;  %s6191_s2 = inlined_call_operand.hbm [shape: f32[1,8], index: 2, kind: input, shape index: {}]   ;;  %s6192_s3 = inlined_call_operand.hbm [shape: bf16[9,8,8], index: 3, kind: input, shape index: {}]   ;;  %s6193_s4 = inlined_call_operand.hbm [shape: f32[1,8], index: 4, kind: input, shape index: {}]   ;;  %s6194_s5 = inlined_call_operand.hbm [shape: f32[2,16,16,8], index: 5, kind: output, shape index: {}]  }
   0x1   :  { %6204 = sst [smem:[#allocation21_spill]] %s6190_s1 }
   0x2   :  { %6205 = sst [smem:[#allocation22_spill]] %s6191_s2 }
   0x3   :  { %6206 = sst [smem:[#allocation23_spill]] %s6192_s3 }
   0x4   :  { %6207 = sst [smem:[#allocation24_spill]] %s6194_s5 }
   0x5   :  { %10 = vsyncpa [#allocation5], 0 }
   0x6   :  { %12 = vsyncpa [#allocation5 + $0x1], 0 }
   0x7   :  { %13 = vsyncpa [#allocation8], 0 }
   0x8   :  { %14 = vsyncpa [#allocation11], 0 }
   0x9   :  { %15 = vsyncpa [#allocation6], 0 }
   0xa   :  { %17 = vsyncpa [#allocation6 + $0x1], 0  ;;  %s5041_s18 = smov 0   ;;  %s5043_s19 = smov 0  }
   0xb   :  { %s5045_s20 = smov 0   ;;  %s5047_s21 = smov 0  }
   0xc   :  { %s5049_s22 = smov 0   ;;  %s5051_s23 = smov 0  }
   0xd   :  { %s5053_s24 = smov 0   ;;  %s5055_s25 = smov 0  }
   0xe LB: > { %6208 = sst [smem:[#allocation18_spill]] %s4969_s18  ;;  %s4030_s26 = sadd.s32 4294967295, %s4997_s25   ;;  %s4997_s25 = sphi %s5055_s25, %s23_s25   ;;  %s4993_s24 = sphi %s5053_s24, %s6253_s24   ;;  %s4989_s23 = sphi %s5051_s23, %s6252_s23   ;;  %s4985_s22 = sphi %s5049_s22, %s6251_s22   ;;  %s4981_s21 = sphi %s5047_s21, %s6250_s21   ;;  %s4977_s20 = sphi %s5045_s20, %s6249_s20   ;;  %s4973_s19 = sphi %s5043_s19, %s6248_s19   ;;  %s4969_s18 = sphi %s5041_s18, %s6247_s18  }
   0xf   : > { %6209 = sst [smem:[#allocation19_spill]] %s4985_s22  ;;  %s4031_s27 = sadd.s32 4294967294, %s4997_s25  }
  0x10   : > { %p57_p0 = scmp.ne.s32.totalorder %s4973_s19, %s4969_s18  ;;  %p5085_p1 = scmp.eq.s32.totalorder %s4030_s26, 0 }
  0x11   : > { %p5089_p2 = scmp.eq.s32.totalorder %s4030_s26, 3  ;;  %p173_p3 = scmp.eq.s32.totalorder %s4031_s27, 3 }
  0x12   : > { %s6210_s28 = scalar_select %p5085_p1, 1, 0 }
  0x13   : > { %s6211_s29 = scalar_select %p5089_p2, 1, 0 }
  0x14   : > { %p5095_p4 = por %p5085_p1, %p57_p0  ;;  %p4032_p5 = scmp.ge.s32.totalorder %s4997_s25, 1 }
  0x15   : > { %p5100_p6 = por %p173_p3, %p57_p0  ;;  %p180_p7 = scmp.lt.s32.totalorder %s4997_s25, 5 }
  0x16   : > { %s6212_s30 = scalar_select %p5095_p4, 1, 0 }
  0x17   : > { %s6213_s6 = scalar_select %p5100_p6, 1, 0 }
  0x18   : > { %p5105_p8 = pnand %p4032_p5, %p180_p7  ;;  %s4999_s8 = smov [#allocation7]  }
  0x19   : > { %6214 = sst [smem:[#allocation20_spill]] %s6213_s6  ;;  %s192_s9 = sshll.u32 %s4999_s8, 4  ;;  %s5109_s9 = int_to_ptr.vmem [resolvable:$true] %s192_s9 }
  0x1a   : > { %s6215_s7 = scalar_select %p5105_p8, 1, 0 }
  0x1b   : > { %p4607_p9 = pneg %p5105_p8  ;;  %s5000_s11 = smov [#allocation10]  }
  0x1c   : > { %s216_s12 = sshll.u32 %s5000_s11, 4  ;;  %s5001_s13 = smov [#allocation9]   ;;  %s5119_s12 = int_to_ptr.vmem [resolvable:$true] %s216_s12 }
  0x1d   : > { %p5115_p10 = pnand %p4607_p9, %p5085_p1  ;;  %s5121_s14 = sshll.u32 %s5001_s13, 4  ;;  %s207_s14 = int_to_ptr.vmem [resolvable:$true] %s5121_s14 }
  0x1e   : > { %s6217_s1 = sld [smem:[#allocation21_spill]] }
  0x1f   : > { %p5131_p12 = pneg %p5115_p10 }
  0x24   : > { %s4749_s17 = scalar_lea.hbm %s6217_s1, 320 }
  0x25   : > { %p4750_p11 = scmp.ne.s32.totalorder %s6217_s1, %s4749_s17  ;;  %p4756_p3 = scmp.lt.u32.totalorder %s4749_s17, %s6217_s1 }
  0x27   : > { %p4752_p13 = pnand %p5131_p12, %p4750_p11 }
  0x29   : > { %p4753_p0 = pneg %p4752_p13 }
  0x2b   : > { %p4758_p5 = pnand %p4756_p3, %p4753_p0 }
  0x2d   : > { %4761 = shalt.err (!%p4758_p5)
}
  0x2e   : > { %s4762_s15 = scalar_lea.vmem %s5109_s9, 320  ;;  %p4770_p1 = scmp.lt.s32.totalorder %s5109_s9, %s5109_s9 }
  0x2f   : > { %p4763_p7 = scmp.ne.s32.totalorder %s5109_s9, %s4762_s15  ;;  %p4771_p4 = scmp.lt.s32.totalorder %s4762_s15, %s4762_s15 }
  0x31   : > { %p4765_p9 = pnand %p4763_p7, %p5131_p12  ;;  %p4772_p11 = por %p4771_p4, %p4770_p1 }
  0x33   : > { %p4766_p6 = pneg %p4765_p9 }
  0x35   : > { %p4773_p13 = pnand %p4772_p11, %p4766_p6 }
  0x37   : > { %4776 = shalt.err (!%p4773_p13)
}
  0x38   : > { %s6202_s16 = smov 64   ;;  %s6203_s17 = smov 4  }
  0x39   : > { %4610 = dma.hbm_to_vmem [thread:$0]  (!%p5115_p10), %s6217_s1, 320, %s5109_s9, [#allocation8], %s6202_s16, %s6202_s16, %s6203_s17  }
  0x3a   : > { %s6219_s3 = sld [smem:[#allocation23_spill]] }
  0x40   : > { %s4777_s15 = scalar_lea.hbm %s6219_s3, 576 }
  0x41   : > { %p4778_p1 = scmp.ne.s32.totalorder %s6219_s3, %s4777_s15  ;;  %p4784_p0 = scmp.lt.u32.totalorder %s4777_s15, %s6219_s3 }
  0x43   : > { %p4780_p4 = pnand %p4778_p1, %p5131_p12 }
  0x45   : > { %p4781_p6 = pneg %p4780_p4 }
  0x47   : > { %p4786_p3 = pnand %p4784_p0, %p4781_p6 }
  0x49   : > { %4789 = shalt.err (!%p4786_p3)
}
  0x4a   : > { %s4790_s9 = scalar_lea.vmem %s5119_s12, 576  ;;  %p4798_p11 = scmp.lt.s32.totalorder %s5119_s12, %s5119_s12 }
  0x4b   : > { %p4791_p5 = scmp.ne.s32.totalorder %s5119_s12, %s4790_s9  ;;  %p4799_p13 = scmp.lt.s32.totalorder %s4790_s9, %s4790_s9 }
  0x4d   : > { %p4793_p7 = pnand %p4791_p5, %p5131_p12  ;;  %p4800_p1 = por %p4799_p13, %p4798_p11 }
  0x4f   : > { %p4794_p9 = pneg %p4793_p7 }
  0x51   : > { %p4801_p4 = pnand %p4800_p1, %p4794_p9 }
  0x53   : > { %4804 = shalt.err (!%p4801_p4)
}
  0x54   : > { %4616 = dma.hbm_to_vmem [thread:$0]  (!%p5115_p10), %s6219_s3, 576, %s5119_s12, [#allocation11], %s6202_s16, %s6202_s16, %s6203_s17  }
  0x55   : > { %s6220_s2 = sld [smem:[#allocation22_spill]] }
  0x5b   : > { %s4805_s26 = scalar_lea.hbm %s6220_s2, 16 }
  0x5c   : > { %p4806_p6 = scmp.ne.s32.totalorder %s6220_s2, %s4805_s26  ;;  %p4812_p5 = scmp.lt.u32.totalorder %s4805_s26, %s6220_s2 }
  0x5e   : > { %p4808_p0 = pnand %p4806_p6, %p5131_p12 }
  0x60   : > { %p4809_p3 = pneg %p4808_p0 }
  0x62   : > { %p4814_p7 = pnand %p4812_p5, %p4809_p3 }
  0x64   : > { %4817 = shalt.err (!%p4814_p7)
}
  0x65   : > { %s4818_s9 = scalar_lea.vmem %s207_s14, 16  ;;  %s4825_s12 = scalar_lea.vmem %s207_s14, 32 }
  0x66   : > { %p4819_p9 = scmp.ne.s32.totalorder %s207_s14, %s4818_s9  ;;  %p4826_p1 = scmp.lt.s32.totalorder %s207_s14, %s207_s14 }
  0x67   : > { %p4827_p4 = scmp.lt.s32.totalorder %s4825_s12, %s4818_s9 }
  0x68   : > { %p4821_p11 = pnand %p4819_p9, %p5131_p12 }
  0x69   : > { %p4828_p8 = por %p4827_p4, %p4826_p1 }
  0x6a   : > { %p4822_p13 = pneg %p4821_p11 }
  0x6c   : > { %p4829_p2 = pnand %p4828_p8, %p4822_p13 }
  0x6e   : > { %4832 = shalt.err (!%p4829_p2)
}
  0x6f   : > { %4613 = dma.hbm_to_vmem [thread:$0]  (!%p5115_p10), %s6220_s2, 16, %s207_s14, [#allocation8]  }
  0x70   : > { %s5004_s22 = smov [#allocation12]   ;;  %s4833_s11 = scalar_lea.hbm %s6193_s4, 16 }
  0x71   : > { %s230_s6 = sshll.u32 %s5004_s22, 4  ;;  %p4834_p6 = scmp.ne.s32.totalorder %s6193_s4, %s4833_s11  ;;  %s231_s6 = int_to_ptr.vmem [resolvable:$true] %s230_s6 }
  0x72   : > { %p4840_p0 = scmp.lt.u32.totalorder %s4833_s11, %s6193_s4 }
  0x73   : > { %p4836_p2 = pnand %p4834_p6, %p5131_p12 }
  0x75   : > { %p4837_p8 = pneg %p4836_p2 }
  0x77   : > { %p4842_p3 = pnand %p4840_p0, %p4837_p8 }
  0x79   : > { %4845 = shalt.err (!%p4842_p3)
}
  0x7a   : > { %s4846_s14 = scalar_lea.vmem %s231_s6, 16  ;;  %s4853_s5 = scalar_lea.vmem %s231_s6, 32 }
  0x7b   : > { %p4847_p5 = scmp.ne.s32.totalorder %s231_s6, %s4846_s14  ;;  %p4854_p11 = scmp.lt.s32.totalorder %s231_s6, %s231_s6 }
  0x7c   : > { %p4855_p13 = scmp.lt.s32.totalorder %s4853_s5, %s4846_s14 }
  0x7d   : > { %p4849_p7 = pnand %p4847_p5, %p5131_p12 }
  0x7e   : > { %p4856_p1 = por %p4855_p13, %p4854_p11 }
  0x7f   : > { %p4850_p9 = pneg %p4849_p7 }
  0x81   : > { %p4857_p4 = pnand %p4856_p1, %p4850_p9 }
  0x83   : > { %4860 = shalt.err (!%p4857_p4)
}
  0x84   : > { %4619 = dma.hbm_to_vmem [thread:$0]  (!%p5115_p10), %s6193_s4, 16, %s231_s6, [#allocation11]  }
  0x85   : > { %s32_s8 = sadd.s32 1, %s4989_s23  ;;  %s35_s26 = sadd.s32 1, %s4993_s24 }
  0x86   : > { %p33_p12 = scmp.ge.s32.totalorder %s32_s8, 2  ;;  %s44_s10 = sadd.s32 1, %s4977_s20 }
  0x87   : > { %p51_p6 = scmp.ne.s32.totalorder %s4977_s20, %s4973_s19  ;;  %p52_p2 = scmp.eq.s32.totalorder %s4997_s25, 0 }
  0x88   : > { %s6255_s8 = smov (%p33_p12, %s32_s8), 0  ;;  %s6257_s26 = smov (!%p33_p12, %s35_s26), %s4993_s24 }
  0x89   : > { %s40_s27 = ssub.s32 %s4989_s23, %s6255_s8  ;;  %p5229_p8 = por %p52_p2, %p51_p6 }
  0x8a   : > { %p37_p10 = scmp.ge.s32.totalorder %s6257_s26, 2  ;;  %p6222_p0 = scmp.ne.s32.totalorder %s6211_s29, 0 }
  0x8b   : > { %p4632_p5 = scmp.lt.s32.totalorder %s4997_s25, 4  ;;  %s241_s13 = sand.u32 1, %s4977_s20  }
  0x8c   : > { %p5235_p3 = por %p6222_p0, %p51_p6  ;;  %s6259_s26 = smov (%p37_p10, %s6257_s26), 0 }
  0x8d   : > { %s4583_s15 = smul.u32 80, %s241_s13  ;;  %s39_s9 = ssub.s32 %s4993_s24, %s6259_s26 }
  0x8e   : > { %s4584_s12 = smul.u32 20, %s4989_s23  ;;  %s41_s14 = sor.u32 %s40_s27, %s39_s9 }
  0x8f   : > { %p42_p7 = scmp.eq.s32.totalorder %s41_s14, 0  ;;  %s4585_s5 = smul.u32 40, %s4993_s24 }
  0x90   : > { %s245_s18 = scalar_lea.vmem [#allocation4], %s4583_s15  ;;  %p5249_p9 = pnand %p4632_p5, %p5229_p8 }
  0x91   : > { %s254_s22 = sshll.u32 %s245_s18, 4  ;;  %s251_s17 = sadd.s32 %s4585_s5, %s4584_s12  ;;  %s5256_s22 = int_to_ptr.vmem [resolvable:$true] %s254_s22 }
  0x92   : > { %s5254_s16 = scalar_select %p42_p7, %s4977_s20, %s44_s10  }
  0x93   : > { %s4038_s1 = sshll.u32 %s251_s17, 6  ;;  %s5263_s11 = scalar_lea.sflag [#allocation5], %s241_s13 }
  0x94   : > { %s5261_s27 = scalar_lea.hbm %s6189_s0, %s4038_s1  ;;  %p4863_p13 = pneg %p5249_p9 }
  0x95   : > { %s4861_s15 = scalar_lea.hbm %s5261_s27, 1280  ;;  %s4866_s2 = scalar_lea.hbm %s6189_s0, 5120 }
  0x96   : > { %p4862_p11 = scmp.ne.s32.totalorder %s5261_s27, %s4861_s15  ;;  %p4867_p12 = scmp.lt.u32.totalorder %s5261_s27, %s6189_s0 }
  0x97   : > { %p4868_p6 = scmp.lt.u32.totalorder %s4866_s2, %s4861_s15  ;;  %p4870_p8 = scmp.lt.u32.totalorder %s4861_s15, %s5261_s27 }
  0x98   : > { %p4864_p1 = pnand %p4863_p13, %p4862_p11 }
  0x99   : > { %p4869_p2 = por %p4868_p6, %p4867_p12 }
  0x9a   : > { %p4865_p4 = pneg %p4864_p1 }
  0x9b   : > { %p4871_p10 = por %p4870_p8, %p4869_p2 }
  0x9d   : > { %p4872_p0 = pnand %p4871_p10, %p4865_p4 }
  0x9f   : > { %4875 = shalt.err (!%p4872_p0)
}
  0xa0   : > { %s4876_s13 = scalar_lea.vmem %s5256_s22, 1280  ;;  %s5005_s9 = smov [#allocation4]  }
  0xa1   : > { %p4877_p5 = scmp.ne.s32.totalorder %s5256_s22, %s4876_s13  ;;  %s4881_s12 = sshll.u32 %s5005_s9, 4  ;;  %s4882_s12 = int_to_ptr.vmem [resolvable:$false] %s4881_s12 }
  0xa2   : > { %s4883_s14 = scalar_lea.vmem %s4882_s12, 2560  ;;  %p4884_p1 = scmp.lt.s32.totalorder %s5256_s22, %s4882_s12 }
  0xa3   : > { %p4879_p7 = pnand %p4877_p5, %p4863_p13  ;;  %p4885_p12 = scmp.lt.s32.totalorder %s4883_s14, %s4876_s13 }
  0xa5   : > { %p4880_p11 = pneg %p4879_p7  ;;  %p4886_p6 = por %p4885_p12, %p4884_p1 }
  0xa7   : > { %p4887_p2 = pnand %p4886_p6, %p4880_p11 }
  0xa9   : > { %4890 = shalt.err (!%p4887_p2)
}
  0xaa   : > { %s6225_s5 = smov 4   ;;  %s6226_s18 = smov 64  }
  0xab   : > { %4623 = dma.hbm_to_vmem [thread:$0]  (!%p5249_p9), %s5261_s27, 1280, %s5256_s22, %s5263_s11, %s6226_s18, %s6226_s18, %s6225_s5  }
  0xac   : > { %p6227_p13 = scmp.ne.s32.totalorder %s6215_s7, 0 }
  0xad   : > { %s5297_s15 = sand.u32 (!%p6227_p13), 1, %s4973_s19   ;;  %p6228_p4 = scmp.ne.s32.totalorder (!%p6227_p13), %s6212_s30, 0 }
  0xae   : > { %266 = sbr.rel (%p6227_p13) target bundleno = 915 (0x393), region = 40  ;;  %s269_s10 = scalar_lea.sflag (!%p6227_p13), [#allocation5], %s5297_s15 }
  0xaf   : > { %s4586_s17 = smul.u32 (!%p6227_p13), 80, %s5297_s15 }
  0xb1   : > { %s5301_s2 = scalar_lea.vmem (!%p6227_p13), [#allocation4], %s4586_s17 }
  0xb5   : > { %4952 = dma.done.wait (%p6228_p4), %s269_s10, 1280  }
  0xb6   : > { %4954 = vsyncadd (%p6228_p4), %s269_s10, 4294966016  ;;  %p6229_p9 = scmp.ne.s32.totalorder %s6210_s28, 0 }
  0xb8   : > { %4956 = dma.done.wait (%p6229_p9), [#allocation8], 336  }
  0xb9   : > { %4958 = vsyncadd (%p6229_p9), [#allocation8], 4294966960 }
  0xba   : > { %4960 = dma.done.wait (%p6229_p9), [#allocation11], 592  }
  0xbb   : > { %4962 = vsyncadd (%p6229_p9), [#allocation11], 4294966704  ;;  %s4044_s7 = sshll.u32 %s5297_s15, 7  ;;  %v4712_v0 = vld [vmem:[#allocation7] sm:$0xff]   ;;  %v4713_v1 = vld [vmem:[#allocation7 + $0x8] sm:$0xff]   ;;  %vm414_vm0 = vcmask 293888  }
  0xbc   : > { %4382 = vmatprep.subr.bf16.mxu0 %v4712_v0  ;;  %v4714_v2 = vld [vmem:[#allocation7 + $0x10] ss:$0 sps:$4 sm:$0x33]   ;;  %vm445_vm1 = vcmask 1041408   ;;  %v4716_v5 = vld [vmem:[%s5301_s2 + $0x8] sm:$0xff]   ;;  %v4718_v7 = vld [vmem:[%s5301_s2 + $0x18] sm:$0xff]  }
  0xbd   : > { %v4715_v3 = vld [vmem:[%s5301_s2] sm:$0xff]   ;;  %4383 = vmatpush3.bf16.msra.mxu0 %v4712_v0  ;;  %v447_v4 = vsel %vm445_vm1, %v4714_v2, 0  ;;  %v4717_v6 = vld [vmem:[%s5301_s2 + $0x10] sm:$0xff]   ;;  %v4720_v9 = vld [vmem:[%s5301_s2 + $0x28] sm:$0xff]   ;;  %vm642_vm2 = vsmask.f32 256 }
  0xbe   : > { %4384 = vmatprep.subr.bf16.mxu0 %v4713_v1  ;;  %4388 = vmatprep.mubr.msk.bf16.mxu0 %vm414_vm0, %v4715_v3  ;;  %v4719_v8 = vld [vmem:[%s5301_s2 + $0x20] sm:$0xff]   ;;  %v4721_v10 = vld [vmem:[%s5301_s2 + $0x30] sm:$0xff]   ;;  %v4722_v11 = vld [vmem:[%s5301_s2 + $0x38] sm:$0xff]   ;;  %vm845_vm3 = vcmask 60416   ;;  %vm846_vm4 = vsmask.f32 7938 }
  0xbf   : > { %v4723_v12 = vld [vmem:[%s5301_s2 + $0x40] sm:$0xff]   ;;  %v4724_v13 = vld [vmem:[%s5301_s2 + $0x48] sm:$0xff]   ;;  %vm853_vm5 = vcmask 57344   ;;  %vm643_vm6 = vsmask.f32 4368  ;;  %vm5345_vm7 = vmand %vm845_vm3, %vm846_vm4  ;;  %s5519_s28 = scalar_lea.vmem [#allocation13], %s4044_s7 }
  0xc0   : > { %v5336_v14 = vld [vmem:[#allocation9] ss:$0 sm:$0xff]  ;;  %vm5352_vm8 = vmand %vm853_vm5, %vm642_vm2  ;;  %v848_v51 = vld [vmem:[#allocation2] sm:$0xf]  ;;  %p4089_p8 = scmp.ne.s32.totalorder %s4981_s21, 0 }
  0xc1   : > { %4385 = vmatpush3.bf16.msra.mxu0 %v4713_v1  ;;  %v858_v42 = vld [vmem:[#allocation2 + $0xc] sm:$0xf]  ;;  %vm5358_vm9 = vmor %vm642_vm2, %vm643_vm6  ;;  %v862_v58 = vld [vmem:[#allocation2 + $0x14] sm:$0x1] }
  0xc2   : > { %4572 = vmatprep.subr.msk.bf16.mxu0 %vm445_vm1, %v4714_v2  ;;  %v855_v0 = vld [vmem:[#allocation2 + $0x8] sm:$0x1]  ;;  %vm5389_vm10 = vmand %vm853_vm5, %vm846_vm4 }
  0xc5   : > { %4387 = vmatpush3.bf16.msra.mxu0 %v447_v4 }
  0xc8   : > { %4389 = vmatmul.mubr.msk.bf16.vlgmr.msra.gmra.mrb[0].mxu0 %vm414_vm0, %v4716_v5 }
  0xc9   : > { %4392 = vmatprep.mubr.msk.bf16.mxu0 %vm414_vm0, %v4717_v6 }
  0xd0   : > { %4393 = vmatmul.mubr.msk.bf16.gmra.mrb[4].mxu0 %vm414_vm0, %v4718_v7 }
  0xd1   : > { %4396 = vmatprep.mubr.msk.bf16.mxu0 %vm414_vm0, %v4719_v8 }
  0xd8   : > { %4397 = vmatmul.mubr.msk.bf16.gmra.mrb[8].mxu0 %vm414_vm0, %v4720_v9 }
  0xd9   : > { %4400 = vmatprep.mubr.msk.bf16.mxu0 %vm414_vm0, %v4721_v10 }
  0xe0   : > { %4401 = vmatmul.mubr.msk.bf16.gmra.mrb[12].mxu0 %vm414_vm0, %v4722_v11 }
  0xe1   : > { %4404 = vmatprep.mubr.msk.bf16.mxu0 %vm414_vm0, %v4723_v12 }
  0xe8   : > { %4405 = vmatmul.mubr.msk.bf16.gmra.mrb[16].mxu0 %vm414_vm0, %v4724_v13 }
 0x19b   : > { %v4390_v15 = vpop.f32.mrb[0].mxu0 }
 0x19c   : > { %v492_v16 = vadd.f32 %v4390_v15, %v5336_v14  ;;  %v483_v17 = vpop.f32.mrb[1].mxu0 }
 0x19d   : > { %v484_v18 = vadd.f32 %v5336_v14, %v483_v17  ;;  %v4391_v19 = vpop.f32.mrb[2].mxu0 }
 0x19e   : > { %v564_v20 = vmax.f32 %v492_v16, 0.0  ;;  %v495_v21 = vadd.f32 %v4391_v19, %v5336_v14  ;;  %v486_v22 = vpop.f32.mrb[3].mxu0 }
 0x19f   : > { %v562_v23 = vmax.f32 %v484_v18, 0.0  ;;  %v487_v24 = vadd.f32 %v5336_v14, %v486_v22 }
 0x1a0   : > { %v4269_v25 = vpack.c.bf16 %v564_v20, %v564_v20  ;;  %v565_v26 = vmax.f32 %v495_v21, 0.0  ;;  %v872_v20 = vld [vmem:[#allocation2 + $0x24] sm:$0xf] }
 0x1a1   : > { %v4267_v27 = vpack.c.bf16 %v562_v23, %v562_v23  ;;  %v563_v28 = vmax.f32 %v487_v24, 0.0 }
 0x1a2   : > { %v663_v29 = vshrl.u32 %v4269_v25, 16  ;;  %v4270_v30 = vpack.c.bf16 %v565_v26, %v565_v26  ;;  %v666_v31 = vshll.u32 %v4269_v25, 16  ;;  %v865_v26 = vld [vmem:[#allocation2 + $0x18] sm:$0xf] }
 0x1a3   : > { %v646_v32 = vshrl.u32 %v4267_v27, 16  ;;  %v649_v33 = vshll.u32 %v4267_v27, 16  ;;  %v4268_v34 = vpack.c.bf16 %v563_v28, %v563_v28  ;;  %v4394_v35 = vpop.f32.mrb[4].mxu0 }
 0x1a4   : > { %v665_v36 = vrot.slane %v663_v29, 7  ;;  %v671_v37 = vshrl.u32 %v4270_v30, 16  ;;  %v674_v38 = vshll.u32 %v4270_v30, 16  ;;  %v508_v39 = vadd.f32 %v4394_v35, %v5336_v14  ;;  %v499_v40 = vpop.f32.mrb[5].mxu0 }
 0x1a5   : > { %v648_v43 = vrot.slane %v646_v32, 7  ;;  %v654_v44 = vshrl.u32 %v4268_v34, 16  ;;  %v657_v45 = vshll.u32 %v4268_v34, 16  ;;  %v500_v46 = vadd.f32 %v5336_v14, %v499_v40  ;;  %v4395_v47 = vpop.f32.mrb[6].mxu0 }
 0x1a6   : > { %v668_v48 = vor.u32 %v666_v31, %v665_v36  ;;  %v669_v49 = vrot.slane %v665_v36, 4  ;;  %v673_v52 = vrot.slane %v671_v37, 7  ;;  %v568_v53 = vmax.f32 %v508_v39, 0.0  ;;  %v502_v54 = vpop.f32.mrb[7].mxu0 }
 0x1a7   : > { %v651_v55 = vor.u32 %v649_v33, %v648_v43  ;;  %v652_v56 = vrot.slane %v648_v43, 4  ;;  %v656_v59 = vrot.slane %v654_v44, 7  ;;  %v566_v60 = vmax.f32 %v500_v46, 0.0 }
 0x1a8   : > { %v859_v61 = vsel %vm5345_vm7, %v668_v48, %v858_v42  ;;  %v676_v62 = vor.u32 %v674_v38, %v673_v52  ;;  %v678_v63 = vrot.slane %v673_v52, 4  ;;  %v4273_v1 = vpack.c.bf16 %v568_v53, %v568_v53 }
 0x1a9   : > { %860 = vst [vmem:[#allocation2 + $0xc] sm:$0xf] %v859_v61  ;;  %v849_v2 = vsel %vm5345_vm7, %v651_v55, %v848_v51  ;;  %v659_v3 = vor.u32 %v657_v45, %v656_v59  ;;  %v661_v4 = vrot.slane %v656_v59, 4  ;;  %v4271_v5 = vpack.c.bf16 %v566_v60, %v566_v60  ;;  %v876_v55 = vld [vmem:[#allocation2 + $0x2c] sm:$0x1] }
 0x1aa   : > { %850 = vst [vmem:[#allocation2] sm:$0xf] %v849_v2  ;;  %v677_v6 = vsel %vm5358_vm9, %v669_v49, %v676_v62  ;;  %v863_v7 = vsel %vm5352_vm8, %v678_v63, %v862_v58  ;;  %v697_v8 = vshrl.u32 %v4273_v1, 16  ;;  %v700_v11 = vshll.u32 %v4273_v1, 16 }
 0x1ab   : > { %861 = vst.msk [vmem:[#allocation2 + $0x10] sm:$0xf] %vm845_vm3, %v677_v6  ;;  %864 = vst [vmem:[#allocation2 + $0x14] sm:$0x1] %v863_v7  ;;  %v660_v9 = vsel %vm5358_vm9, %v652_v56, %v659_v3  ;;  %v856_v10 = vsel %vm5352_vm8, %v661_v4, %v855_v0  ;;  %v680_v12 = vshrl.u32 %v4271_v5, 16  ;;  %v4398_v13 = vpop.f32.mrb[8].mxu0  ;;  %v511_v16 = vadd.f32 %v4395_v47, %v5336_v14 }
 0x1ac   : > { %852 = vst.msk [vmem:[#allocation2 + $0x4] sm:$0xf] %vm845_vm3, %v660_v9  ;;  %857 = vst [vmem:[#allocation2 + $0x8] sm:$0x1] %v856_v10  ;;  %v5376_v15 = vrot.slane %v697_v8, 7  ;;  %v503_v17 = vadd.f32 %v5336_v14, %v502_v54  ;;  %v524_v18 = vadd.f32 %v4398_v13, %v5336_v14  ;;  %v515_v19 = vpop.f32.mrb[9].mxu0 }
 0x1ad   : > { %v5381_v21 = vrot.slane %v680_v12, 7  ;;  %v683_v22 = vshll.u32 %v4271_v5, 16  ;;  %v516_v23 = vadd.f32 %v5336_v14, %v515_v19  ;;  %v4399_v24 = vpop.f32.mrb[10].mxu0  ;;  %v569_v27 = vmax.f32 %v511_v16, 0.0  ;;  %v869_v0 = vld [vmem:[#allocation2 + $0x20] sm:$0x1] }
 0x1ae   : > { %v702_v25 = vor.u32 %v700_v11, %v5376_v15  ;;  %v567_v28 = vmax.f32 %v503_v17, 0.0  ;;  %v518_v29 = vpop.f32.mrb[11].mxu0  ;;  %v703_v30 = vrot.slane %v5376_v15, 4  ;;  %v572_v32 = vmax.f32 %v524_v18, 0.0  ;;  %v886_v10 = vld [vmem:[#allocation2 + $0x3c] sm:$0xf] }
 0x1af   : > { %v685_v31 = vor.u32 %v683_v22, %v5381_v21  ;;  %v570_v33 = vmax.f32 %v516_v23, 0.0  ;;  %v4274_v37 = vpack.c.bf16 %v569_v27, %v569_v27  ;;  %v527_v39 = vadd.f32 %v4399_v24, %v5336_v14  ;;  %v879_v23 = vld [vmem:[#allocation2 + $0x30] sm:$0xf] }
 0x1b0   : > { %v924_v34 = vld [vmem:[#allocation2 + $0xc] sm:$0x1]  ;;  %v873_v36 = vsel %vm5345_vm7, %v702_v25, %v872_v20  ;;  %v4272_v38 = vpack.c.bf16 %v567_v28, %v567_v28  ;;  %v4277_v44 = vpack.c.bf16 %v572_v32, %v572_v32  ;;  %v686_v48 = vrot.slane %v5381_v21, 4 }
 0x1b1   : > { %v925_v40 = vsel %vm5352_vm8, 0, %v924_v34  ;;  %v921_v42 = vld [vmem:[#allocation2] sm:$0x1]  ;;  %874 = vst [vmem:[#allocation2 + $0x24] sm:$0xf] %v873_v36  ;;  %v866_v43 = vsel %vm5345_vm7, %v685_v31, %v865_v26  ;;  %v4275_v45 = vpack.c.bf16 %v570_v33, %v570_v33  ;;  %v705_v49 = vshrl.u32 %v4274_v37, 16 }
 0x1b2   : > { %926 = vst [vmem:[#allocation2 + $0xc] sm:$0x1] %v925_v40  ;;  %v922_v46 = vsel %vm5352_vm8, 0, %v921_v42  ;;  %v955_v47 = vld [vmem:[#allocation2 + $0x14] sm:$0x1]  ;;  %v688_v51 = vshrl.u32 %v4272_v38, 16  ;;  %v519_v4 = vadd.f32 %v5336_v14, %v518_v29 }
 0x1b3   : > { %867 = vst [vmem:[#allocation2 + $0x18] sm:$0xf] %v866_v43  ;;  %923 = vst [vmem:[#allocation2] sm:$0x1] %v922_v46  ;;  %v956_v52 = vsel %vm5389_vm10, 0, %v955_v47  ;;  %v708_v54 = vshll.u32 %v4274_v37, 16 }
 0x1b4   : > { %v952_v53 = vld [vmem:[#allocation2 + $0x8] sm:$0x1]  ;;  %v691_v56 = vshll.u32 %v4272_v38, 16  ;;  %v731_v58 = vshrl.u32 %v4277_v44, 16  ;;  %957 = vst [vmem:[#allocation2 + $0x14] sm:$0x1] %v956_v52 }
 0x1b5   : > { %v953_v59 = vsel %vm5389_vm10, 0, %v952_v53  ;;  %v707_v60 = vrot.slane %v705_v49, 7  ;;  %v690_v61 = vrot.slane %v688_v51, 7  ;;  %v714_v62 = vshrl.u32 %v4275_v45, 16  ;;  %v4402_v63 = vpop.f32.mrb[12].mxu0 }
 0x1b6   : > { %954 = vst [vmem:[#allocation2 + $0x8] sm:$0x1] %v953_v59  ;;  %v5407_v1 = vrot.slane %v731_v58, 7  ;;  %v734_v2 = vshll.u32 %v4277_v44, 16  ;;  %v573_v3 = vmax.f32 %v527_v39, 0.0  ;;  %v531_v5 = vpop.f32.mrb[13].mxu0  ;;  %v540_v34 = vadd.f32 %v4402_v63, %v5336_v14 }
 0x1b7   : > { %v710_v6 = vor.u32 %v708_v54, %v707_v60  ;;  %v712_v7 = vrot.slane %v707_v60, 4  ;;  %v693_v8 = vor.u32 %v691_v56, %v690_v61  ;;  %v695_v9 = vrot.slane %v690_v61, 4  ;;  %v4403_v11 = vpop.f32.mrb[14].mxu0  ;;  %v883_v59 = vld [vmem:[#allocation2 + $0x38] sm:$0x1] }
 0x1b8   : > { %v736_v12 = vor.u32 %v734_v2, %v5407_v1  ;;  %v5411_v13 = vrot.slane %v714_v62, 7  ;;  %v717_v15 = vshll.u32 %v4275_v45, 16  ;;  %v4278_v16 = vpack.c.bf16 %v573_v3, %v573_v3  ;;  %v534_v17 = vpop.f32.mrb[15].mxu0  ;;  %v930_v18 = vld [vmem:[#allocation2 + $0x24] sm:$0x1] }
 0x1b9   : > { %v711_v19 = vsel %vm5358_vm9, %v703_v30, %v710_v6  ;;  %v877_v20 = vsel %vm5352_vm8, %v712_v7, %v876_v55  ;;  %v694_v21 = vsel %vm5358_vm9, %v686_v48, %v693_v8  ;;  %v870_v22 = vsel %vm5352_vm8, %v695_v9, %v869_v0  ;;  %v890_v45 = vld [vmem:[#allocation2 + $0x44] sm:$0x1] }
 0x1ba   : > { %v931_v24 = vsel %vm5352_vm8, 0, %v930_v18  ;;  %v927_v25 = vld [vmem:[#allocation2 + $0x18] sm:$0x1]  ;;  %875 = vst.msk [vmem:[#allocation2 + $0x28] sm:$0xf] %vm845_vm3, %v711_v19  ;;  %v737_v26 = vrot.slane %v5407_v1, 4  ;;  %v887_v27 = vsel %vm5345_vm7, %v736_v12, %v886_v10  ;;  %v719_v28 = vor.u32 %v717_v15, %v5411_v13 }
 0x1bb   : > { %878 = vst [vmem:[#allocation2 + $0x2c] sm:$0x1] %v877_v20  ;;  %868 = vst.msk [vmem:[#allocation2 + $0x1c] sm:$0xf] %vm845_vm3, %v694_v21  ;;  %v928_v29 = vsel %vm5352_vm8, 0, %v927_v25  ;;  %v720_v30 = vrot.slane %v5411_v13, 4  ;;  %v532_v36 = vadd.f32 %v5336_v14, %v531_v5  ;;  %v543_v37 = vadd.f32 %v4403_v11, %v5336_v14 }
 0x1bc   : > { %871 = vst [vmem:[#allocation2 + $0x20] sm:$0x1] %v870_v22  ;;  %932 = vst [vmem:[#allocation2 + $0x24] sm:$0x1] %v931_v24  ;;  %v739_v31 = vshrl.u32 %v4278_v16, 16  ;;  %v571_v32 = vmax.f32 %v519_v4, 0.0  ;;  %v880_v33 = vsel %vm5345_vm7, %v719_v28, %v879_v23  ;;  %v535_v43 = vadd.f32 %v5336_v14, %v534_v17 }
 0x1bd   : > { %888 = vst [vmem:[#allocation2 + $0x3c] sm:$0xf] %v887_v27  ;;  %929 = vst [vmem:[#allocation2 + $0x18] sm:$0x1] %v928_v29  ;;  %v4406_v38 = vpop.f32.mrb[16].mxu0  ;;  %v742_v40 = vshll.u32 %v4278_v16, 16 }
 0x1be   : > { %881 = vst [vmem:[#allocation2 + $0x30] sm:$0xf] %v880_v33  ;;  %v741_v39 = vrot.slane %v739_v31, 7  ;;  %v4276_v42 = vpack.c.bf16 %v571_v32, %v571_v32  ;;  %v547_v44 = vpop.f32.mrb[17].mxu0  ;;  %v576_v46 = vmax.f32 %v540_v34, 0.0  ;;  %v574_v47 = vmax.f32 %v532_v36, 0.0 }
 0x1bf   : > { %v577_v48 = vmax.f32 %v543_v37, 0.0  ;;  %v556_v49 = vadd.f32 %v4406_v38, %v5336_v14  ;;  %v5439_v51 = vpop.f32.mrb[18].mxu0  ;;  %v5442_v55 = vadd.f32 %v5336_v14, %v547_v44  ;;  %v575_v4 = vmax.f32 %v535_v43, 0.0  ;;  %v900_v23 = vld [vmem:[#allocation2 + $0x54] sm:$0xf] }
 0x1c0   : > { %v744_v52 = vor.u32 %v742_v40, %v741_v39  ;;  %v746_v53 = vrot.slane %v741_v39, 4  ;;  %v722_v54 = vshrl.u32 %v4276_v42, 16  ;;  %v5444_v56 = vpop.f32.mrb[19].mxu0  ;;  %v725_v58 = vshll.u32 %v4276_v42, 16  ;;  %v904_v33 = vld [vmem:[#allocation2 + $0x5c] sm:$0x1] }
 0x1c1   : > { %v4281_v60 = vpack.c.bf16 %v576_v46, %v576_v46  ;;  %v4279_v61 = vpack.c.bf16 %v574_v47, %v574_v47  ;;  %v4282_v62 = vpack.c.bf16 %v577_v48, %v577_v48  ;;  %v580_v9 = vmax.f32 %v556_v49, 0.0 }
 0x1c2   : > { %v961_v63 = vld [vmem:[#allocation2 + $0x2c] sm:$0x1]  ;;  %v745_v1 = vsel %vm5358_vm9, %v737_v26, %v744_v52  ;;  %v891_v2 = vsel %vm5352_vm8, %v746_v53, %v890_v45  ;;  %v724_v3 = vrot.slane %v722_v54, 7  ;;  %v893_v26 = vld [vmem:[#allocation2 + $0x48] sm:$0xf]  ;;  %v4280_v29 = vpack.c.bf16 %v575_v4, %v575_v4 }
 0x1c3   : > { %v958_v0 = vld [vmem:[#allocation2 + $0x20] sm:$0x1]  ;;  %v962_v5 = vsel %vm5389_vm10, 0, %v961_v63  ;;  %889 = vst.msk [vmem:[#allocation2 + $0x40] sm:$0xf] %vm845_vm3, %v745_v1  ;;  %v765_v8 = vshrl.u32 %v4281_v60, 16  ;;  %v4285_v34 = vpack.c.bf16 %v580_v9, %v580_v9 }
 0x1c4   : > { %v959_v6 = vsel %vm5389_vm10, 0, %v958_v0  ;;  %v936_v7 = vld [vmem:[#allocation2 + $0x3c] sm:$0x1]  ;;  %892 = vst [vmem:[#allocation2 + $0x44] sm:$0x1] %v891_v2  ;;  %v727_v11 = vor.u32 %v725_v58, %v724_v3  ;;  %v729_v12 = vrot.slane %v724_v3, 4  ;;  %v551_v58 = vadd.f32 %v5336_v14, %v5444_v56 }
 0x1c5   : > { %963 = vst [vmem:[#allocation2 + $0x2c] sm:$0x1] %v962_v5  ;;  %960 = vst [vmem:[#allocation2 + $0x20] sm:$0x1] %v959_v6  ;;  %v937_v10 = vsel %vm5352_vm8, 0, %v936_v7  ;;  %v748_v13 = vshrl.u32 %v4279_v61, 16 }
 0x1c6   : > { %938 = vst [vmem:[#allocation2 + $0x3c] sm:$0x1] %v937_v10  ;;  %v933_v15 = vld [vmem:[#allocation2 + $0x30] sm:$0x1]  ;;  %v767_v16 = vrot.slane %v765_v8, 7  ;;  %v768_v17 = vshll.u32 %v4281_v60, 16  ;;  %v728_v21 = vsel %vm5358_vm9, %v720_v30, %v727_v11  ;;  %v884_v22 = vsel %vm5352_vm8, %v729_v12, %v883_v59 }
 0x1c7   : > { %v751_v18 = vshll.u32 %v4279_v61, 16  ;;  %v773_v19 = vshrl.u32 %v4282_v62, 16  ;;  %v934_v20 = vsel %vm5352_vm8, 0, %v933_v15  ;;  %v750_v24 = vrot.slane %v748_v13, 7  ;;  %882 = vst.msk [vmem:[#allocation2 + $0x34] sm:$0xf] %vm845_vm3, %v728_v21 }
 0x1c8   : > { %935 = vst [vmem:[#allocation2 + $0x30] sm:$0x1] %v934_v20  ;;  %885 = vst [vmem:[#allocation2 + $0x38] sm:$0x1] %v884_v22  ;;  %v770_v25 = vor.u32 %v768_v17, %v767_v16  ;;  %v776_v28 = vshll.u32 %v4282_v62, 16  ;;  %v771_v31 = vrot.slane %v767_v16, 4 }
 0x1c9   : > { %v775_v27 = vrot.slane %v773_v19, 7  ;;  %v753_v32 = vor.u32 %v751_v18, %v750_v24  ;;  %v578_v30 = vmax.f32 %v5442_v55, 0.0  ;;  %v756_v39 = vshrl.u32 %v4280_v29, 16  ;;  %v897_v52 = vld [vmem:[#allocation2 + $0x50] sm:$0x1] }
 0x1ca   : > { %v901_v36 = vsel %vm5345_vm7, %v770_v25, %v900_v23  ;;  %v759_v43 = vshll.u32 %v4280_v29, 16  ;;  %v799_v44 = vshrl.u32 %v4285_v34, 16  ;;  %v802_v45 = vshll.u32 %v4285_v34, 16  ;;  %v914_v62 = vld [vmem:[#allocation2 + $0x6c] sm:$0xf] }
 0x1cb   : > { %v778_v37 = vor.u32 %v776_v28, %v775_v27  ;;  %v780_v38 = vrot.slane %v775_v27, 4  ;;  %v967_v40 = vld [vmem:[#allocation2 + $0x44] sm:$0x1]  ;;  %902 = vst [vmem:[#allocation2 + $0x54] sm:$0xf] %v901_v36  ;;  %v894_v42 = vsel %vm5345_vm7, %v753_v32, %v893_v26  ;;  %v758_v49 = vrot.slane %v756_v39, 7 }
 0x1cc   : > { %v968_v46 = vsel %vm5389_vm10, 0, %v967_v40  ;;  %895 = vst [vmem:[#allocation2 + $0x48] sm:$0xf] %v894_v42  ;;  %v801_v53 = vrot.slane %v799_v44, 7  ;;  %v4283_v54 = vpack.c.bf16 %v578_v30, %v578_v30  ;;  %v559_v55 = vadd.f32 %v5439_v51, %v5336_v14  ;;  %v907_v8 = vld [vmem:[#allocation2 + $0x60] sm:$0xf] }
 0x1cd   : > { %v779_v47 = vsel %vm5358_vm9, %v771_v31, %v778_v37  ;;  %v905_v48 = vsel %vm5352_vm8, %v780_v38, %v904_v33  ;;  %969 = vst [vmem:[#allocation2 + $0x44] sm:$0x1] %v968_v46  ;;  %v754_v59 = vrot.slane %v750_v24, 4  ;;  %v761_v60 = vor.u32 %v759_v43, %v758_v49  ;;  %v918_v23 = vld [vmem:[#allocation2 + $0x74] sm:$0x1] }
 0x1ce   : > { %903 = vst.msk [vmem:[#allocation2 + $0x58] sm:$0xf] %vm845_vm3, %v779_v47  ;;  %906 = vst [vmem:[#allocation2 + $0x5c] sm:$0x1] %v905_v48  ;;  %v763_v61 = vrot.slane %v758_v49, 4  ;;  %v804_v0 = vor.u32 %v802_v45, %v801_v53  ;;  %v782_v1 = vshrl.u32 %v4283_v54, 16 }
 0x1cf   : > { %v964_v63 = vld [vmem:[#allocation2 + $0x38] sm:$0x1]  ;;  %v762_v3 = vsel %vm5358_vm9, %v754_v59, %v761_v60  ;;  %v581_v51 = vmax.f32 %v559_v55, 0.0  ;;  %v785_v5 = vshll.u32 %v4283_v54, 16  ;;  %v579_v6 = vmax.f32 %v551_v58, 0.0 }
 0x1d0   : > { %v965_v2 = vsel %vm5389_vm10, 0, %v964_v63  ;;  %v898_v4 = vsel %vm5352_vm8, %v763_v61, %v897_v52  ;;  %896 = vst.msk [vmem:[#allocation2 + $0x4c] sm:$0xf] %vm845_vm3, %v762_v3  ;;  %v915_v14 = vsel %vm5345_vm7, %v804_v0, %v914_v62  ;;  %v784_v56 = vrot.slane %v782_v1, 7  ;;  %v911_v31 = vld [vmem:[#allocation2 + $0x68] sm:$0x1] }
 0x1d1   : > { %966 = vst [vmem:[#allocation2 + $0x38] sm:$0x1] %v965_v2  ;;  %899 = vst [vmem:[#allocation2 + $0x50] sm:$0x1] %v898_v4  ;;  %v4286_v9 = vpack.c.bf16 %v581_v51, %v581_v51  ;;  %v4284_v13 = vpack.c.bf16 %v579_v6, %v579_v6  ;;  %v805_v27 = vrot.slane %v801_v53, 4  ;;  %v5006_v47 = vmov (!%p4089_p8), 0  }
 0x1d2   : > { %v942_v7 = vld [vmem:[#allocation2 + $0x54] sm:$0x1]  ;;  %916 = vst [vmem:[#allocation2 + $0x6c] sm:$0xf] %v915_v14  ;;  %v787_v12 = vor.u32 %v785_v5, %v784_v56  ;;  %v788_v34 = vrot.slane %v784_v56, 4 }
 0x1d3   : > { %v943_v10 = vsel %vm5352_vm8, 0, %v942_v7  ;;  %v939_v11 = vld [vmem:[#allocation2 + $0x48] sm:$0x1]  ;;  %v807_v17 = vshrl.u32 %v4286_v9, 16  ;;  %v790_v20 = vshrl.u32 %v4284_v13, 16  ;;  %v810_v22 = vshll.u32 %v4286_v9, 16 }
 0x1d4   : > { %944 = vst [vmem:[#allocation2 + $0x54] sm:$0x1] %v943_v10  ;;  %v940_v15 = vsel %vm5352_vm8, 0, %v939_v11  ;;  %v908_v19 = vsel %vm5345_vm7, %v787_v12, %v907_v8  ;;  %v793_v25 = vshll.u32 %v4284_v13, 16  ;;  %986 = vst.msk [vmem:[#allocation2] sm:$0xf] (!%p4089_p8), %vm845_vm3, %v5006_v47 }
 0x1d5   : > { %v973_v16 = vld [vmem:[#allocation2 + $0x5c] sm:$0x1]  ;;  %941 = vst [vmem:[#allocation2 + $0x48] sm:$0x1] %v940_v15  ;;  %909 = vst [vmem:[#allocation2 + $0x60] sm:$0xf] %v908_v19 }
 0x1d6   : > { %v974_v18 = vsel %vm5389_vm10, 0, %v973_v16  ;;  %v809_v21 = vrot.slane %v807_v17, 7  ;;  %v792_v24 = vrot.slane %v790_v20, 7  ;;  %987 = vst.msk [vmem:[#allocation2 + $0x4] sm:$0xf] (!%p4089_p8), %vm845_vm3, %v5006_v47 }
 0x1d7   : > { %975 = vst [vmem:[#allocation2 + $0x5c] sm:$0x1] %v974_v18  ;;  %989 = vst.msk [vmem:[#allocation2 + $0x8] sm:$0x1] (!%p4089_p8), %vm853_vm5, %v5006_v47 }
 0x1d8   : > { %v970_v26 = vld [vmem:[#allocation2 + $0x50] sm:$0x1]  ;;  %v812_v28 = vor.u32 %v810_v22, %v809_v21  ;;  %v814_v29 = vrot.slane %v809_v21, 4  ;;  %v795_v41 = vor.u32 %v793_v25, %v792_v24  ;;  %v797_v30 = vrot.slane %v792_v24, 4 }
 0x1d9   : > { %v971_v32 = vsel %vm5389_vm10, 0, %v970_v26  ;;  %v948_v33 = vld [vmem:[#allocation2 + $0x6c] sm:$0x1] }
 0x1da   : > { %972 = vst [vmem:[#allocation2 + $0x50] sm:$0x1] %v971_v32  ;;  %v949_v36 = vsel %vm5352_vm8, 0, %v948_v33  ;;  %v813_v37 = vsel %vm5358_vm9, %v805_v27, %v812_v28  ;;  %v919_v38 = vsel %vm5352_vm8, %v814_v29, %v918_v23  ;;  %v796_v39 = vsel %vm5358_vm9, %v788_v34, %v795_v41 }
 0x1db   : > { %950 = vst [vmem:[#allocation2 + $0x6c] sm:$0x1] %v949_v36  ;;  %917 = vst.msk [vmem:[#allocation2 + $0x70] sm:$0xf] %vm845_vm3, %v813_v37  ;;  %v912_v40 = vsel %vm5352_vm8, %v797_v30, %v911_v31 }
 0x1dc   : > { %920 = vst [vmem:[#allocation2 + $0x74] sm:$0x1] %v919_v38  ;;  %910 = vst.msk [vmem:[#allocation2 + $0x64] sm:$0xf] %vm845_vm3, %v796_v39  ;;  %v945_v42 = vld [vmem:[#allocation2 + $0x60] sm:$0x1] }
 0x1dd   : > { %913 = vst [vmem:[#allocation2 + $0x68] sm:$0x1] %v912_v40  ;;  %v946_v43 = vsel %vm5352_vm8, 0, %v945_v42 }
 0x1de   : > { %947 = vst [vmem:[#allocation2 + $0x60] sm:$0x1] %v946_v43 }
 0x1e0   : > { %985 = sbr.rel (%p4089_p8) target bundleno = 487 (0x1e7), region = 64 }
 0x1e3   : > { %v979_v44 = vld [vmem:[#allocation2 + $0x74] sm:$0x1] }
 0x1e4   : > { %v980_v45 = vsel %vm5389_vm10, 0, %v979_v44  ;;  %v976_v46 = vld [vmem:[#allocation2 + $0x68] sm:$0x1] }
 0x1e5   : > { %981 = vst [vmem:[#allocation2 + $0x74] sm:$0x1] %v980_v45  ;;  %v977_v57 = vsel %vm5389_vm10, 0, %v976_v46 }
 0x1e6   : > { %978 = vst [vmem:[#allocation2 + $0x68] sm:$0x1] %v977_v57 }
 0x1e7 PF: > { %p4090_p10 = scmp.ne.s32.totalorder %s4981_s21, 1 }
 0x1e8   : > { %v5007_v50 = vmov (!%p4090_p10), 0  }
 0x1e9   : > { %993 = sbr.rel (%p4090_p10) target bundleno = 496 (0x1f0), region = 68  ;;  %995 = vst.msk [vmem:[#allocation2 + $0x6c] sm:$0xf] (!%p4090_p10), %vm845_vm3, %v5007_v50  ;;  %996 = vst.msk [vmem:[#allocation2 + $0x70] sm:$0xf] (!%p4090_p10), %vm845_vm3, %v5007_v50 }
 0x1ea   : > { %998 = vst.msk [vmem:[#allocation2 + $0x74] sm:$0x1] (!%p4090_p10), %vm853_vm5, %v5007_v50 }
 0x1f0 PF: > { %v1015_v35 = vld [vmem:[#allocation10] sm:$0xf]  ;;  %vm1081_vm11 = vcmask 1043456   ;;  %v4725_v48 = vld [vmem:[#allocation2] sm:$0xff]   ;;  %vm1056_vm12 = vcmask 64512   ;;  %v4727_v55 = vld [vmem:[#allocation2 + $0x18] sm:$0xff]  }
 0x1f1   : > { %4573 = vmatprep.subr.msk.bf16.mxu1 %vm1081_vm11, %v1015_v35  ;;  %v1083_v49 = vsel %vm1081_vm11, %v1015_v35, 0  ;;  %4410 = vmatprep.mubr.msk.bf16.mxu1 %vm1056_vm12, %v4725_v48  ;;  %v4726_v52 = vld [vmem:[#allocation2 + $0xc] sm:$0xff]   ;;  %v4728_v58 = vld [vmem:[#allocation2 + $0x24] sm:$0xff]   ;;  %v1198_v60 = vld [vmem:[#allocation2] sm:$0xf]  ;;  %vm1663_vm15 = vcmask 1042432  }
 0x1f2   : > { %4409 = vmatpush3.bf16.msra.mxu1 %v1083_v49  ;;  %v1418_v53 = vld [vmem:[#allocation10 + $0x4] sm:$0xf]  ;;  %v1199_v61 = vld [vmem:[#allocation2 + $0x4] sm:$0xf]  ;;  %v1200_v62 = vld [vmem:[#allocation2 + $0x8] sm:$0x1] }
 0x1f3   : > { %4574 = vmatprep.subr.msk.bf16.mxu1 %vm1081_vm11, %v1418_v53  ;;  %v1468_v54 = vsel %vm1081_vm11, %v1418_v53, 0  ;;  %v4729_v59 = vld [vmem:[#allocation2 + $0x30] sm:$0xff]   ;;  %vm1222_vm13 = vsmask.f32 3328  ;;  %vm1223_vm14 = vsmask.f32 7440 }
 0x1f4   : > { %v1226_v63 = vshrl.u32 %v1198_v60, 16  ;;  %v1229_v0 = vshll.u32 %v1198_v60, 16  ;;  %v1235_v1 = vshll.u32 %v1199_v61, 16  ;;  %v1239_v2 = vshrl.u32 %v1199_v61, 16  ;;  %v1201_v4 = vld [vmem:[#allocation2 + $0xc] sm:$0xf]  ;;  %vm5541_vm1 = vmor %vm1222_vm13, %vm1223_vm14 }
 0x1f5   : > { %4411 = vmatmul.mubr.msk.bf16.vlgmr.msra.gmra.mrb[0].mxu1 %vm1056_vm12, %v4726_v52  ;;  %v1245_v3 = vshll.u32 %v1200_v62, 16  ;;  %v1202_v56 = vld [vmem:[#allocation2 + $0x10] sm:$0xf]  ;;  %v1203_v5 = vld [vmem:[#allocation2 + $0x14] sm:$0x1]  ;;  %v1250_v9 = vshrl.u32 %v1201_v4, 16 }
 0x1f6   : > { %4427 = vmatpush3.bf16.msra.mxu1 %v1468_v54  ;;  %4414 = vmatprep.mubr.msk.bf16.mxu1 %vm1056_vm12, %v4727_v55  ;;  %v1228_v51 = vrot.slane %v1226_v63, 4  ;;  %v1231_v14 = vrot.slane %v1229_v0, 5  ;;  %v1237_v6 = vrot.slane %v1235_v1, 5  ;;  %v1241_v7 = vrot.slane %v1239_v2, 4  ;;  %v1723_v10 = vld [vmem:[#allocation10 + $0x8] sm:$0xf] }
 0x1f7   : > { %v1247_v8 = vrot.slane %v1245_v3, 5  ;;  %v1253_v12 = vshll.u32 %v1201_v4, 16  ;;  %v1259_v13 = vshll.u32 %v1202_v56, 16  ;;  %v1263_v15 = vshrl.u32 %v1202_v56, 16  ;;  %4576 = vmatprep.subr.msk.bf16.mxu1 %vm1081_vm11, %v1723_v10  ;;  %v1204_v16 = vld [vmem:[#allocation2 + $0x18] sm:$0xf]  ;;  %4575 = vmatprep.subr.msk.bf16.mxu0 %vm1081_vm11, %v1723_v10 }
 0x1f8   : > { %v1232_v11 = vor.u32 %v1231_v14, %v1228_v51  ;;  %vm1664_vm0 = vcmask 1046532   ;;  %v1242_v18 = vor.u32 %v1241_v7, %v1237_v6  ;;  %v1252_v19 = vrot.slane %v1250_v9, 4  ;;  %v1205_v22 = vld [vmem:[#allocation2 + $0x1c] sm:$0xf]  ;;  %v4731_v33 = vld [vmem:[#allocation2 + $0x48] sm:$0xff]   ;;  %s6242_s30 = sld [smem:[#allocation19_spill]] }
 0x1f9   : > { %v1269_v20 = vshll.u32 %v1203_v5, 16  ;;  %v5546_v21 = vsel %vm1081_vm11, %v1723_v10, 0  ;;  %v1255_v24 = vrot.slane %v1253_v12, 5  ;;  %v1261_v25 = vrot.slane %v1259_v13, 5  ;;  %v4730_v27 = vld [vmem:[#allocation2 + $0x3c] sm:$0xff]   ;;  %v4732_v5 = vld [vmem:[#allocation2 + $0x54] sm:$0xff]   ;;  %vm5566_vm2 = vmor %vm1663_vm15, %vm1664_vm0 }
 0x1fa   : > { %v1233_v23 = vrot.slane %v1232_v11, 4  ;;  %v1265_v26 = vrot.slane %v1263_v15, 4  ;;  %4445 = vmatpush3.bf16.msra.mxu0 %v5546_v21  ;;  %v1243_v28 = vrot.slane %v1242_v18, 4  ;;  %v1274_v31 = vshrl.u32 %v1204_v16, 16  ;;  %v1206_v36 = vld [vmem:[#allocation2 + $0x20] sm:$0x1] }
 0x1fb   : > { %v1271_v29 = vrot.slane %v1269_v20, 5  ;;  %v1277_v32 = vshll.u32 %v1204_v16, 16  ;;  %v1256_v41 = vor.u32 %v1255_v24, %v1252_v19  ;;  %v1283_v37 = vshll.u32 %v1205_v22, 16  ;;  %v1207_v38 = vld [vmem:[#allocation2 + $0x24] sm:$0xf]  ;;  %s4287_s22 = sshll.u32 %s4981_s21, 4 }
 0x1fc   : > { %v1238_v34 = vsel %vm5541_vm1, %v1233_v23, %v1237_v6  ;;  %v1266_v30 = vor.u32 %v1265_v26, %v1261_v25  ;;  %v1248_v39 = vsel %vm5541_vm1, %v1243_v28, %v1247_v8  ;;  %v1276_v40 = vrot.slane %v1274_v31, 4  ;;  %v1208_v44 = vld [vmem:[#allocation2 + $0x28] sm:$0xf]  ;;  %v1209_v49 = vld [vmem:[#allocation2 + $0x2c] sm:$0x1]  ;;  %s3902_s11 = sshll.u32 %s5519_s28, 4  ;;  %s6129_s11 = int_to_ptr.vmem [resolvable:$true] %s3902_s11 }
 0x1fd   : > { %4415 = vmatmul.mubr.msk.bf16.gmra.mrb[4].mxu1 %vm1056_vm12, %v4728_v58  ;;  %v1279_v42 = vrot.slane %v1277_v32, 5  ;;  %v1287_v43 = vshrl.u32 %v1205_v22, 16  ;;  %v4107_v45 = vcombine.low %v1238_v34, %v1248_v39  ;;  %v1257_v46 = vrot.slane %v1256_v41, 4  ;;  %v1616_v60 = vld [vmem:[#allocation2 + $0x4] sm:$0xf]  ;;  %s6243_s13 = sld [smem:[#allocation24_spill]] }
 0x1fe   : > { %4418 = vmatprep.mubr.msk.bf16.mxu1 %vm1056_vm12, %v4729_v59  ;;  %v1267_v57 = vrot.slane %v1266_v30, 4  ;;  %v1285_v47 = vrot.slane %v1283_v37, 5  ;;  %v1293_v48 = vshll.u32 %v1206_v36, 16  ;;  %v1298_v52 = vshrl.u32 %v1207_v38, 16  ;;  %v1615_v59 = vld [vmem:[#allocation2] sm:$0xe] }
 0x1ff   : > { %v1280_v50 = vor.u32 %v1279_v42, %v1276_v40  ;;  %v1289_v35 = vrot.slane %v1287_v43, 4  ;;  %v1262_v53 = vsel %vm5541_vm1, %v1257_v46, %v1261_v25  ;;  %v1301_v55 = vshll.u32 %v1207_v38, 16  ;;  %v1617_v1 = vld [vmem:[#allocation2 + $0x8] sm:$0x1]  ;;  %v1618_v2 = vld [vmem:[#allocation2 + $0xc] sm:$0xe] }
 0x200   : > { %v1272_v54 = vsel %vm5541_vm1, %v1267_v57, %v1271_v29  ;;  %v1307_v58 = vshll.u32 %v1208_v44, 16  ;;  %v1295_v0 = vrot.slane %v1293_v48, 5  ;;  %v1300_v3 = vrot.slane %v1298_v52, 4  ;;  %v1619_v56 = vld [vmem:[#allocation2 + $0x10] sm:$0xf]  ;;  %s4263_s29 = sshll.u32 %s6242_s30, 5 }
 0x201   : > { %v5560_v61 = vcombine.low %v1262_v53, %v1272_v54  ;;  %v1281_v62 = vrot.slane %v1280_v50, 4  ;;  %v1290_v63 = vor.u32 %v1289_v35, %v1285_v47  ;;  %v1303_v4 = vrot.slane %v1301_v55, 5  ;;  %v1620_v16 = vld [vmem:[#allocation2 + $0x14] sm:$0x1]  ;;  %v1210_v23 = vld [vmem:[#allocation2 + $0x30] sm:$0xf]  ;;  %s3899_s27 = sadd.s32 %s4287_s22, %s4263_s29 }
 0x202   : > { %v1309_v51 = vrot.slane %v1307_v58, 5  ;;  %v1311_v14 = vshrl.u32 %v1208_v44, 16  ;;  %v1317_v8 = vshll.u32 %v1209_v49, 16  ;;  %v4123_v10 = vrot.slane %v1615_v59, 9  ;;  %v1211_v28 = vld [vmem:[#allocation2 + $0x34] sm:$0xf] }
 0x203   : > { %v1286_v6 = vsel %vm5541_vm1, %v1281_v62, %v1285_v47  ;;  %v1291_v7 = vrot.slane %v1290_v63, 4  ;;  %v1304_v11 = vor.u32 %v1303_v4, %v1300_v3  ;;  %v1668_v13 = vrot.slane %v1616_v60, 5  ;;  %v1212_v30 = vld [vmem:[#allocation2 + $0x38] sm:$0x1]  ;;  %v1213_v43 = vld [vmem:[#allocation2 + $0x3c] sm:$0xf] }
 0x204   : > { %v1313_v12 = vrot.slane %v1311_v14, 4  ;;  %v1671_v15 = vrot.slane %v1617_v1, 5  ;;  %v1319_v19 = vrot.slane %v1317_v8, 5  ;;  %v4124_v20 = vrot.slane %v1618_v2, 9  ;;  %v1214_v44 = vld [vmem:[#allocation2 + $0x40] sm:$0xf] }
 0x205   : > { %4419 = vmatmul.mubr.msk.bf16.gmra.mrb[8].mxu1 %vm1056_vm12, %v4730_v27  ;;  %v1296_v18 = vsel %vm5541_vm1, %v1291_v7, %v1295_v0  ;;  %v1675_v22 = vrot.slane %v1619_v56, 5  ;;  %v1305_v25 = vrot.slane %v1304_v11, 4  ;;  %v1669_v27 = vsel %vm5566_vm2, %v4123_v10, %v1668_v13  ;;  %v1215_v50 = vld [vmem:[#allocation2 + $0x44] sm:$0x1]  ;;  %v1621_v53 = vld [vmem:[#allocation2 + $0x18] sm:$0xe] }
 0x206   : > { %4422 = vmatprep.mubr.msk.bf16.mxu1 %vm1056_vm12, %v4731_v33  ;;  %v4109_v24 = vcombine.low %v1286_v6, %v1296_v18  ;;  %v1314_v26 = vor.u32 %v1313_v12, %v1309_v51  ;;  %v1670_v29 = vrot.slane %v1668_v13, 4  ;;  %v1678_v33 = vrot.slane %v1620_v16, 5  ;;  %v1622_v60 = vld [vmem:[#allocation2 + $0x1c] sm:$0xf]  ;;  %v1623_v2 = vld [vmem:[#allocation2 + $0x20] sm:$0x1] }
 0x207   : > { %v1676_v31 = vsel %vm5566_vm2, %v4124_v20, %v1675_v22  ;;  %v1677_v32 = vrot.slane %v1675_v22, 4  ;;  %v1310_v34 = vsel %vm5541_vm1, %v1305_v25, %v1309_v51  ;;  %v1322_v36 = vshrl.u32 %v1210_v23, 16  ;;  %v1624_v3 = vld [vmem:[#allocation2 + $0x24] sm:$0xe]  ;;  %v1626_v11 = vld [vmem:[#allocation2 + $0x2c] sm:$0x1] }
 0x208   : > { %v1315_v41 = vrot.slane %v1314_v26, 4  ;;  %v1325_v37 = vshll.u32 %v1210_v23, 16  ;;  %v1672_v38 = vsel %vm5566_vm2, %v1670_v29, %v1671_v15  ;;  %v1331_v40 = vshll.u32 %v1211_v28, 16  ;;  %v1216_v18 = vld [vmem:[#allocation2 + $0x48] sm:$0xf]  ;;  %s4264_s21 = sshll.u32 %s3899_s27, 7 }
 0x209   : > { %v1679_v39 = vsel %vm5566_vm2, %v1677_v32, %v1678_v33  ;;  %v1335_v42 = vshrl.u32 %v1211_v28, 16  ;;  %v4131_v46 = vcombine.low %v1669_v27, %v1672_v38  ;;  %v1324_v47 = vrot.slane %v1322_v36, 4  ;;  %v1217_v23 = vld [vmem:[#allocation2 + $0x4c] sm:$0xf]  ;;  %v5600_v32 = vld [vmem:[#allocation10 + $0x10] sm:$0xf]  ;;  %s6127_s9 = scalar_lea.hbm %s6243_s13, %s4264_s21 }
 0x20a   : > { %v4132_v57 = vcombine.low %v1676_v31, %v1679_v39  ;;  %v1327_v48 = vrot.slane %v1325_v37, 5  ;;  %v1333_v49 = vrot.slane %v1331_v40, 5  ;;  %v1341_v54 = vshll.u32 %v1212_v30, 16  ;;  %v1219_v37 = vld [vmem:[#allocation2 + $0x54] sm:$0xf]  ;;  %4578 = vmatprep.subr.msk.bf16.mxu0 %vm1081_vm11, %v5600_v32  ;;  %s3886_s12 = scalar_lea.sflag [#allocation6], %s5297_s15 }
 0x20b   : > { %v1337_v52 = vrot.slane %v1335_v42, 4  ;;  %4446 = vmatprep.mubr.msk.bf16.mxu0 %vm1056_vm12, %v4131_v46  ;;  %v1346_v55 = vshrl.u32 %v1213_v43, 16  ;;  %v1349_v58 = vshll.u32 %v1213_v43, 16  ;;  %v1355_v59 = vshll.u32 %v1214_v44, 16  ;;  %v1220_v43 = vld [vmem:[#allocation2 + $0x58] sm:$0xf] }
 0x20c   : > { %4447 = vmatmul.mubr.msk.bf16.vlgmr.msra.gmra.mrb[20].mxu0 %vm1056_vm12, %v4132_v57  ;;  %v1328_v62 = vor.u32 %v1327_v48, %v1324_v47  ;;  %v1359_v0 = vshrl.u32 %v1214_v44, 16  ;;  %v1365_v1 = vshll.u32 %v1215_v50, 16  ;;  %v1343_v4 = vrot.slane %v1341_v54, 5  ;;  %v1221_v44 = vld [vmem:[#allocation2 + $0x5c] sm:$0x1]  ;;  %s4891_s14 = scalar_lea.vmem %s6129_s11, 2048 }
 0x20d   : > { %4423 = vmatmul.mubr.msk.bf16.gmra.mrb[12].mxu1 %vm1056_vm12, %v4732_v5  ;;  %v1338_v63 = vor.u32 %v1337_v52, %v1333_v49  ;;  %v1348_v51 = vrot.slane %v1346_v55, 4  ;;  %v1351_v14 = vrot.slane %v1349_v58, 5  ;;  %v1357_v56 = vrot.slane %v1355_v59, 5  ;;  %v1625_v5 = vld [vmem:[#allocation2 + $0x28] sm:$0xf]  ;;  %p4892_p0 = scmp.ne.s32.totalorder %s6129_s11, %s4891_s14  ;;  %s5008_s5 = smov [#allocation13]  }
 0x20e   : > { %4428 = vmatprep.mubr.msk.bf16.mxu1 %vm1056_vm12, %v4107_v45  ;;  %v1320_v45 = vsel %vm5541_vm1, %v1315_v41, %v1319_v19  ;;  %v1329_v6 = vrot.slane %v1328_v62, 4  ;;  %v1361_v8 = vrot.slane %v1359_v0, 4  ;;  %v1367_v10 = vrot.slane %v1365_v1, 5  ;;  %v1218_v41 = vld [vmem:[#allocation2 + $0x50] sm:$0x1]  ;;  %s4895_s18 = sshll.u32 %s5008_s5, 4  ;;  %s4896_s18 = int_to_ptr.vmem [resolvable:$false] %s4895_s18 }
 0x20f   : > { %v5586_v35 = vcombine.low %v1310_v34, %v1320_v45  ;;  %v1339_v7 = vrot.slane %v1338_v63, 4  ;;  %v1352_v12 = vor.u32 %v1351_v14, %v1348_v51  ;;  %v4125_v13 = vrot.slane %v1621_v53, 9  ;;  %v1627_v50 = vld [vmem:[#allocation2 + $0x30] sm:$0xe]  ;;  %v1628_v48 = vld [vmem:[#allocation2 + $0x34] sm:$0xf]  ;;  %p4893_p5 = pnand %p4892_p0, %p5235_p3  ;;  %p4898_p11 = scmp.lt.s32.totalorder %s6129_s11, %s4896_s18 }
 0x210   : > { %v1682_v15 = vrot.slane %v1622_v60, 5  ;;  %v1685_v16 = vrot.slane %v1623_v2, 5  ;;  %v1334_v19 = vsel %vm5541_vm1, %v1329_v6, %v1333_v49  ;;  %v1362_v20 = vor.u32 %v1361_v8, %v1357_v56  ;;  %v1629_v55 = vld [vmem:[#allocation2 + $0x38] sm:$0x1]  ;;  %v5618_v63 = vld [vmem:[#allocation10 + $0xc] sm:$0xf] }
 0x211   : > { %v4126_v22 = vrot.slane %v1624_v3, 9  ;;  %v1353_v26 = vrot.slane %v1352_v12, 4  ;;  %v1689_v28 = vrot.slane %v1625_v5, 5  ;;  %v1692_v29 = vrot.slane %v1626_v11, 5  ;;  %v1630_v3 = vld [vmem:[#allocation2 + $0x3c] sm:$0xe]  ;;  %p4894_p7 = pneg %p4893_p5 }
 0x212   : > { %v1363_v27 = vrot.slane %v1362_v20, 4  ;;  %v1370_v31 = vshrl.u32 %v1216_v18, 16  ;;  %v1373_v30 = vshll.u32 %v1216_v18, 16  ;;  %v1379_v36 = vshll.u32 %v1217_v23, 16  ;;  %v1632_v51 = vld [vmem:[#allocation2 + $0x44] sm:$0x1] }
 0x213   : > { %v1358_v33 = vsel %vm5541_vm1, %v1353_v26, %v1357_v56  ;;  %v1690_v40 = vsel %vm5566_vm2, %v4126_v22, %v1689_v28  ;;  %v1691_v42 = vrot.slane %v1689_v28, 4  ;;  %v1383_v52 = vshrl.u32 %v1217_v23, 16  ;;  %v1633_v18 = vld [vmem:[#allocation2 + $0x48] sm:$0xe]  ;;  %v1636_v26 = vld [vmem:[#allocation2 + $0x54] sm:$0xe] }
 0x214   : > { %v1368_v38 = vsel %vm5541_vm1, %v1363_v27, %v1367_v10  ;;  %v1372_v46 = vrot.slane %v1370_v31, 4  ;;  %v1375_v57 = vrot.slane %v1373_v30, 5  ;;  %v1381_v47 = vrot.slane %v1379_v36, 5  ;;  %v1638_v30 = vld [vmem:[#allocation2 + $0x5c] sm:$0x1]  ;;  %s4897_s17 = scalar_lea.vmem %s4896_s18, 4096 }
 0x215   : > { %4429 = vmatmul.mubr.msk.bf16.vlgmr.msra.gmra.mrb[16].mxu1 %vm1056_vm12, %v5560_v61  ;;  %v1344_v61 = vsel %vm5541_vm1, %v1339_v7, %v1343_v4  ;;  %v4112_v45 = vcombine.low %v1358_v33, %v1368_v38  ;;  %v1693_v49 = vsel %vm5566_vm2, %v1691_v42, %v1692_v29  ;;  %v1389_v53 = vshll.u32 %v1218_v41, 16  ;;  %v1631_v4 = vld [vmem:[#allocation2 + $0x40] sm:$0xf]  ;;  %v1637_v29 = vld [vmem:[#allocation2 + $0x58] sm:$0xf]  ;;  %p4899_p1 = scmp.lt.s32.totalorder %s4897_s17, %s4891_s14 }
 0x216   : > { %4571 = vmatpush3.bf16.msra.mxu1 %v5546_v21  ;;  %4432 = vmatprep.mubr.msk.bf16.mxu1 %vm1056_vm12, %v4109_v24  ;;  %v4111_v25 = vcombine.low %v1334_v19, %v1344_v61  ;;  %v1683_v21 = vsel %vm5566_vm2, %v4125_v13, %v1682_v15  ;;  %v1684_v24 = vrot.slane %v1682_v15, 4  ;;  %v1394_v54 = vshrl.u32 %v1219_v37, 16  ;;  %v1634_v19 = vld [vmem:[#allocation2 + $0x4c] sm:$0xf] }
 0x217   : > { %v4134_v58 = vcombine.low %v1690_v40, %v1693_v49  ;;  %v1376_v59 = vor.u32 %v1375_v57, %v1372_v46  ;;  %v1397_v60 = vshll.u32 %v1219_v37, 16  ;;  %v1403_v62 = vshll.u32 %v1220_v43, 16  ;;  %4577 = vmatprep.subr.msk.bf16.mxu1 %vm1081_vm11, %v5618_v63  ;;  %v5638_v40 = vld [vmem:[#allocation10 + $0x14] sm:$0xf]  ;;  %v2151_v42 = vld [vmem:[#allocation2 + $0xc] sm:$0xf]  ;;  %p4900_p12 = por %p4899_p1, %p4898_p11 }
 0x218   : > { %v1686_v34 = vsel %vm5566_vm2, %v1684_v24, %v1685_v16  ;;  %v1385_v0 = vrot.slane %v1383_v52, 4  ;;  %v1391_v1 = vrot.slane %v1389_v53, 5  ;;  %v1407_v2 = vshrl.u32 %v1220_v43, 16  ;;  %v2885_v49 = vld [vmem:[#allocation10 + $0x18] sm:$0xf] }
 0x219   : > { %v4133_v39 = vcombine.low %v1683_v21, %v1686_v34  ;;  %v1377_v14 = vrot.slane %v1376_v59, 4  ;;  %v1399_v56 = vrot.slane %v1397_v60, 5  ;;  %v1405_v5 = vrot.slane %v1403_v62, 5  ;;  %p4901_p6 = pnand %p4900_p12, %p4894_p7 }
 0x21a   : > { %v1413_v6 = vshll.u32 %v1221_v44, 16  ;;  %v1386_v7 = vor.u32 %v1385_v0, %v1381_v47  ;;  %v1409_v8 = vrot.slane %v1407_v2, 4  ;;  %v4127_v10 = vrot.slane %v1627_v50, 9  ;;  %v2153_v0 = vld [vmem:[#allocation2 + $0x14] sm:$0x1] }
 0x21b   : > { %4450 = vmatprep.mubr.msk.bf16.mxu0 %vm1056_vm12, %v4133_v39  ;;  %v1696_v11 = vrot.slane %v1628_v48, 5  ;;  %v1382_v12 = vsel %vm5541_vm1, %v1377_v14, %v1381_v47  ;;  %v1699_v16 = vrot.slane %v1629_v55, 5  ;;  %v4128_v24 = vrot.slane %v1630_v3, 9 }
 0x21c   : > { %4451 = vmatmul.mubr.msk.bf16.gmra.mrb[24].mxu0 %vm1056_vm12, %v4134_v58  ;;  %v1415_v15 = vrot.slane %v1413_v6, 5  ;;  %v1387_v61 = vrot.slane %v1386_v7, 4  ;;  %v1410_v20 = vor.u32 %v1409_v8, %v1405_v5  ;;  %v1703_v27 = vrot.slane %v1631_v4, 5 }
 0x21d   : > { %4433 = vmatmul.mubr.msk.bf16.gmra.mrb[20].mxu1 %vm1056_vm12, %v5586_v35  ;;  %v1396_v35 = vrot.slane %v1394_v54, 4  ;;  %v1697_v22 = vsel %vm5566_vm2, %v4127_v10, %v1696_v11  ;;  %v1698_v23 = vrot.slane %v1696_v11, 4  ;;  %v1706_v28 = vrot.slane %v1632_v51, 5  ;;  %v2155_v51 = vld [vmem:[#allocation2 + $0x1c] sm:$0xf] }
 0x21e   : > { %4436 = vmatprep.mubr.msk.bf16.mxu1 %vm1056_vm12, %v4111_v25  ;;  %v1635_v25 = vld [vmem:[#allocation2 + $0x50] sm:$0x1]  ;;  %v1392_v31 = vsel %vm5541_vm1, %v1387_v61, %v1391_v1  ;;  %v1411_v33 = vrot.slane %v1410_v20, 4  ;;  %v2418_v41 = vsel %vm1081_vm11, %v5600_v32, 0  ;;  %v1704_v39 = vsel %vm5566_vm2, %v4128_v24, %v1703_v27  ;;  %v2154_v1 = vld [vmem:[#allocation2 + $0x18] sm:$0xf] }
 0x21f   : > { %v1400_v13 = vor.u32 %v1399_v56, %v1396_v35  ;;  %v1700_v34 = vsel %vm5566_vm2, %v1698_v23, %v1699_v16  ;;  %v4113_v36 = vcombine.low %v1382_v12, %v1392_v31  ;;  %4481 = vmatpush3.bf16.msra.mxu0 %v2418_v41  ;;  %v1705_v44 = vrot.slane %v1703_v27, 4  ;;  %v2152_v32 = vld [vmem:[#allocation2 + $0x10] sm:$0xf]  ;;  %v2156_v11 = vld [vmem:[#allocation2 + $0x20] sm:$0x1] }
 0x220   : > { %v4135_v38 = vcombine.low %v1697_v22, %v1700_v34  ;;  %v1416_v43 = vsel %vm5541_vm1, %v1411_v33, %v1415_v15  ;;  %v1710_v46 = vrot.slane %v1634_v19, 5  ;;  %v1713_v47 = vrot.slane %v1635_v25, 5  ;;  %4580 = vmatprep.subr.msk.bf16.mxu0 %vm1081_vm11, %v2885_v49  ;;  %v2158_v23 = vld [vmem:[#allocation2 + $0x28] sm:$0xf]  ;;  %v4733_v33 = vld [vmem:[#allocation2 + $0xc] sm:$0xff]  }
 0x221   : > { %v1401_v21 = vrot.slane %v1400_v13, 4  ;;  %v4130_v50 = vrot.slane %v1636_v26, 9  ;;  %v1717_v48 = vrot.slane %v1637_v29, 5  ;;  %v1707_v52 = vsel %vm5566_vm2, %v1705_v44, %v1706_v28  ;;  %v2160_v44 = vld [vmem:[#allocation2 + $0x30] sm:$0xf] }
 0x222   : > { %4454 = vmatprep.mubr.msk.bf16.mxu0 %vm1056_vm12, %v4135_v38  ;;  %v1712_v54 = vrot.slane %v1710_v46, 4  ;;  %v1720_v55 = vrot.slane %v1638_v30, 5  ;;  %v4136_v58 = vcombine.low %v1704_v39, %v1707_v52  ;;  %v2004_v62 = vsel %vm1081_vm11, %v5618_v63, 0 }
 0x223   : > { %v1406_v37 = vsel %vm5541_vm1, %v1401_v21, %v1405_v5  ;;  %v1718_v59 = vsel %vm5566_vm2, %v4130_v50, %v1717_v48  ;;  %v1719_v60 = vrot.slane %v1717_v48, 4  ;;  %v5657_v2 = vsel %vm1081_vm11, %v5638_v40, 0 }
 0x224   : > { %v4114_v57 = vcombine.low %v1406_v37, %v1416_v43  ;;  %v1714_v35 = vsel %vm5566_vm2, %v1712_v54, %v1713_v47  ;;  %v2176_v3 = vshrl.u32 %v2151_v42, 16  ;;  %v2179_v4 = vshll.u32 %v2151_v42, 16  ;;  %4455 = vmatmul.mubr.msk.bf16.gmra.mrb[28].mxu0 %vm1056_vm12, %v4136_v58 }
 0x225   : > { %4437 = vmatmul.mubr.msk.bf16.gmra.mrb[24].mxu1 %vm1056_vm12, %v4112_v45  ;;  %v4129_v45 = vrot.slane %v1633_v18, 9  ;;  %v1721_v56 = vsel %vm5566_vm2, %v1719_v60, %v1720_v55  ;;  %v2185_v5 = vshll.u32 %v2152_v32, 16  ;;  %v2189_v63 = vshrl.u32 %v2152_v32, 16  ;;  %v2157_v18 = vld [vmem:[#allocation2 + $0x24] sm:$0xf] }
 0x226   : > { %4440 = vmatprep.mubr.msk.bf16.mxu1 %vm1056_vm12, %v4113_v36  ;;  %v4138_v6 = vcombine.low %v1718_v59, %v1721_v56  ;;  %v2178_v7 = vrot.slane %v2176_v3, 4  ;;  %v2181_v8 = vrot.slane %v2179_v4, 5  ;;  %v2195_v10 = vshll.u32 %v2153_v0, 16  ;;  %v2159_v36 = vld [vmem:[#allocation2 + $0x2c] sm:$0x1] }
 0x227   : > { %v1711_v53 = vsel %vm5566_vm2, %v4129_v45, %v1710_v46  ;;  %v2187_v12 = vrot.slane %v2185_v5, 5  ;;  %v2191_v13 = vrot.slane %v2189_v63, 4  ;;  %v2200_v15 = vshrl.u32 %v2154_v1, 16  ;;  %v2161_v45 = vld [vmem:[#allocation2 + $0x34] sm:$0xf]  ;;  %v4734_v5 = vld [vmem:[#allocation2 + $0x18] sm:$0xff]  }
 0x228   : > { %v4137_v14 = vcombine.low %v1711_v53, %v1714_v35  ;;  %v2203_v16 = vshll.u32 %v2154_v1, 16  ;;  %v2182_v19 = vor.u32 %v2181_v8, %v2178_v7  ;;  %v2197_v61 = vrot.slane %v2195_v10, 5  ;;  %v2162_v0 = vld [vmem:[#allocation2 + $0x38] sm:$0x1]  ;;  %v2163_v35 = vld [vmem:[#allocation2 + $0x3c] sm:$0xf] }
 0x229   : > { %v2209_v20 = vshll.u32 %v2155_v51, 16  ;;  %v2213_v22 = vshrl.u32 %v2155_v51, 16  ;;  %v2192_v25 = vor.u32 %v2191_v13, %v2187_v12  ;;  %v2202_v26 = vrot.slane %v2200_v15, 4  ;;  %v2164_v56 = vld [vmem:[#allocation2 + $0x40] sm:$0xf]  ;;  %v4735_v8 = vld [vmem:[#allocation2 + $0x24] sm:$0xff]  }
 0x22a   : > { %v2205_v21 = vrot.slane %v2203_v16, 5  ;;  %v2219_v24 = vshll.u32 %v2156_v11, 16  ;;  %v2183_v27 = vrot.slane %v2182_v19, 4  ;;  %v2951_v31 = vsel %vm1081_vm11, %v2885_v49, 0  ;;  %v2165_v19 = vld [vmem:[#allocation2 + $0x44] sm:$0x1] }
 0x22b   : > { %v2211_v28 = vrot.slane %v2209_v20, 5  ;;  %v2215_v29 = vrot.slane %v2213_v22, 4  ;;  %v2193_v34 = vrot.slane %v2192_v25, 4  ;;  %v2224_v37 = vshrl.u32 %v2157_v18, 16  ;;  %v2166_v20 = vld [vmem:[#allocation2 + $0x48] sm:$0xf] }
 0x22c   : > { %v2206_v41 = vor.u32 %v2205_v21, %v2202_v26  ;;  %v2221_v30 = vrot.slane %v2219_v24, 5  ;;  %v2188_v38 = vsel %vm5541_vm1, %v2183_v27, %v2187_v12  ;;  %v2227_v42 = vshll.u32 %v2157_v18, 16  ;;  %v2167_v21 = vld [vmem:[#allocation2 + $0x4c] sm:$0xf] }
 0x22d   : > { %4441 = vmatmul.mubr.msk.bf16.gmra.mrb[28].mxu1 %vm1056_vm12, %v4114_v57  ;;  %v2216_v39 = vor.u32 %v2215_v29, %v2211_v28  ;;  %v2233_v43 = vshll.u32 %v2158_v23, 16  ;;  %v2198_v46 = vsel %vm5541_vm1, %v2193_v34, %v2197_v61  ;;  %v2226_v57 = vrot.slane %v2224_v37, 4 }
 0x22e   : > { %4458 = vmatprep.mubr.msk.bf16.mxu1 %vm1056_vm12, %v4137_v14  ;;  %v2207_v32 = vrot.slane %v2206_v41, 4  ;;  %v2237_v47 = vshrl.u32 %v2158_v23, 16  ;;  %v4163_v50 = vcombine.low %v2188_v38, %v2198_v46  ;;  %v2229_v49 = vrot.slane %v2227_v42, 5  ;;  %v2168_v41 = vld [vmem:[#allocation2 + $0x50] sm:$0x1] }
 0x22f   : > { %v2217_v48 = vrot.slane %v2216_v39, 4  ;;  %v2235_v52 = vrot.slane %v2233_v43, 5  ;;  %v2243_v55 = vshll.u32 %v2159_v36, 16  ;;  %v2248_v58 = vshrl.u32 %v2160_v44, 16  ;;  %v2169_v42 = vld [vmem:[#allocation2 + $0x54] sm:$0xf] }
 0x230   : > { %v2212_v53 = vsel %vm5541_vm1, %v2207_v32, %v2211_v28  ;;  %v2239_v54 = vrot.slane %v2237_v47, 4  ;;  %4482 = vmatprep.mubr.msk.bf16.mxu0 %vm1056_vm12, %v4163_v50  ;;  %v2230_v60 = vor.u32 %v2229_v49, %v2226_v57  ;;  %v2251_v1 = vshll.u32 %v2160_v44, 16  ;;  %v2170_v46 = vld [vmem:[#allocation2 + $0x58] sm:$0xf]  ;;  %v4736_v32 = vld [vmem:[#allocation2 + $0x30] sm:$0xff]  }
 0x231   : > { %v2222_v59 = vsel %vm5541_vm1, %v2217_v48, %v2221_v30  ;;  %v2245_v51 = vrot.slane %v2243_v55, 5  ;;  %v2250_v14 = vrot.slane %v2248_v58, 4  ;;  %v2267_v11 = vshll.u32 %v2162_v0, 16  ;;  %v5691_v49 = vld [vmem:[#allocation10 + $0x1c] sm:$0xf] }
 0x232   : > { %v4164_v3 = vcombine.low %v2212_v53, %v2222_v59  ;;  %v2240_v4 = vor.u32 %v2239_v54, %v2235_v52  ;;  %v2231_v63 = vrot.slane %v2230_v60, 4  ;;  %v2272_v12 = vshrl.u32 %v2163_v35, 16  ;;  %v2171_v59 = vld [vmem:[#allocation2 + $0x5c] sm:$0x1] }
 0x233   : > { %v2275_v13 = vshll.u32 %v2163_v35, 16  ;;  %v2281_v61 = vshll.u32 %v2164_v56, 16  ;;  %v2269_v23 = vrot.slane %v2267_v11, 5  ;;  %v2291_v34 = vshll.u32 %v2165_v19, 16  ;;  %v2565_v35 = vld [vmem:[#allocation2 + $0xc] sm:$0xe] }
 0x234   : > { %4483 = vmatmul.mubr.msk.bf16.vlgmr.msra.gmra.mrb[32].mxu0 %vm1056_vm12, %v4164_v3  ;;  %v2241_v10 = vrot.slane %v2240_v4, 4  ;;  %v2236_v15 = vsel %vm5541_vm1, %v2231_v63, %v2235_v52  ;;  %v2274_v25 = vrot.slane %v2272_v12, 4  ;;  %v2296_v30 = vshrl.u32 %v2166_v20, 16  ;;  %v4737_v52 = vld [vmem:[#allocation2 + $0x3c] sm:$0xff]   ;;  %v2566_v3 = vld [vmem:[#allocation2 + $0x10] sm:$0xf] }
 0x235   : > { %4459 = vmatmul.mubr.msk.bf16.vlgmr.msra.gmra.mrb[32].mxu1 %vm1056_vm12, %v4138_v6  ;;  %v2253_v6 = vrot.slane %v2251_v1, 5  ;;  %4517 = vmatpush3.bf16.msra.mxu0 %v2951_v31  ;;  %v2277_v26 = vrot.slane %v2275_v13, 5  ;;  %v2283_v29 = vrot.slane %v2281_v61, 5  ;;  %v2299_v38 = vshll.u32 %v2166_v20, 16  ;;  %v2172_v13 = vld [vmem:[#allocation2 + $0x60] sm:$0xf] }
 0x236   : > { %4463 = vmatpush3.bf16.msra.mxu1 %v2004_v62  ;;  %4464 = vmatprep.mubr.msk.bf16.mxu1 %vm1056_vm12, %v4733_v33  ;;  %v2257_v62 = vshll.u32 %v2161_v45, 16  ;;  %v2246_v22 = vsel %vm5541_vm1, %v2241_v10, %v2245_v51  ;;  %v2285_v33 = vshrl.u32 %v2164_v56, 16  ;;  %v2305_v39 = vshll.u32 %v2167_v21, 16  ;;  %v2173_v61 = vld [vmem:[#allocation2 + $0x64] sm:$0xf] }
 0x237   : > { %4579 = vmatprep.subr.msk.bf16.mxu1 %vm1081_vm11, %v5638_v40  ;;  %v2261_v40 = vshrl.u32 %v2161_v45, 16  ;;  %v2254_v16 = vor.u32 %v2253_v6, %v2250_v14  ;;  %v4165_v24 = vcombine.low %v2236_v15, %v2246_v22  ;;  %v2278_v31 = vor.u32 %v2277_v26, %v2274_v25  ;;  %v2174_v20 = vld [vmem:[#allocation2 + $0x68] sm:$0x1] }
 0x238   : > { %v2259_v7 = vrot.slane %v2257_v62, 5  ;;  %v2287_v44 = vrot.slane %v2285_v33, 4  ;;  %v2293_v45 = vrot.slane %v2291_v34, 5  ;;  %v2301_v47 = vrot.slane %v2299_v38, 5  ;;  %v4738_v22 = vld [vmem:[#allocation2 + $0x48] sm:$0xff]  }
 0x239   : > { %v2263_v18 = vrot.slane %v2261_v40, 4  ;;  %v2255_v27 = vrot.slane %v2254_v16, 4  ;;  %4486 = vmatprep.mubr.msk.bf16.mxu0 %vm1056_vm12, %v4165_v24  ;;  %v2279_v43 = vrot.slane %v2278_v31, 4  ;;  %v2307_v50 = vrot.slane %v2305_v39, 5  ;;  %v4739_v24 = vld [vmem:[#allocation2 + $0x54] sm:$0xff]  }
 0x23a   : > { %v2309_v48 = vshrl.u32 %v2167_v21, 16  ;;  %v2288_v55 = vor.u32 %v2287_v44, %v2283_v29  ;;  %v2315_v58 = vshll.u32 %v2168_v41, 16  ;;  %v2320_v1 = vshrl.u32 %v2169_v42, 16  ;;  %v2568_v33 = vld [vmem:[#allocation2 + $0x18] sm:$0xe] }
 0x23b   : > { %v2264_v28 = vor.u32 %v2263_v18, %v2259_v7  ;;  %v2260_v36 = vsel %vm5541_vm1, %v2255_v27, %v2259_v7  ;;  %v2284_v54 = vsel %vm5541_vm1, %v2279_v43, %v2283_v29  ;;  %v2323_v62 = vshll.u32 %v2169_v42, 16  ;;  %v2569_v34 = vld [vmem:[#allocation2 + $0x1c] sm:$0xf]  ;;  %v5707_v38 = vld [vmem:[#allocation10 + $0x20] sm:$0xf] }
 0x23c   : > { %v2311_v0 = vrot.slane %v2309_v48, 4  ;;  %v2289_v4 = vrot.slane %v2288_v55, 4  ;;  %v2317_v51 = vrot.slane %v2315_v58, 5  ;;  %v2329_v14 = vshll.u32 %v2170_v46, 16  ;;  %4582 = vmatprep.subr.msk.bf16.mxu0 %vm1081_vm11, %v5707_v38  ;;  %v2574_v55 = vld [vmem:[#allocation2 + $0x30] sm:$0xe] }
 0x23d   : > { %4465 = vmatmul.mubr.msk.bf16.vlgmr.msra.gmra.mrb[36].mxu1 %vm1056_vm12, %v4734_v5  ;;  %v2265_v37 = vrot.slane %v2264_v28, 4  ;;  %v2333_v56 = vshrl.u32 %v2170_v46, 16  ;;  %v2567_v5 = vld [vmem:[#allocation2 + $0x14] sm:$0x1]  ;;  %v2322_v7 = vrot.slane %v2320_v1, 4  ;;  %v2325_v40 = vrot.slane %v2323_v62, 5 }
 0x23e   : > { %4499 = vmatpush3.bf16.msra.mxu1 %v5657_v2  ;;  %4468 = vmatprep.mubr.msk.bf16.mxu1 %vm1056_vm12, %v4735_v8  ;;  %v2298_v2 = vrot.slane %v2296_v30, 4  ;;  %v2312_v6 = vor.u32 %v2311_v0, %v2307_v50  ;;  %v2294_v8 = vsel %vm5541_vm1, %v2289_v4, %v2293_v45  ;;  %v2331_v10 = vrot.slane %v2329_v14, 5  ;;  %v2571_v45 = vld [vmem:[#allocation2 + $0x24] sm:$0xe]  ;;  %v2575_v0 = vld [vmem:[#allocation2 + $0x34] sm:$0xf] }
 0x23f   : > { %v2270_v57 = vsel %vm5541_vm1, %v2265_v37, %v2269_v23  ;;  %4581 = vmatprep.subr.msk.bf16.mxu1 %vm1081_vm11, %v5691_v49  ;;  %v2335_v11 = vrot.slane %v2333_v56, 4  ;;  %v2339_v12 = vshll.u32 %v2171_v59, 16  ;;  %v4167_v15 = vcombine.low %v2284_v54, %v2294_v8  ;;  %v2570_v37 = vld [vmem:[#allocation2 + $0x20] sm:$0x1]  ;;  %v2573_v54 = vld [vmem:[#allocation2 + $0x2c] sm:$0x1] }
 0x240   : > { %v4166_v53 = vcombine.low %v2260_v36, %v2270_v57  ;;  %v2302_v60 = vor.u32 %v2301_v47, %v2298_v2  ;;  %v2313_v18 = vrot.slane %v2312_v6, 4  ;;  %v2326_v19 = vor.u32 %v2325_v40, %v2322_v7  ;;  %v2572_v47 = vld [vmem:[#allocation2 + $0x28] sm:$0xf]  ;;  %v2576_v4 = vld [vmem:[#allocation2 + $0x38] sm:$0x1]  ;;  %v4740_v7 = vld [vmem:[#allocation2 + $0x60] sm:$0xff]  }
 0x241   : > { %v2336_v23 = vor.u32 %v2335_v11, %v2331_v10  ;;  %v2341_v25 = vrot.slane %v2339_v12, 5  ;;  %v4179_v26 = vrot.slane %v2565_v35, 9  ;;  %v2615_v21 = vrot.slane %v2566_v3, 5  ;;  %v2578_v6 = vld [vmem:[#allocation2 + $0x40] sm:$0xf] }
 0x242   : > { %4487 = vmatmul.mubr.msk.bf16.gmra.mrb[36].mxu0 %vm1056_vm12, %v4166_v53  ;;  %v2303_v63 = vrot.slane %v2302_v60, 4  ;;  %v2318_v27 = vsel %vm5541_vm1, %v2313_v18, %v2317_v51  ;;  %v2327_v28 = vrot.slane %v2326_v19, 4  ;;  %v2618_v29 = vrot.slane %v2567_v5, 5  ;;  %v2579_v12 = vld [vmem:[#allocation2 + $0x44] sm:$0x1] }
 0x243   : > { %4490 = vmatprep.mubr.msk.bf16.mxu0 %vm1056_vm12, %v4167_v15  ;;  %v2344_v31 = vshrl.u32 %v2172_v13, 16  ;;  %v2337_v30 = vrot.slane %v2336_v23, 4  ;;  %v2617_v36 = vrot.slane %v2615_v21, 4  ;;  %v2347_v43 = vshll.u32 %v2172_v13, 16  ;;  %v2580_v13 = vld [vmem:[#allocation2 + $0x48] sm:$0xe] }
 0x244   : > { %v2308_v16 = vsel %vm5541_vm1, %v2303_v63, %v2307_v50  ;;  %v2332_v39 = vsel %vm5541_vm1, %v2327_v28, %v2331_v10  ;;  %v2353_v44 = vshll.u32 %v2173_v61, 16  ;;  %v2616_v46 = vsel %vm5566_vm2, %v4179_v26, %v2615_v21  ;;  %v2577_v63 = vld [vmem:[#allocation2 + $0x3c] sm:$0xe]  ;;  %v2581_v15 = vld [vmem:[#allocation2 + $0x4c] sm:$0xf] }
 0x245   : > { %4469 = vmatmul.mubr.msk.bf16.gmra.mrb[40].mxu1 %vm1056_vm12, %v4736_v32  ;;  %v4168_v41 = vcombine.low %v2308_v16, %v2318_v27  ;;  %v2346_v42 = vrot.slane %v2344_v31, 4  ;;  %v2342_v2 = vsel %vm5541_vm1, %v2337_v30, %v2341_v25  ;;  %v2357_v32 = vshrl.u32 %v2173_v61, 16  ;;  %v2583_v26 = vld [vmem:[#allocation2 + $0x54] sm:$0xe]  ;;  %v2584_v21 = vld [vmem:[#allocation2 + $0x58] sm:$0xf] }
 0x246   : > { %4472 = vmatprep.mubr.msk.bf16.mxu1 %vm1056_vm12, %v4737_v52  ;;  %v2363_v57 = vshll.u32 %v2174_v20, 16  ;;  %v4169_v50 = vcombine.low %v2332_v39, %v2342_v2  ;;  %v2619_v48 = vsel %vm5566_vm2, %v2617_v36, %v2618_v29  ;;  %v2349_v52 = vrot.slane %v2347_v43, 5  ;;  %v2582_v20 = vld [vmem:[#allocation2 + $0x50] sm:$0x1]  ;;  %v4741_v29 = vld [vmem:[#allocation2 + $0x18] sm:$0xff]  }
 0x247   : > { %v2355_v53 = vrot.slane %v2353_v44, 5  ;;  %v2359_v58 = vrot.slane %v2357_v32, 4  ;;  %v4180_v59 = vrot.slane %v2568_v33, 9  ;;  %v2622_v60 = vrot.slane %v2569_v34, 5  ;;  %v2585_v31 = vld [vmem:[#allocation2 + $0x5c] sm:$0x1] }
 0x248   : > { %v2350_v1 = vor.u32 %v2349_v52, %v2346_v42  ;;  %v2365_v62 = vrot.slane %v2363_v57, 5  ;;  %v2625_v35 = vrot.slane %v2570_v37, 5  ;;  %v4181_v3 = vrot.slane %v2571_v45, 9  ;;  %v2586_v33 = vld [vmem:[#allocation2 + $0x60] sm:$0xe] }
 0x249   : > { %v4187_v51 = vcombine.low %v2616_v46, %v2619_v48  ;;  %v2360_v14 = vor.u32 %v2359_v58, %v2355_v53  ;;  %v2624_v56 = vrot.slane %v2622_v60, 4  ;;  %v2629_v5 = vrot.slane %v2572_v47, 5  ;;  %v2587_v37 = vld [vmem:[#allocation2 + $0x64] sm:$0xf]  ;;  %v2588_v45 = vld [vmem:[#allocation2 + $0x68] sm:$0x1] }
 0x24a   : > { %4491 = vmatmul.mubr.msk.bf16.gmra.mrb[40].mxu0 %vm1056_vm12, %v4168_v41  ;;  %v2351_v40 = vrot.slane %v2350_v1, 4  ;;  %v5725_v8 = vsel %vm5566_vm2, %v4180_v59, %v2622_v60  ;;  %v4182_v10 = vrot.slane %v2574_v55, 9  ;;  %v2636_v11 = vrot.slane %v2575_v0, 5  ;;  %v3098_v52 = vld [vmem:[#allocation2 + $0x18] sm:$0xf]  ;;  %v4742_v0 = vld [vmem:[#allocation2 + $0x24] sm:$0xff]  }
 0x24b   : > { %4494 = vmatprep.mubr.msk.bf16.mxu0 %vm1056_vm12, %v4169_v50  ;;  %v2361_v16 = vrot.slane %v2360_v14, 4  ;;  %v2626_v18 = vsel %vm5566_vm2, %v2624_v56, %v2625_v35  ;;  %v5731_v19 = vsel %vm1081_vm11, %v5691_v49, 0  ;;  %v2632_v61 = vrot.slane %v2573_v54, 5  ;;  %v3099_v59 = vld [vmem:[#allocation2 + $0x1c] sm:$0xf] }
 0x24c   : > { %v2631_v23 = vrot.slane %v2629_v5, 4  ;;  %v2638_v25 = vrot.slane %v2636_v11, 4  ;;  %v4188_v27 = vcombine.low %v5725_v8, %v2626_v18  ;;  %v2630_v28 = vsel %vm5566_vm2, %v4181_v3, %v2629_v5  ;;  %v3100_v56 = vld [vmem:[#allocation2 + $0x20] sm:$0x1]  ;;  %v4743_v5 = vld [vmem:[#allocation2 + $0x30] sm:$0xff]  }
 0x24d   : > { %4473 = vmatmul.mubr.msk.bf16.gmra.mrb[44].mxu1 %vm1056_vm12, %v4738_v22  ;;  %v2356_v22 = vsel %vm5541_vm1, %v2351_v40, %v2355_v53  ;;  %v2639_v49 = vrot.slane %v2576_v4, 5  ;;  %v5743_v41 = vsel %vm5566_vm2, %v4182_v10, %v2636_v11  ;;  %v4183_v30 = vrot.slane %v2577_v63, 9  ;;  %v3101_v8 = vld [vmem:[#allocation2 + $0x24] sm:$0xf] }
 0x24e   : > { %4476 = vmatprep.mubr.msk.bf16.mxu1 %vm1056_vm12, %v4739_v24  ;;  %v2366_v24 = vsel %vm5541_vm1, %v2361_v16, %v2365_v62  ;;  %v2643_v36 = vrot.slane %v2578_v6, 5  ;;  %v3667_v39 = vsel %vm1081_vm11, %v5707_v38, 0  ;;  %v2646_v42 = vrot.slane %v2579_v12, 5  ;;  %v3103_v16 = vld [vmem:[#allocation2 + $0x2c] sm:$0x1] }
 0x24f   : > { %v4170_v34 = vcombine.low %v2356_v22, %v2366_v24  ;;  %v4184_v43 = vrot.slane %v2580_v13, 9  ;;  %v2650_v44 = vrot.slane %v2581_v15, 5  ;;  %v2633_v2 = vsel %vm5566_vm2, %v2631_v23, %v2632_v61  ;;  %v3102_v15 = vld [vmem:[#allocation2 + $0x28] sm:$0xf]  ;;  %v3104_v23 = vld [vmem:[#allocation2 + $0x30] sm:$0xf] }
 0x250   : > { %v5753_v46 = vsel %vm5566_vm2, %v2638_v25, %v2639_v49  ;;  %v2645_v32 = vrot.slane %v2643_v36, 4  ;;  %v2653_v57 = vrot.slane %v2582_v20, 5  ;;  %v5758_v38 = vsel %vm5566_vm2, %v4183_v30, %v2643_v36 }
 0x251   : > { %v2652_v47 = vrot.slane %v2650_v44, 4  ;;  %v4185_v50 = vrot.slane %v2583_v26, 9  ;;  %v2657_v48 = vrot.slane %v2584_v21, 5  ;;  %v2660_v54 = vrot.slane %v2585_v31, 5 }
 0x252   : > { %4495 = vmatmul.mubr.msk.bf16.gmra.mrb[44].mxu0 %vm1056_vm12, %v4170_v34  ;;  %v5762_v53 = vsel %vm5566_vm2, %v2645_v32, %v2646_v42  ;;  %v4186_v55 = vrot.slane %v2586_v33, 9  ;;  %v2664_v58 = vrot.slane %v2587_v37, 5  ;;  %v4189_v60 = vcombine.low %v2630_v28, %v2633_v2  ;;  %v3105_v34 = vld [vmem:[#allocation2 + $0x34] sm:$0xf] }
 0x253   : > { %4518 = vmatprep.mubr.msk.bf16.mxu0 %vm1056_vm12, %v4741_v29  ;;  %v5766_v1 = vsel %vm5566_vm2, %v4184_v43, %v2650_v44  ;;  %v5770_v62 = vsel %vm5566_vm2, %v2652_v47, %v2653_v57  ;;  %v2659_v35 = vrot.slane %v2657_v48, 4  ;;  %v4190_v3 = vcombine.low %v5743_v41, %v5753_v46  ;;  %v3106_v43 = vld [vmem:[#allocation2 + $0x38] sm:$0x1]  ;;  %v4744_v44 = vld [vmem:[#allocation2 + $0x3c] sm:$0xff]   ;;  %v4745_v57 = vld [vmem:[#allocation2 + $0x48] sm:$0xff]  }
 0x254   : > { %v4191_v4 = vcombine.low %v5758_v38, %v5762_v53  ;;  %v2667_v14 = vrot.slane %v2588_v45, 5  ;;  %v5778_v63 = vsel %vm5566_vm2, %v4185_v50, %v2657_v48  ;;  %v3123_v6 = vshrl.u32 %v3098_v52, 16  ;;  %v3512_v48 = vld [vmem:[#allocation2 + $0x18] sm:$0xe] }
 0x255   : > { %4477 = vmatmul.mubr.msk.bf16.gmra.mrb[48].mxu1 %vm1056_vm12, %v4740_v7  ;;  %v3126_v7 = vshll.u32 %v3098_v52, 16  ;;  %v3132_v40 = vshll.u32 %v3099_v59, 16  ;;  %v4192_v10 = vcombine.low %v5766_v1, %v5770_v62  ;;  %v5785_v11 = vsel %vm5566_vm2, %v2659_v35, %v2660_v54 }
 0x256   : > { %4500 = vmatprep.mubr.msk.bf16.mxu1 %vm1056_vm12, %v4187_v51  ;;  %v2666_v51 = vrot.slane %v2664_v58, 4  ;;  %v5789_v12 = vsel %vm5566_vm2, %v4186_v55, %v2664_v58  ;;  %v3136_v13 = vshrl.u32 %v3099_v59, 16  ;;  %v3125_v18 = vrot.slane %v3123_v6, 4  ;;  %v3513_v58 = vld [vmem:[#allocation2 + $0x1c] sm:$0xf] }
 0x257   : > { %v3128_v61 = vrot.slane %v3126_v7, 5  ;;  %v5793_v20 = vrot.slane %v3132_v40, 5  ;;  %v3142_v22 = vshll.u32 %v3100_v56, 16  ;;  %v3147_v21 = vshrl.u32 %v3101_v8, 16 }
 0x258   : > { %v5798_v25 = vsel %vm5566_vm2, %v2666_v51, %v2667_v14  ;;  %v3138_v26 = vrot.slane %v3136_v13, 4  ;;  %v3150_v24 = vshll.u32 %v3101_v8, 16  ;;  %v3160_v28 = vshrl.u32 %v3102_v15, 16  ;;  %v3107_v51 = vld [vmem:[#allocation2 + $0x3c] sm:$0xf] }
 0x259   : > { %v3166_v29 = vshll.u32 %v3103_v16, 16  ;;  %v3149_v31 = vrot.slane %v3147_v21, 4  ;;  %v3171_v41 = vshrl.u32 %v3104_v23, 16  ;;  %v3144_v36 = vrot.slane %v3142_v22, 5  ;;  %v4746_v21 = vld [vmem:[#allocation2 + $0x54] sm:$0xff]  }
 0x25a   : > { %4519 = vmatmul.mubr.msk.bf16.vlgmr.msra.gmra.mrb[48].mxu0 %vm1056_vm12, %v4742_v0  ;;  %v3139_v49 = vor.u32 %v3138_v26, %v5793_v20  ;;  %v3152_v33 = vrot.slane %v3150_v24, 5  ;;  %v3162_v42 = vrot.slane %v3160_v28, 4  ;;  %v3174_v46 = vshll.u32 %v3104_v23, 16  ;;  %v3515_v26 = vld [vmem:[#allocation2 + $0x24] sm:$0xe] }
 0x25b   : > { %4553 = vmatpush3.bf16.msra.mxu0 %v3667_v39  ;;  %4522 = vmatprep.mubr.msk.bf16.mxu0 %vm1056_vm12, %v4743_v5  ;;  %v3173_v2 = vrot.slane %v3171_v41, 4  ;;  %v4193_v32 = vcombine.low %v5778_v63, %v5785_v11  ;;  %v3180_v47 = vshll.u32 %v3105_v34, 16  ;;  %v3184_v50 = vshrl.u32 %v3105_v34, 16  ;;  %v3514_v5 = vld [vmem:[#allocation2 + $0x20] sm:$0x1] }
 0x25c   : > { %v3140_v45 = vrot.slane %v3139_v49, 4  ;;  %v3153_v39 = vor.u32 %v3152_v33, %v3149_v31  ;;  %v3168_v53 = vrot.slane %v3166_v29, 5  ;;  %v3176_v54 = vrot.slane %v3174_v46, 5  ;;  %v3108_v63 = vld [vmem:[#allocation2 + $0x40] sm:$0xf] }
 0x25d   : > { %4501 = vmatmul.mubr.msk.bf16.vlgmr.msra.gmra.mrb[52].mxu1 %vm1056_vm12, %v4188_v27  ;;  %v3156_v27 = vshll.u32 %v3102_v15, 16  ;;  %v3190_v55 = vshll.u32 %v3106_v43, 16  ;;  %v4194_v59 = vcombine.low %v5789_v12, %v5798_v25  ;;  %v5808_v0 = vrot.slane %v3180_v47, 5  ;;  %v3109_v15 = vld [vmem:[#allocation2 + $0x44] sm:$0x1] }
 0x25e   : > { %4535 = vmatpush3.bf16.msra.mxu1 %v5731_v19  ;;  %4504 = vmatprep.mubr.msk.bf16.mxu1 %vm1056_vm12, %v4189_v60  ;;  %v3129_v19 = vor.u32 %v3128_v61, %v3125_v18  ;;  %v3154_v52 = vrot.slane %v3153_v39, 4  ;;  %v3186_v35 = vrot.slane %v3184_v50, 4  ;;  %v3145_v14 = vsel %vm5541_vm1, %v3140_v45, %v3144_v36  ;;  %v3516_v29 = vld [vmem:[#allocation2 + $0x28] sm:$0xf]  ;;  %v4747_v49 = vld [vmem:[#allocation2 + $0x60] sm:$0xff]  }
 0x25f   : > { %v3158_v37 = vrot.slane %v3156_v27, 5  ;;  %v3177_v56 = vor.u32 %v3176_v54, %v3173_v2  ;;  %v3192_v7 = vrot.slane %v3190_v55, 5  ;;  %v4235_v40 = vrot.slane %v3512_v48, 9  ;;  %v3111_v45 = vld [vmem:[#allocation2 + $0x4c] sm:$0xf] }
 0x260   : > { %v3130_v30 = vrot.slane %v3129_v19, 4  ;;  %v3187_v6 = vor.u32 %v3186_v35, %v5808_v0  ;;  %v3562_v8 = vrot.slane %v3513_v58, 5  ;;  %v3195_v16 = vshrl.u32 %v3107_v51, 16  ;;  %v3518_v50 = vld [vmem:[#allocation2 + $0x30] sm:$0xe] }
 0x261   : > { %v3163_v38 = vor.u32 %v3162_v42, %v3158_v37  ;;  %v3178_v13 = vrot.slane %v3177_v56, 4  ;;  %v3198_v18 = vshll.u32 %v3107_v51, 16  ;;  %v3565_v22 = vrot.slane %v3514_v5, 5  ;;  %v3519_v54 = vld [vmem:[#allocation2 + $0x34] sm:$0xf]  ;;  %v4748_v5 = vld [vmem:[#allocation2 + $0x6c] sm:$0xff]  }
 0x262   : > { %4523 = vmatmul.mubr.msk.bf16.gmra.mrb[52].mxu0 %vm1056_vm12, %v4744_v44  ;;  %v3188_v61 = vrot.slane %v3187_v6, 4  ;;  %v3204_v23 = vshll.u32 %v3108_v63, 16  ;;  %v3197_v19 = vrot.slane %v3195_v16, 4  ;;  %v3208_v28 = vshrl.u32 %v3108_v63, 16  ;;  %v3517_v44 = vld [vmem:[#allocation2 + $0x2c] sm:$0x1] }
 0x263   : > { %v3164_v60 = vrot.slane %v3163_v38, 4  ;;  %4526 = vmatprep.mubr.msk.bf16.mxu0 %vm1056_vm12, %v4745_v57  ;;  %v3200_v27 = vrot.slane %v3198_v18, 5  ;;  %v5826_v33 = vsel %vm5566_vm2, %v4235_v40, %v3562_v8  ;;  %v3214_v41 = vshll.u32 %v3109_v15, 16  ;;  %v3520_v35 = vld [vmem:[#allocation2 + $0x38] sm:$0x1] }
 0x264   : > { %v5828_v34 = vrot.slane %v3204_v23, 5  ;;  %v3183_v36 = vsel %vm5541_vm1, %v3178_v13, %v5808_v0  ;;  %v3210_v43 = vrot.slane %v3208_v28, 4  ;;  %v4236_v1 = vrot.slane %v3515_v26, 9  ;;  %v3113_v56 = vld [vmem:[#allocation2 + $0x54] sm:$0xf] }
 0x265   : > { %4505 = vmatmul.mubr.msk.bf16.gmra.mrb[56].mxu1 %vm1056_vm12, %v4190_v3  ;;  %v3135_v3 = vsel %vm5541_vm1, %v3130_v30, %v5793_v20  ;;  %v3169_v11 = vsel %vm5541_vm1, %v3164_v60, %v3168_v53  ;;  %v3564_v20 = vrot.slane %v3562_v8, 4  ;;  %v3110_v30 = vld [vmem:[#allocation2 + $0x48] sm:$0xf]  ;;  %v3201_v42 = vor.u32 %v3200_v27, %v3197_v19  ;;  %v3114_v8 = vld [vmem:[#allocation2 + $0x58] sm:$0xf] }
 0x266   : > { %4508 = vmatprep.mubr.msk.bf16.mxu1 %vm1056_vm12, %v4191_v4  ;;  %v3159_v4 = vsel %vm5541_vm1, %v3154_v52, %v3158_v37  ;;  %v4219_v24 = vcombine.low %v3135_v3, %v3145_v14  ;;  %v3193_v37 = vsel %vm5541_vm1, %v3188_v61, %v3192_v7  ;;  %v3216_v2 = vrot.slane %v3214_v41, 5  ;;  %v3521_v28 = vld [vmem:[#allocation2 + $0x3c] sm:$0xe] }
 0x267   : > { %v5822_v31 = vcombine.low %v3159_v4, %v3169_v11  ;;  %v3566_v39 = vsel %vm5566_vm2, %v3564_v20, %v3565_v22  ;;  %v3569_v62 = vrot.slane %v3516_v29, 5  ;;  %v3202_v46 = vrot.slane %v3201_v42, 4  ;;  %v3115_v20 = vld [vmem:[#allocation2 + $0x5c] sm:$0x1] }
 0x268   : > { %v3211_v57 = vor.u32 %v3210_v43, %v5828_v34  ;;  %v3219_v38 = vshrl.u32 %v3110_v30, 16  ;;  %v3222_v47 = vshll.u32 %v3110_v30, 16  ;;  %v3572_v52 = vrot.slane %v3517_v44, 5  ;;  %v3116_v30 = vld [vmem:[#allocation2 + $0x60] sm:$0xf] }
 0x269   : > { %v3571_v48 = vrot.slane %v3569_v62, 4  ;;  %v3232_v53 = vshrl.u32 %v3111_v45, 16  ;;  %v5845_v55 = vcombine.low %v3183_v36, %v3193_v37  ;;  %v4243_v51 = vcombine.low %v5826_v33, %v3566_v39  ;;  %v3523_v44 = vld [vmem:[#allocation2 + $0x44] sm:$0x1] }
 0x26a   : > { %4527 = vmatmul.mubr.msk.bf16.gmra.mrb[56].mxu0 %vm1056_vm12, %v4746_v21  ;;  %v3212_v58 = vrot.slane %v3211_v57, 4  ;;  %v3221_v60 = vrot.slane %v3219_v38, 4  ;;  %v3224_v0 = vrot.slane %v3222_v47, 5  ;;  %v3207_v63 = vsel %vm5541_vm1, %v3202_v46, %v5828_v34 }
 0x26b   : > { %4530 = vmatprep.mubr.msk.bf16.mxu0 %vm1056_vm12, %v4747_v49  ;;  %v3234_v14 = vrot.slane %v3232_v53, 4  ;;  %v5853_v6 = vsel %vm5566_vm2, %v4236_v1, %v3569_v62  ;;  %v4237_v40 = vrot.slane %v3518_v50, 9  ;;  %v3573_v13 = vsel %vm5566_vm2, %v3571_v48, %v3572_v52  ;;  %v3522_v49 = vld [vmem:[#allocation2 + $0x40] sm:$0xf]  ;;  %v3524_v50 = vld [vmem:[#allocation2 + $0x48] sm:$0xe] }
 0x26c   : > { %v3225_v7 = vor.u32 %v3224_v0, %v3221_v60  ;;  %v3217_v11 = vsel %vm5541_vm1, %v3212_v58, %v3216_v2  ;;  %v3576_v16 = vrot.slane %v3519_v54, 5  ;;  %v3579_v61 = vrot.slane %v3520_v35, 5  ;;  %v3525_v54 = vld [vmem:[#allocation2 + $0x4c] sm:$0xf] }
 0x26d   : > { %4509 = vmatmul.mubr.msk.bf16.gmra.mrb[60].mxu1 %vm1056_vm12, %v4192_v10  ;;  %v3112_v10 = vld [vmem:[#allocation2 + $0x50] sm:$0x1]  ;;  %v3243_v22 = vshrl.u32 %v3113_v56, 16  ;;  %v3246_v23 = vshll.u32 %v3113_v56, 16  ;;  %v3252_v27 = vshll.u32 %v3114_v8, 16  ;;  %v5868_v33 = vcombine.low %v3207_v63, %v3217_v11 }
 0x26e   : > { %4512 = vmatprep.mubr.msk.bf16.mxu1 %vm1056_vm12, %v4193_v32  ;;  %v3228_v32 = vshll.u32 %v3111_v45, 16  ;;  %v3238_v4 = vshll.u32 %v3112_v10, 16  ;;  %v3226_v18 = vrot.slane %v3225_v7, 4  ;;  %v3578_v19 = vrot.slane %v3576_v16, 4  ;;  %v3117_v45 = vld [vmem:[#allocation2 + $0x64] sm:$0xf] }
 0x26f   : > { %v3577_v29 = vsel %vm5566_vm2, %v4237_v40, %v3576_v16  ;;  %v3245_v12 = vrot.slane %v3243_v22, 4  ;;  %v3248_v25 = vrot.slane %v3246_v23, 5  ;;  %v5873_v41 = vrot.slane %v3252_v27, 5  ;;  %v3118_v10 = vld [vmem:[#allocation2 + $0x68] sm:$0x1] }
 0x270   : > { %v3230_v3 = vrot.slane %v3228_v32, 5  ;;  %v3240_v21 = vrot.slane %v3238_v4, 5  ;;  %v3580_v34 = vsel %vm5566_vm2, %v3578_v19, %v3579_v61  ;;  %v3262_v43 = vshll.u32 %v3115_v20, 16  ;;  %v3120_v40 = vld [vmem:[#allocation2 + $0x70] sm:$0xf] }
 0x271   : > { %v3249_v37 = vor.u32 %v3248_v25, %v3245_v12  ;;  %v4245_v2 = vcombine.low %v3577_v29, %v3580_v34  ;;  %v4238_v1 = vrot.slane %v3521_v28, 9  ;;  %v3583_v62 = vrot.slane %v3522_v49, 5  ;;  %v3527_v22 = vld [vmem:[#allocation2 + $0x54] sm:$0xe]  ;;  %v3528_v27 = vld [vmem:[#allocation2 + $0x58] sm:$0xf] }
 0x272   : > { %v3235_v15 = vor.u32 %v3234_v14, %v3230_v3  ;;  %4531 = vmatmul.mubr.msk.bf16.gmra.mrb[60].mxu0 %vm1056_vm12, %v4748_v5  ;;  %v3231_v36 = vsel %vm5541_vm1, %v3226_v18, %v3230_v3  ;;  %v3267_v38 = vshrl.u32 %v3116_v30, 16  ;;  %v3270_v47 = vshll.u32 %v3116_v30, 16  ;;  %v3119_v5 = vld [vmem:[#allocation2 + $0x6c] sm:$0xf]  ;;  %v3530_v30 = vld [vmem:[#allocation2 + $0x60] sm:$0xe] }
 0x273   : > { %4554 = vmatprep.mubr.msk.bf16.mxu0 %vm1056_vm12, %v4243_v51  ;;  %v5879_v46 = vrot.slane %v3249_v37, 4  ;;  %v3585_v48 = vrot.slane %v3583_v62, 4  ;;  %v3586_v52 = vrot.slane %v3523_v44, 5  ;;  %v3276_v32 = vshll.u32 %v3117_v45, 16  ;;  %v3526_v51 = vld [vmem:[#allocation2 + $0x50] sm:$0x1] }
 0x274   : > { %v3236_v26 = vrot.slane %v3235_v15, 4  ;;  %v3280_v53 = vshrl.u32 %v3117_v45, 16  ;;  %v3264_v60 = vrot.slane %v3262_v43, 5  ;;  %v3269_v0 = vrot.slane %v3267_v38, 4  ;;  %v3121_v15 = vld [vmem:[#allocation2 + $0x74] sm:$0x1] }
 0x275   : > { %4513 = vmatmul.mubr.msk.bf16.gmra.mrb[64].mxu1 %vm1056_vm12, %v4194_v59  ;;  %v3256_v59 = vshrl.u32 %v3114_v8, 16  ;;  %v3272_v35 = vrot.slane %v3270_v47, 5  ;;  %v3584_v3 = vsel %vm5566_vm2, %v4238_v1, %v3583_v62  ;;  %v3278_v14 = vrot.slane %v3276_v32, 5  ;;  %v3532_v45 = vld [vmem:[#allocation2 + $0x68] sm:$0x1] }
 0x276   : > { %4536 = vmatprep.mubr.msk.bf16.mxu1 %vm1056_vm12, %v4219_v24  ;;  %v4244_v24 = vcombine.low %v5853_v6, %v3573_v13  ;;  %v3241_v39 = vsel %vm5541_vm1, %v3236_v26, %v3240_v21  ;;  %v3282_v4 = vrot.slane %v3280_v53, 4  ;;  %v3286_v56 = vshll.u32 %v3118_v10, 16  ;;  %v3534_v38 = vld [vmem:[#allocation2 + $0x70] sm:$0xf] }
 0x277   : > { %v3258_v42 = vrot.slane %v3256_v59, 4  ;;  %v4223_v58 = vcombine.low %v3231_v36, %v3241_v39  ;;  %v3273_v6 = vor.u32 %v3272_v35, %v3269_v0  ;;  %v4239_v7 = vrot.slane %v3524_v50, 9  ;;  %v3529_v59 = vld [vmem:[#allocation2 + $0x5c] sm:$0x1]  ;;  %v3531_v36 = vld [vmem:[#allocation2 + $0x64] sm:$0xf] }
 0x278   : > { %v3283_v8 = vor.u32 %v3282_v4, %v3278_v14  ;;  %v3288_v11 = vrot.slane %v3286_v56, 5  ;;  %v3590_v13 = vrot.slane %v3525_v54, 5  ;;  %v3593_v18 = vrot.slane %v3526_v51, 5 }
 0x279   : > { %v3259_v57 = vor.u32 %v3258_v42, %v5873_v41  ;;  %v3274_v16 = vrot.slane %v3273_v6, 4  ;;  %v3291_v61 = vshrl.u32 %v3119_v5, 16  ;;  %v3294_v20 = vshll.u32 %v3119_v5, 16 }
 0x27a   : > { %4555 = vmatmul.mubr.msk.bf16.vlgmr.msra.gmra.mrb[64].mxu0 %vm1056_vm12, %v4244_v24  ;;  %v3284_v23 = vrot.slane %v3283_v8, 4  ;;  %v3591_v26 = vsel %vm5566_vm2, %v4239_v7, %v3590_v13  ;;  %v3592_v21 = vrot.slane %v3590_v13, 4  ;;  %v3300_v19 = vshll.u32 %v3120_v40, 16 }
 0x27b   : > { %v3260_v63 = vrot.slane %v3259_v57, 4  ;;  %4558 = vmatprep.mubr.msk.bf16.mxu0 %vm1056_vm12, %v4245_v2  ;;  %v3293_v29 = vrot.slane %v3291_v61, 4  ;;  %v3296_v12 = vrot.slane %v3294_v20, 5  ;;  %v3304_v25 = vshrl.u32 %v3120_v40, 16 }
 0x27c   : > { %v3279_v24 = vsel %vm5541_vm1, %v3274_v16, %v3278_v14  ;;  %v3594_v34 = vsel %vm5566_vm2, %v3592_v21, %v3593_v18  ;;  %v3289_v37 = vsel %vm5541_vm1, %v3284_v23, %v3288_v11  ;;  %v3310_v44 = vshll.u32 %v3121_v15, 16 }
 0x27d   : > { %4537 = vmatmul.mubr.msk.bf16.vlgmr.msra.gmra.mrb[68].mxu1 %vm1056_vm12, %v5822_v31  ;;  %v3255_v31 = vsel %vm5541_vm1, %v5879_v46, %v5873_v41  ;;  %v3265_v49 = vsel %vm5541_vm1, %v3260_v63, %v3264_v60  ;;  %v3302_v41 = vrot.slane %v3300_v19, 5  ;;  %v4247_v42 = vcombine.low %v3591_v26, %v3594_v34  ;;  %v3535_v60 = vld [vmem:[#allocation2 + $0x74] sm:$0x1] }
 0x27e   : > { %4540 = vmatprep.mubr.msk.bf16.mxu1 %vm1056_vm12, %v5845_v55  ;;  %v3587_v55 = vsel %vm5566_vm2, %v3585_v48, %v3586_v52  ;;  %v3306_v43 = vrot.slane %v3304_v25, 4  ;;  %v3297_v39 = vor.u32 %v3296_v12, %v3293_v29  ;;  %v4240_v2 = vrot.slane %v3527_v22, 9 }
 0x27f   : > { %v4246_v28 = vcombine.low %v3584_v3, %v3587_v55  ;;  %v3597_v1 = vrot.slane %v3528_v27, 5  ;;  %v3600_v62 = vrot.slane %v3529_v59, 5  ;;  %v4241_v46 = vrot.slane %v3530_v30, 9 }
 0x280   : > { %v3307_v10 = vor.u32 %v3306_v43, %v3302_v41  ;;  %v3604_v57 = vrot.slane %v3531_v36, 5  ;;  %v3607_v48 = vrot.slane %v3532_v45, 5  ;;  %v4225_v52 = vcombine.low %v3279_v24, %v3289_v37 }
 0x281   : > { %v3598_v47 = vsel %vm5566_vm2, %v4240_v2, %v3597_v1  ;;  %v3599_v50 = vrot.slane %v3597_v1, 4  ;;  %v3312_v32 = vrot.slane %v3310_v44, 5  ;;  %v3298_v0 = vrot.slane %v3297_v39, 4 }
 0x282   : > { %4559 = vmatmul.mubr.msk.bf16.gmra.mrb[68].mxu0 %vm1056_vm12, %v4246_v28  ;;  %v3605_v53 = vsel %vm5566_vm2, %v4241_v46, %v3604_v57  ;;  %v3606_v54 = vrot.slane %v3604_v57, 4  ;;  %v3308_v35 = vrot.slane %v3307_v10, 4  ;;  %v3611_v3 = vrot.slane %v3534_v38, 5 }
 0x283   : > { %4562 = vmatprep.mubr.msk.bf16.mxu0 %vm1056_vm12, %v4247_v42  ;;  %v3601_v51 = vsel %vm5566_vm2, %v3599_v50, %v3600_v62  ;;  %v3614_v63 = vrot.slane %v3535_v60, 5  ;;  %v3303_v6 = vsel %vm5541_vm1, %v3298_v0, %v3302_v41 }
 0x284   : > { %v4248_v14 = vcombine.low %v3598_v47, %v3601_v51  ;;  %v3608_v4 = vsel %vm5566_vm2, %v3606_v54, %v3607_v48  ;;  %v3313_v7 = vsel %vm5541_vm1, %v3308_v35, %v3312_v32 }
 0x285   : > { %4541 = vmatmul.mubr.msk.bf16.gmra.mrb[72].mxu1 %vm1056_vm12, %v5868_v33  ;;  %v4224_v33 = vcombine.low %v3255_v31, %v3265_v49  ;;  %v4249_v56 = vcombine.low %v3605_v53, %v3608_v4  ;;  %v3613_v31 = vrot.slane %v3611_v3, 4  ;;  %v4226_v8 = vcombine.low %v3303_v6, %v3313_v7 }
 0x286   : > { %4544 = vmatprep.mubr.msk.bf16.mxu1 %vm1056_vm12, %v4223_v58  ;;  %v3533_v58 = vld [vmem:[#allocation2 + $0x6c] sm:$0xe] }
 0x287   : > { %v4242_v5 = vrot.slane %v3533_v58, 9  ;;  %v3615_v55 = vsel %vm5566_vm2, %v3613_v31, %v3614_v63 }
 0x289   : > { %v3612_v40 = vsel %vm5566_vm2, %v4242_v5, %v3611_v3 }
 0x28a   : > { %4563 = vmatmul.mubr.msk.bf16.gmra.mrb[72].mxu0 %vm1056_vm12, %v4248_v14  ;;  %v4250_v11 = vcombine.low %v3612_v40, %v3615_v55 }
 0x28b   : > { %4566 = vmatprep.mubr.msk.bf16.mxu0 %vm1056_vm12, %v4249_v56 }
 0x28d   : > { %4545 = vmatmul.mubr.msk.bf16.gmra.mrb[76].mxu1 %vm1056_vm12, %v4224_v33 }
 0x28e   : > { %4548 = vmatprep.mubr.msk.bf16.mxu1 %vm1056_vm12, %v4225_v52 }
 0x292   : > { %4567 = vmatmul.mubr.msk.bf16.gmra.mrb[76].mxu0 %vm1056_vm12, %v4250_v11 }
 0x295   : > { %4549 = vmatmul.mubr.msk.bf16.gmra.mrb[80].mxu1 %vm1056_vm12, %v4226_v8 }
 0x2c8   : > { %v4412_v13 = vpop.f32.mrb[0].mxu1 }
 0x2c9   : > { %1184 = vst.msk [vmem:[#allocation3 + $0x10] sm:$0xff] %vm1056_vm12, %v4412_v13  ;;  %v1119_v17 = vpop.f32.mrb[1].mxu1 }
 0x2ca   : > { %1182 = vst.msk [vmem:[#allocation3] sm:$0xff] %vm1056_vm12, %v1119_v17  ;;  %v4413_v15 = vpop.f32.mrb[2].mxu1 }
 0x2cb   : > { %1185 = vst.msk [vmem:[#allocation3 + $0x18] sm:$0xff] %vm1056_vm12, %v4413_v15  ;;  %v1122_v16 = vpop.f32.mrb[3].mxu1 }
 0x2cc   : > { %1183 = vst.msk [vmem:[#allocation3 + $0x8] sm:$0xff] %vm1056_vm12, %v1122_v16 }
 0x2d0   : > { %v4416_v9 = vpop.f32.mrb[4].mxu1  ;;  %v1569_v49 = vld [vmem:[#allocation3 + $0x10] sm:$0xff] }
 0x2d1   : > { %1188 = vst.msk [vmem:[#allocation3 + $0x30] sm:$0xff] %vm1056_vm12, %v4416_v9  ;;  %v1135_v18 = vpop.f32.mrb[5].mxu1  ;;  %v1567_v30 = vld [vmem:[#allocation3] sm:$0xff] }
 0x2d2   : > { %1186 = vst.msk [vmem:[#allocation3 + $0x20] sm:$0xff] %vm1056_vm12, %v1135_v18  ;;  %v4417_v61 = vpop.f32.mrb[6].mxu1  ;;  %v1570_v43 = vld [vmem:[#allocation3 + $0x18] sm:$0xff] }
 0x2d3   : > { %1189 = vst.msk [vmem:[#allocation3 + $0x38] sm:$0xff] %vm1056_vm12, %v4417_v61  ;;  %v1138_v20 = vpop.f32.mrb[7].mxu1  ;;  %v1568_v39 = vld [vmem:[#allocation3 + $0x8] sm:$0xff] }
 0x2d4   : > { %1187 = vst.msk [vmem:[#allocation3 + $0x28] sm:$0xff] %vm1056_vm12, %v1138_v20 }
 0x2d8   : > { %v4420_v22 = vpop.f32.mrb[8].mxu1  ;;  %v1573_v62 = vld [vmem:[#allocation3 + $0x30] sm:$0xff] }
 0x2d9   : > { %1192 = vst.msk [vmem:[#allocation3 + $0x50] sm:$0xff] %vm1056_vm12, %v4420_v22  ;;  %v1151_v23 = vpop.f32.mrb[9].mxu1  ;;  %v1571_v57 = vld [vmem:[#allocation3 + $0x20] sm:$0xff] }
 0x2da   : > { %1190 = vst.msk [vmem:[#allocation3 + $0x40] sm:$0xff] %vm1056_vm12, %v1151_v23  ;;  %v4421_v26 = vpop.f32.mrb[10].mxu1  ;;  %v1574_v47 = vld [vmem:[#allocation3 + $0x38] sm:$0xff] }
 0x2db   : > { %1193 = vst.msk [vmem:[#allocation3 + $0x58] sm:$0xff] %vm1056_vm12, %v4421_v26  ;;  %v1154_v21 = vpop.f32.mrb[11].mxu1  ;;  %v1572_v53 = vld [vmem:[#allocation3 + $0x28] sm:$0xff] }
 0x2dc   : > { %1191 = vst.msk [vmem:[#allocation3 + $0x48] sm:$0xff] %vm1056_vm12, %v1154_v21 }
 0x2df   : > { %v4448_v12 = vpop.f32.mrb[20].mxu0 }
 0x2e0   : > { %v4424_v19 = vpop.f32.mrb[12].mxu1  ;;  %v1809_v25 = vpop.f32.mrb[21].mxu0  ;;  %v1577_v63 = vld [vmem:[#allocation3 + $0x50] sm:$0xff] }
 0x2e1   : > { %1196 = vst.msk [vmem:[#allocation3 + $0x70] sm:$0xff] %vm1056_vm12, %v4424_v19  ;;  %v1167_v27 = vpop.f32.mrb[13].mxu1  ;;  %v4449_v24 = vpop.f32.mrb[22].mxu0  ;;  %v1575_v40 = vld [vmem:[#allocation3 + $0x40] sm:$0xff] }
 0x2e2   : > { %1194 = vst.msk [vmem:[#allocation3 + $0x60] sm:$0xff] %vm1056_vm12, %v1167_v27  ;;  %v4425_v28 = vpop.f32.mrb[14].mxu1  ;;  %v1812_v36 = vpop.f32.mrb[23].mxu0  ;;  %v1578_v11 = vld [vmem:[#allocation3 + $0x58] sm:$0xff] }
 0x2e3   : > { %1197 = vst.msk [vmem:[#allocation3 + $0x78] sm:$0xff] %vm1056_vm12, %v4425_v28  ;;  %v1170_v29 = vpop.f32.mrb[15].mxu1  ;;  %v1576_v9 = vld [vmem:[#allocation3 + $0x48] sm:$0xff] }
 0x2e4   : > { %1195 = vst.msk [vmem:[#allocation3 + $0x68] sm:$0xff] %vm1056_vm12, %v1170_v29 }
 0x2e8   : > { %v4430_v59 = vpop.f32.mrb[16].mxu1  ;;  %v1581_v28 = vld [vmem:[#allocation3 + $0x70] sm:$0xff] }
 0x2e9   : > { %v1585_v34 = vadd.f32 %v4430_v59, %v1569_v49  ;;  %v1504_v41 = vpop.f32.mrb[17].mxu1  ;;  %v1579_v59 = vld [vmem:[#allocation3 + $0x60] sm:$0xff] }
 0x2ea   : > { %v1583_v37 = vadd.f32 %v1567_v30, %v1504_v41  ;;  %v4431_v42 = vpop.f32.mrb[18].mxu1  ;;  %v1582_v41 = vld [vmem:[#allocation3 + $0x78] sm:$0xff] }
 0x2eb   : > { %1601 = vst.msk [vmem:[#allocation3 + $0x10] sm:$0xff] %vm1056_vm12, %v1585_v34  ;;  %v1586_v44 = vadd.f32 %v4431_v42, %v1570_v43  ;;  %v1507_v45 = vpop.f32.mrb[19].mxu1 }
 0x2ec   : > { %1599 = vst.msk [vmem:[#allocation3] sm:$0xff] %vm1056_vm12, %v1583_v37  ;;  %v1584_v2 = vadd.f32 %v1568_v39, %v1507_v45 }
 0x2ed   : > { %1602 = vst.msk [vmem:[#allocation3 + $0x18] sm:$0xff] %vm1056_vm12, %v1586_v44  ;;  %v1580_v44 = vld [vmem:[#allocation3 + $0x68] sm:$0xff] }
 0x2ee   : > { %1600 = vst.msk [vmem:[#allocation3 + $0x8] sm:$0xff] %vm1056_vm12, %v1584_v2 }
 0x2ef   : > { %v4452_v58 = vpop.f32.mrb[24].mxu0 }
 0x2f0   : > { %v4434_v1 = vpop.f32.mrb[20].mxu1  ;;  %v1825_v51 = vpop.f32.mrb[25].mxu0 }
 0x2f1   : > { %v1589_v10 = vadd.f32 %v4434_v1, %v1573_v62  ;;  %v1520_v46 = vpop.f32.mrb[21].mxu1  ;;  %v4453_v4 = vpop.f32.mrb[26].mxu0 }
 0x2f2   : > { %v1587_v38 = vadd.f32 %v1571_v57, %v1520_v46  ;;  %v4435_v33 = vpop.f32.mrb[22].mxu1  ;;  %v1874_v50 = vld [vmem:[#allocation3 + $0x10] sm:$0xff]  ;;  %v1828_v5 = vpop.f32.mrb[27].mxu0 }
 0x2f3   : > { %1605 = vst.msk [vmem:[#allocation3 + $0x30] sm:$0xff] %vm1056_vm12, %v1589_v10  ;;  %v1590_v48 = vadd.f32 %v4435_v33, %v1574_v47  ;;  %v1890_v52 = vadd.f32 %v4448_v12, %v1874_v50  ;;  %v1523_v32 = vpop.f32.mrb[23].mxu1  ;;  %v1872_v54 = vld [vmem:[#allocation3] sm:$0xff] }
 0x2f4   : > { %1603 = vst.msk [vmem:[#allocation3 + $0x20] sm:$0xff] %vm1056_vm12, %v1587_v38  ;;  %v1588_v60 = vadd.f32 %v1572_v53, %v1523_v32  ;;  %v1888_v0 = vadd.f32 %v1872_v54, %v1809_v25  ;;  %v1875_v35 = vld [vmem:[#allocation3 + $0x18] sm:$0xff] }
 0x2f5   : > { %1606 = vst.msk [vmem:[#allocation3 + $0x38] sm:$0xff] %vm1056_vm12, %v1590_v48  ;;  %1906 = vst.msk [vmem:[#allocation3 + $0x10] sm:$0xff] %vm1056_vm12, %v1890_v52  ;;  %v1891_v3 = vadd.f32 %v4449_v24, %v1875_v35  ;;  %v1873_v14 = vld [vmem:[#allocation3 + $0x8] sm:$0xff] }
 0x2f6   : > { %1604 = vst.msk [vmem:[#allocation3 + $0x28] sm:$0xff] %vm1056_vm12, %v1588_v60  ;;  %1904 = vst.msk [vmem:[#allocation3] sm:$0xff] %vm1056_vm12, %v1888_v0  ;;  %v1889_v56 = vadd.f32 %v1873_v14, %v1812_v36 }
 0x2f7   : > { %1907 = vst.msk [vmem:[#allocation3 + $0x18] sm:$0xff] %vm1056_vm12, %v1891_v3  ;;  %v4456_v19 = vpop.f32.mrb[28].mxu0 }
 0x2f8   : > { %1905 = vst.msk [vmem:[#allocation3 + $0x8] sm:$0xff] %vm1056_vm12, %v1889_v56  ;;  %v4438_v31 = vpop.f32.mrb[24].mxu1  ;;  %v1841_v29 = vpop.f32.mrb[29].mxu0 }
 0x2f9   : > { %v1593_v6 = vadd.f32 %v4438_v31, %v1577_v63  ;;  %v1536_v7 = vpop.f32.mrb[25].mxu1  ;;  %v4457_v49 = vpop.f32.mrb[30].mxu0 }
 0x2fa   : > { %v1591_v55 = vadd.f32 %v1575_v40, %v1536_v7  ;;  %v4439_v8 = vpop.f32.mrb[26].mxu1  ;;  %v1878_v13 = vld [vmem:[#allocation3 + $0x30] sm:$0xff]  ;;  %v1844_v36 = vpop.f32.mrb[31].mxu0 }
 0x2fb   : > { %1609 = vst.msk [vmem:[#allocation3 + $0x50] sm:$0xff] %vm1056_vm12, %v1593_v6  ;;  %v1594_v17 = vadd.f32 %v4439_v8, %v1578_v11  ;;  %v1894_v15 = vadd.f32 %v4452_v58, %v1878_v13  ;;  %v1539_v16 = vpop.f32.mrb[27].mxu1  ;;  %v1876_v18 = vld [vmem:[#allocation3 + $0x20] sm:$0xff] }
 0x2fc   : > { %1607 = vst.msk [vmem:[#allocation3 + $0x40] sm:$0xff] %vm1056_vm12, %v1591_v55  ;;  %v1592_v61 = vadd.f32 %v1576_v9, %v1539_v16  ;;  %v1892_v20 = vadd.f32 %v1876_v18, %v1825_v51  ;;  %v1879_v22 = vld [vmem:[#allocation3 + $0x38] sm:$0xff]  ;;  %v2105_v14 = vld [vmem:[#allocation3 + $0x10] sm:$0xff] }
 0x2fd   : > { %1610 = vst.msk [vmem:[#allocation3 + $0x58] sm:$0xff] %vm1056_vm12, %v1594_v17  ;;  %1910 = vst.msk [vmem:[#allocation3 + $0x30] sm:$0xff] %vm1056_vm12, %v1894_v15  ;;  %v1895_v23 = vadd.f32 %v4453_v4, %v1879_v22  ;;  %v1877_v26 = vld [vmem:[#allocation3 + $0x28] sm:$0xff]  ;;  %v2103_v31 = vld [vmem:[#allocation3] sm:$0xff] }
 0x2fe   : > { %1608 = vst.msk [vmem:[#allocation3 + $0x48] sm:$0xff] %vm1056_vm12, %v1592_v61  ;;  %1908 = vst.msk [vmem:[#allocation3 + $0x20] sm:$0xff] %vm1056_vm12, %v1892_v20  ;;  %v1893_v21 = vadd.f32 %v1877_v26, %v1828_v5  ;;  %v2106_v7 = vld [vmem:[#allocation3 + $0x18] sm:$0xff] }
 0x2ff   : > { %1911 = vst.msk [vmem:[#allocation3 + $0x38] sm:$0xff] %vm1056_vm12, %v1895_v23  ;;  %v2104_v8 = vld [vmem:[#allocation3 + $0x8] sm:$0xff] }
 0x300   : > { %1909 = vst.msk [vmem:[#allocation3 + $0x28] sm:$0xff] %vm1056_vm12, %v1893_v21  ;;  %v4442_v27 = vpop.f32.mrb[28].mxu1 }
 0x301   : > { %v1597_v12 = vadd.f32 %v4442_v27, %v1581_v28  ;;  %v1552_v25 = vpop.f32.mrb[29].mxu1 }
 0x302   : > { %v1595_v24 = vadd.f32 %v1579_v59, %v1552_v25  ;;  %v4443_v34 = vpop.f32.mrb[30].mxu1  ;;  %v1882_v30 = vld [vmem:[#allocation3 + $0x50] sm:$0xff] }
 0x303   : > { %1613 = vst.msk [vmem:[#allocation3 + $0x70] sm:$0xff] %vm1056_vm12, %v1597_v12  ;;  %v1598_v37 = vadd.f32 %v4443_v34, %v1582_v41  ;;  %v1898_v42 = vadd.f32 %v4456_v19, %v1882_v30  ;;  %v1555_v43 = vpop.f32.mrb[31].mxu1  ;;  %v1880_v45 = vld [vmem:[#allocation3 + $0x40] sm:$0xff] }
 0x304   : > { %1611 = vst.msk [vmem:[#allocation3 + $0x60] sm:$0xff] %vm1056_vm12, %v1595_v24  ;;  %v1596_v39 = vadd.f32 %v1580_v44, %v1555_v43  ;;  %v1896_v2 = vadd.f32 %v1880_v45, %v1841_v29  ;;  %v1883_v1 = vld [vmem:[#allocation3 + $0x58] sm:$0xff]  ;;  %v2109_v15 = vld [vmem:[#allocation3 + $0x30] sm:$0xff] }
 0x305   : > { %1614 = vst.msk [vmem:[#allocation3 + $0x78] sm:$0xff] %vm1056_vm12, %v1598_v37  ;;  %1914 = vst.msk [vmem:[#allocation3 + $0x50] sm:$0xff] %vm1056_vm12, %v1898_v42  ;;  %v1899_v62 = vadd.f32 %v4457_v49, %v1883_v1  ;;  %v1881_v10 = vld [vmem:[#allocation3 + $0x48] sm:$0xff]  ;;  %v2107_v61 = vld [vmem:[#allocation3 + $0x20] sm:$0xff] }
 0x306   : > { %1612 = vst.msk [vmem:[#allocation3 + $0x68] sm:$0xff] %vm1056_vm12, %v1596_v39  ;;  %1912 = vst.msk [vmem:[#allocation3 + $0x40] sm:$0xff] %vm1056_vm12, %v1896_v2  ;;  %v1897_v46 = vadd.f32 %v1881_v10, %v1844_v36  ;;  %v2110_v21 = vld [vmem:[#allocation3 + $0x38] sm:$0xff] }
 0x307   : > { %1915 = vst.msk [vmem:[#allocation3 + $0x58] sm:$0xff] %vm1056_vm12, %v1899_v62  ;;  %v4484_v60 = vpop.f32.mrb[32].mxu0  ;;  %v2108_v25 = vld [vmem:[#allocation3 + $0x28] sm:$0xff] }
 0x308   : > { %1913 = vst.msk [vmem:[#allocation3 + $0x48] sm:$0xff] %vm1056_vm12, %v1897_v46  ;;  %v4460_v57 = vpop.f32.mrb[32].mxu1  ;;  %v2454_v35 = vpop.f32.mrb[33].mxu0 }
 0x309   : > { %v1857_v38 = vpop.f32.mrb[33].mxu1  ;;  %v4485_v51 = vpop.f32.mrb[34].mxu0 }
 0x30a   : > { %v1886_v33 = vld [vmem:[#allocation3 + $0x70] sm:$0xff]  ;;  %v4461_v47 = vpop.f32.mrb[34].mxu1  ;;  %v2457_v4 = vpop.f32.mrb[35].mxu0 }
 0x30b   : > { %v1902_v50 = vadd.f32 %v4460_v57, %v1886_v33  ;;  %v1884_v48 = vld [vmem:[#allocation3 + $0x60] sm:$0xff]  ;;  %v1860_v52 = vpop.f32.mrb[35].mxu1 }
 0x30c   : > { %v1900_v32 = vadd.f32 %v1884_v48, %v1857_v38  ;;  %v1887_v53 = vld [vmem:[#allocation3 + $0x78] sm:$0xff]  ;;  %v2113_v42 = vld [vmem:[#allocation3 + $0x50] sm:$0xff] }
 0x30d   : > { %1918 = vst.msk [vmem:[#allocation3 + $0x70] sm:$0xff] %vm1056_vm12, %v1902_v50  ;;  %v1903_v54 = vadd.f32 %v4461_v47, %v1887_v53  ;;  %v1885_v58 = vld [vmem:[#allocation3 + $0x68] sm:$0xff]  ;;  %v2111_v39 = vld [vmem:[#allocation3 + $0x40] sm:$0xff] }
 0x30e   : > { %1916 = vst.msk [vmem:[#allocation3 + $0x60] sm:$0xff] %vm1056_vm12, %v1900_v32  ;;  %v1901_v0 = vadd.f32 %v1885_v58, %v1860_v52  ;;  %v2114_v46 = vld [vmem:[#allocation3 + $0x58] sm:$0xff] }
 0x30f   : > { %1919 = vst.msk [vmem:[#allocation3 + $0x78] sm:$0xff] %vm1056_vm12, %v1903_v54  ;;  %v2112_v48 = vld [vmem:[#allocation3 + $0x48] sm:$0xff] }
 0x310   : > { %1917 = vst.msk [vmem:[#allocation3 + $0x68] sm:$0xff] %vm1056_vm12, %v1901_v0  ;;  %v4466_v3 = vpop.f32.mrb[36].mxu1 }
 0x311   : > { %v2121_v56 = vadd.f32 %v4466_v3, %v2105_v14  ;;  %v2040_v5 = vpop.f32.mrb[37].mxu1 }
 0x312   : > { %v2119_v63 = vadd.f32 %v2103_v31, %v2040_v5  ;;  %v4467_v6 = vpop.f32.mrb[38].mxu1 }
 0x313   : > { %2137 = vst.msk [vmem:[#allocation3 + $0x10] sm:$0xff] %vm1056_vm12, %v2121_v56  ;;  %v2122_v40 = vadd.f32 %v4467_v6, %v2106_v7  ;;  %v2043_v55 = vpop.f32.mrb[39].mxu1 }
 0x314   : > { %2135 = vst.msk [vmem:[#allocation3] sm:$0xff] %vm1056_vm12, %v2119_v63  ;;  %v2120_v11 = vadd.f32 %v2104_v8, %v2043_v55 }
 0x315   : > { %2138 = vst.msk [vmem:[#allocation3 + $0x18] sm:$0xff] %vm1056_vm12, %v2122_v40  ;;  %v4488_v13 = vpop.f32.mrb[36].mxu0  ;;  %v2115_v14 = vld [vmem:[#allocation3 + $0x60] sm:$0xff] }
 0x316   : > { %2136 = vst.msk [vmem:[#allocation3 + $0x8] sm:$0xff] %vm1056_vm12, %v2120_v11  ;;  %v2470_v16 = vpop.f32.mrb[37].mxu0  ;;  %v2118_v31 = vld [vmem:[#allocation3 + $0x78] sm:$0xff] }
 0x317   : > { %v4489_v20 = vpop.f32.mrb[38].mxu0  ;;  %v2116_v8 = vld [vmem:[#allocation3 + $0x68] sm:$0xff] }
 0x318   : > { %v4470_v17 = vpop.f32.mrb[40].mxu1  ;;  %v2473_v19 = vpop.f32.mrb[39].mxu0 }
 0x319   : > { %v2125_v9 = vadd.f32 %v4470_v17, %v2109_v15  ;;  %v2056_v18 = vpop.f32.mrb[41].mxu1 }
 0x31a   : > { %v2519_v22 = vld [vmem:[#allocation3 + $0x10] sm:$0xff]  ;;  %v2123_v23 = vadd.f32 %v2107_v61, %v2056_v18  ;;  %v4471_v26 = vpop.f32.mrb[42].mxu1 }
 0x31b   : > { %2141 = vst.msk [vmem:[#allocation3 + $0x30] sm:$0xff] %vm1056_vm12, %v2125_v9  ;;  %v2535_v27 = vadd.f32 %v4484_v60, %v2519_v22  ;;  %v2517_v28 = vld [vmem:[#allocation3] sm:$0xff]  ;;  %v2126_v29 = vadd.f32 %v4471_v26, %v2110_v21  ;;  %v2059_v12 = vpop.f32.mrb[43].mxu1 }
 0x31c   : > { %2139 = vst.msk [vmem:[#allocation3 + $0x20] sm:$0xff] %vm1056_vm12, %v2123_v23  ;;  %v2533_v59 = vadd.f32 %v2517_v28, %v2454_v35  ;;  %v2520_v49 = vld [vmem:[#allocation3 + $0x18] sm:$0xff]  ;;  %v2124_v24 = vadd.f32 %v2108_v25, %v2059_v12  ;;  %v2117_v35 = vld [vmem:[#allocation3 + $0x70] sm:$0xff] }
 0x31d   : > { %2551 = vst.msk [vmem:[#allocation3 + $0x10] sm:$0xff] %vm1056_vm12, %v2535_v27  ;;  %2142 = vst.msk [vmem:[#allocation3 + $0x38] sm:$0xff] %vm1056_vm12, %v2126_v29  ;;  %v2536_v34 = vadd.f32 %v4485_v51, %v2520_v49  ;;  %v2518_v41 = vld [vmem:[#allocation3 + $0x8] sm:$0xff]  ;;  %v4492_v36 = vpop.f32.mrb[40].mxu0 }
 0x31e   : > { %2549 = vst.msk [vmem:[#allocation3] sm:$0xff] %vm1056_vm12, %v2533_v59  ;;  %2140 = vst.msk [vmem:[#allocation3 + $0x28] sm:$0xff] %vm1056_vm12, %v2124_v24  ;;  %v2534_v30 = vadd.f32 %v2518_v41, %v2457_v4  ;;  %v2486_v43 = vpop.f32.mrb[41].mxu0 }
 0x31f   : > { %2552 = vst.msk [vmem:[#allocation3 + $0x18] sm:$0xff] %vm1056_vm12, %v2536_v34  ;;  %v4493_v2 = vpop.f32.mrb[42].mxu0 }
 0x320   : > { %2550 = vst.msk [vmem:[#allocation3 + $0x8] sm:$0xff] %vm1056_vm12, %v2534_v30  ;;  %v4474_v37 = vpop.f32.mrb[44].mxu1  ;;  %v2489_v57 = vpop.f32.mrb[43].mxu0 }
 0x321   : > { %v2129_v44 = vadd.f32 %v4474_v37, %v2113_v42  ;;  %v2072_v45 = vpop.f32.mrb[45].mxu1 }
 0x322   : > { %v2523_v1 = vld [vmem:[#allocation3 + $0x30] sm:$0xff]  ;;  %v2127_v62 = vadd.f32 %v2111_v39, %v2072_v45  ;;  %v4475_v10 = vpop.f32.mrb[46].mxu1 }
 0x323   : > { %2145 = vst.msk [vmem:[#allocation3 + $0x50] sm:$0xff] %vm1056_vm12, %v2129_v44  ;;  %v2539_v38 = vadd.f32 %v4488_v13, %v2523_v1  ;;  %v2521_v33 = vld [vmem:[#allocation3 + $0x20] sm:$0xff]  ;;  %v2130_v47 = vadd.f32 %v4475_v10, %v2114_v46  ;;  %v2075_v50 = vpop.f32.mrb[47].mxu1 }
 0x324   : > { %2143 = vst.msk [vmem:[#allocation3 + $0x40] sm:$0xff] %vm1056_vm12, %v2127_v62  ;;  %v2537_v52 = vadd.f32 %v2521_v33, %v2470_v16  ;;  %v2524_v32 = vld [vmem:[#allocation3 + $0x38] sm:$0xff]  ;;  %v2128_v53 = vadd.f32 %v2112_v48, %v2075_v50  ;;  %v2821_v23 = vld [vmem:[#allocation3 + $0x10] sm:$0xff] }
 0x325   : > { %2555 = vst.msk [vmem:[#allocation3 + $0x30] sm:$0xff] %vm1056_vm12, %v2539_v38  ;;  %2146 = vst.msk [vmem:[#allocation3 + $0x58] sm:$0xff] %vm1056_vm12, %v2130_v47  ;;  %v2540_v54 = vadd.f32 %v4489_v20, %v2524_v32  ;;  %v2522_v58 = vld [vmem:[#allocation3 + $0x28] sm:$0xff]  ;;  %v4496_v63 = vpop.f32.mrb[44].mxu0 }
 0x326   : > { %2553 = vst.msk [vmem:[#allocation3 + $0x20] sm:$0xff] %vm1056_vm12, %v2537_v52  ;;  %2144 = vst.msk [vmem:[#allocation3 + $0x48] sm:$0xff] %vm1056_vm12, %v2128_v53  ;;  %v2538_v60 = vadd.f32 %v2522_v58, %v2473_v19  ;;  %v2502_v11 = vpop.f32.mrb[45].mxu0  ;;  %v2819_v19 = vld [vmem:[#allocation3] sm:$0xff]  ;;  %v2822_v12 = vld [vmem:[#allocation3 + $0x18] sm:$0xff] }
 0x327   : > { %2556 = vst.msk [vmem:[#allocation3 + $0x38] sm:$0xff] %vm1056_vm12, %v2540_v54  ;;  %v4497_v16 = vpop.f32.mrb[46].mxu0  ;;  %v2820_v41 = vld [vmem:[#allocation3 + $0x8] sm:$0xff] }
 0x328   : > { %2554 = vst.msk [vmem:[#allocation3 + $0x28] sm:$0xff] %vm1056_vm12, %v2538_v60  ;;  %v4478_v0 = vpop.f32.mrb[48].mxu1  ;;  %v2505_v61 = vpop.f32.mrb[47].mxu0 }
 0x329   : > { %v2133_v51 = vadd.f32 %v4478_v0, %v2117_v35  ;;  %v2088_v3 = vpop.f32.mrb[49].mxu1 }
 0x32a   : > { %v2527_v4 = vld [vmem:[#allocation3 + $0x50] sm:$0xff]  ;;  %v2131_v56 = vadd.f32 %v2115_v14, %v2088_v3  ;;  %v4479_v5 = vpop.f32.mrb[50].mxu1 }
 0x32b   : > { %2149 = vst.msk [vmem:[#allocation3 + $0x70] sm:$0xff] %vm1056_vm12, %v2133_v51  ;;  %v2543_v6 = vadd.f32 %v4492_v36, %v2527_v4  ;;  %v2525_v7 = vld [vmem:[#allocation3 + $0x40] sm:$0xff]  ;;  %v2134_v40 = vadd.f32 %v4479_v5, %v2118_v31  ;;  %v2091_v55 = vpop.f32.mrb[51].mxu1 }
 0x32c   : > { %2147 = vst.msk [vmem:[#allocation3 + $0x60] sm:$0xff] %vm1056_vm12, %v2131_v56  ;;  %v2541_v13 = vadd.f32 %v2525_v7, %v2486_v43  ;;  %v2528_v17 = vld [vmem:[#allocation3 + $0x58] sm:$0xff]  ;;  %v2132_v15 = vadd.f32 %v2116_v8, %v2091_v55  ;;  %v2825_v62 = vld [vmem:[#allocation3 + $0x30] sm:$0xff] }
 0x32d   : > { %2559 = vst.msk [vmem:[#allocation3 + $0x50] sm:$0xff] %vm1056_vm12, %v2543_v6  ;;  %2150 = vst.msk [vmem:[#allocation3 + $0x78] sm:$0xff] %vm1056_vm12, %v2134_v40  ;;  %v2544_v9 = vadd.f32 %v4493_v2, %v2528_v17  ;;  %v2526_v18 = vld [vmem:[#allocation3 + $0x48] sm:$0xff]  ;;  %v4520_v25 = vpop.f32.mrb[48].mxu0 }
 0x32e   : > { %2557 = vst.msk [vmem:[#allocation3 + $0x40] sm:$0xff] %vm1056_vm12, %v2541_v13  ;;  %2148 = vst.msk [vmem:[#allocation3 + $0x68] sm:$0xff] %vm1056_vm12, %v2132_v15  ;;  %v2542_v20 = vadd.f32 %v2526_v18, %v2489_v57  ;;  %v2987_v30 = vpop.f32.mrb[49].mxu0  ;;  %v2823_v57 = vld [vmem:[#allocation3 + $0x20] sm:$0xff]  ;;  %v2826_v50 = vld [vmem:[#allocation3 + $0x38] sm:$0xff] }
 0x32f   : > { %2560 = vst.msk [vmem:[#allocation3 + $0x58] sm:$0xff] %vm1056_vm12, %v2544_v9  ;;  %v4521_v43 = vpop.f32.mrb[50].mxu0  ;;  %v2824_v58 = vld [vmem:[#allocation3 + $0x28] sm:$0xff] }
 0x330   : > { %2558 = vst.msk [vmem:[#allocation3 + $0x48] sm:$0xff] %vm1056_vm12, %v2542_v20  ;;  %v4502_v22 = vpop.f32.mrb[52].mxu1  ;;  %v2990_v39 = vpop.f32.mrb[51].mxu0 }
 0x331   : > { %v2837_v26 = vadd.f32 %v4502_v22, %v2821_v23  ;;  %v2756_v21 = vpop.f32.mrb[53].mxu1 }
 0x332   : > { %v2531_v27 = vld [vmem:[#allocation3 + $0x70] sm:$0xff]  ;;  %v2835_v28 = vadd.f32 %v2819_v19, %v2756_v21  ;;  %v4503_v29 = vpop.f32.mrb[54].mxu1 }
 0x333   : > { %v2547_v59 = vadd.f32 %v4496_v63, %v2531_v27  ;;  %2853 = vst.msk [vmem:[#allocation3 + $0x10] sm:$0xff] %vm1056_vm12, %v2837_v26  ;;  %v2529_v49 = vld [vmem:[#allocation3 + $0x60] sm:$0xff]  ;;  %v2838_v24 = vadd.f32 %v4503_v29, %v2822_v12  ;;  %v2759_v34 = vpop.f32.mrb[55].mxu1 }
 0x334   : > { %v2545_v36 = vadd.f32 %v2529_v49, %v2502_v11  ;;  %2851 = vst.msk [vmem:[#allocation3] sm:$0xff] %vm1056_vm12, %v2835_v28  ;;  %v2532_v37 = vld [vmem:[#allocation3 + $0x78] sm:$0xff]  ;;  %v2836_v42 = vadd.f32 %v2820_v41, %v2759_v34  ;;  %v2829_v63 = vld [vmem:[#allocation3 + $0x50] sm:$0xff] }
 0x335   : > { %2563 = vst.msk [vmem:[#allocation3 + $0x70] sm:$0xff] %vm1056_vm12, %v2547_v59  ;;  %v2548_v44 = vadd.f32 %v4497_v16, %v2532_v37  ;;  %2854 = vst.msk [vmem:[#allocation3 + $0x18] sm:$0xff] %vm1056_vm12, %v2838_v24  ;;  %v2530_v45 = vld [vmem:[#allocation3 + $0x68] sm:$0xff]  ;;  %v4524_v48 = vpop.f32.mrb[52].mxu0  ;;  %v2827_v40 = vld [vmem:[#allocation3 + $0x40] sm:$0xff] }
 0x336   : > { %2561 = vst.msk [vmem:[#allocation3 + $0x60] sm:$0xff] %vm1056_vm12, %v2545_v36  ;;  %v2546_v2 = vadd.f32 %v2530_v45, %v2505_v61  ;;  %2852 = vst.msk [vmem:[#allocation3 + $0x8] sm:$0xff] %vm1056_vm12, %v2836_v42  ;;  %v3003_v60 = vpop.f32.mrb[53].mxu0  ;;  %v2830_v13 = vld [vmem:[#allocation3 + $0x58] sm:$0xff] }
 0x337   : > { %2564 = vst.msk [vmem:[#allocation3 + $0x78] sm:$0xff] %vm1056_vm12, %v2548_v44  ;;  %v4525_v3 = vpop.f32.mrb[54].mxu0  ;;  %v2828_v61 = vld [vmem:[#allocation3 + $0x48] sm:$0xff] }
 0x338   : > { %2562 = vst.msk [vmem:[#allocation3 + $0x68] sm:$0xff] %vm1056_vm12, %v2546_v2  ;;  %v4506_v1 = vpop.f32.mrb[56].mxu1  ;;  %v3006_v56 = vpop.f32.mrb[55].mxu0 }
 0x339   : > { %v2841_v10 = vadd.f32 %v4506_v1, %v2825_v62  ;;  %v2772_v46 = vpop.f32.mrb[57].mxu1 }
 0x33a   : > { %v3052_v38 = vld [vmem:[#allocation3 + $0x10] sm:$0xff]  ;;  %v2839_v33 = vadd.f32 %v2823_v57, %v2772_v46  ;;  %v4507_v47 = vpop.f32.mrb[58].mxu1 }
 0x33b   : > { %2857 = vst.msk [vmem:[#allocation3 + $0x30] sm:$0xff] %vm1056_vm12, %v2841_v10  ;;  %v3068_v52 = vadd.f32 %v4520_v25, %v3052_v38  ;;  %v3050_v32 = vld [vmem:[#allocation3] sm:$0xff]  ;;  %v2842_v53 = vadd.f32 %v4507_v47, %v2826_v50  ;;  %v2775_v54 = vpop.f32.mrb[59].mxu1 }
 0x33c   : > { %2855 = vst.msk [vmem:[#allocation3 + $0x20] sm:$0xff] %vm1056_vm12, %v2839_v33  ;;  %v3066_v0 = vadd.f32 %v3050_v32, %v2987_v30  ;;  %v3053_v35 = vld [vmem:[#allocation3 + $0x18] sm:$0xff]  ;;  %v2840_v51 = vadd.f32 %v2824_v58, %v2775_v54  ;;  %v2833_v25 = vld [vmem:[#allocation3 + $0x70] sm:$0xff] }
 0x33d   : > { %3084 = vst.msk [vmem:[#allocation3 + $0x10] sm:$0xff] %vm1056_vm12, %v3068_v52  ;;  %2858 = vst.msk [vmem:[#allocation3 + $0x38] sm:$0xff] %vm1056_vm12, %v2842_v53  ;;  %v3069_v14 = vadd.f32 %v4521_v43, %v3053_v35  ;;  %v3051_v4 = vld [vmem:[#allocation3 + $0x8] sm:$0xff]  ;;  %v4528_v17 = vpop.f32.mrb[56].mxu0  ;;  %v2831_v24 = vld [vmem:[#allocation3 + $0x60] sm:$0xff] }
 0x33e   : > { %3082 = vst.msk [vmem:[#allocation3] sm:$0xff] %vm1056_vm12, %v3066_v0  ;;  %2856 = vst.msk [vmem:[#allocation3 + $0x28] sm:$0xff] %vm1056_vm12, %v2840_v51  ;;  %v3067_v5 = vadd.f32 %v3051_v4, %v2990_v39  ;;  %v3019_v20 = vpop.f32.mrb[57].mxu0  ;;  %v2834_v36 = vld [vmem:[#allocation3 + $0x78] sm:$0xff] }
 0x33f   : > { %3085 = vst.msk [vmem:[#allocation3 + $0x18] sm:$0xff] %vm1056_vm12, %v3069_v14  ;;  %v4529_v21 = vpop.f32.mrb[58].mxu0  ;;  %v2832_v39 = vld [vmem:[#allocation3 + $0x68] sm:$0xff] }
 0x340   : > { %3083 = vst.msk [vmem:[#allocation3 + $0x8] sm:$0xff] %vm1056_vm12, %v3067_v5  ;;  %v4510_v31 = vpop.f32.mrb[60].mxu1  ;;  %v3022_v28 = vpop.f32.mrb[59].mxu0 }
 0x341   : > { %v2845_v6 = vadd.f32 %v4510_v31, %v2829_v63  ;;  %v2788_v7 = vpop.f32.mrb[61].mxu1 }
 0x342   : > { %v3056_v55 = vld [vmem:[#allocation3 + $0x30] sm:$0xff]  ;;  %v2843_v8 = vadd.f32 %v2827_v40, %v2788_v7  ;;  %v4511_v11 = vpop.f32.mrb[62].mxu1 }
 0x343   : > { %2861 = vst.msk [vmem:[#allocation3 + $0x50] sm:$0xff] %vm1056_vm12, %v2845_v6  ;;  %v3072_v15 = vadd.f32 %v4524_v48, %v3056_v55  ;;  %v3054_v16 = vld [vmem:[#allocation3 + $0x20] sm:$0xff]  ;;  %v2846_v9 = vadd.f32 %v4511_v11, %v2830_v13  ;;  %v2791_v18 = vpop.f32.mrb[63].mxu1 }
 0x344   : > { %2859 = vst.msk [vmem:[#allocation3 + $0x40] sm:$0xff] %vm1056_vm12, %v2843_v8  ;;  %v3070_v22 = vadd.f32 %v3054_v16, %v3003_v60  ;;  %v3057_v23 = vld [vmem:[#allocation3 + $0x38] sm:$0xff]  ;;  %v2844_v26 = vadd.f32 %v2828_v61, %v2791_v18  ;;  %v3466_v48 = vld [vmem:[#allocation3 + $0x10] sm:$0xff] }
 0x345   : > { %3088 = vst.msk [vmem:[#allocation3 + $0x30] sm:$0xff] %vm1056_vm12, %v3072_v15  ;;  %2862 = vst.msk [vmem:[#allocation3 + $0x58] sm:$0xff] %vm1056_vm12, %v2846_v9  ;;  %v3073_v19 = vadd.f32 %v4525_v3, %v3057_v23  ;;  %v3055_v27 = vld [vmem:[#allocation3 + $0x28] sm:$0xff]  ;;  %v4532_v37 = vpop.f32.mrb[60].mxu0  ;;  %v3464_v53 = vld [vmem:[#allocation3] sm:$0xff] }
 0x346   : > { %3086 = vst.msk [vmem:[#allocation3 + $0x20] sm:$0xff] %vm1056_vm12, %v3070_v22  ;;  %2860 = vst.msk [vmem:[#allocation3 + $0x48] sm:$0xff] %vm1056_vm12, %v2844_v26  ;;  %v3071_v29 = vadd.f32 %v3055_v27, %v3006_v56  ;;  %v3035_v2 = vpop.f32.mrb[61].mxu0  ;;  %v3467_v0 = vld [vmem:[#allocation3 + $0x18] sm:$0xff] }
 0x347   : > { %3089 = vst.msk [vmem:[#allocation3 + $0x38] sm:$0xff] %vm1056_vm12, %v3073_v19  ;;  %v4533_v46 = vpop.f32.mrb[62].mxu0  ;;  %v3465_v56 = vld [vmem:[#allocation3 + $0x8] sm:$0xff] }
 0x348   : > { %3087 = vst.msk [vmem:[#allocation3 + $0x28] sm:$0xff] %vm1056_vm12, %v3071_v29  ;;  %v4514_v12 = vpop.f32.mrb[64].mxu1  ;;  %v3038_v33 = vpop.f32.mrb[63].mxu0 }
 0x349   : > { %v2849_v59 = vadd.f32 %v4514_v12, %v2833_v25  ;;  %v2804_v49 = vpop.f32.mrb[65].mxu1 }
 0x34a   : > { %v3060_v34 = vld [vmem:[#allocation3 + $0x50] sm:$0xff]  ;;  %v2847_v41 = vadd.f32 %v2831_v24, %v2804_v49  ;;  %v4515_v30 = vpop.f32.mrb[66].mxu1 }
 0x34b   : > { %2865 = vst.msk [vmem:[#allocation3 + $0x70] sm:$0xff] %vm1056_vm12, %v2849_v59  ;;  %v3076_v42 = vadd.f32 %v4528_v17, %v3060_v34  ;;  %v3058_v43 = vld [vmem:[#allocation3 + $0x40] sm:$0xff]  ;;  %v2850_v44 = vadd.f32 %v4515_v30, %v2834_v36  ;;  %v2807_v45 = vpop.f32.mrb[67].mxu1 }
 0x34c   : > { %2863 = vst.msk [vmem:[#allocation3 + $0x60] sm:$0xff] %vm1056_vm12, %v2847_v41  ;;  %v3074_v1 = vadd.f32 %v3058_v43, %v3019_v20  ;;  %v3061_v62 = vld [vmem:[#allocation3 + $0x58] sm:$0xff]  ;;  %v2848_v10 = vadd.f32 %v2832_v39, %v2807_v45  ;;  %v3470_v17 = vld [vmem:[#allocation3 + $0x30] sm:$0xff] }
 0x34d   : > { %3092 = vst.msk [vmem:[#allocation3 + $0x50] sm:$0xff] %vm1056_vm12, %v3076_v42  ;;  %2866 = vst.msk [vmem:[#allocation3 + $0x78] sm:$0xff] %vm1056_vm12, %v2850_v44  ;;  %v3077_v57 = vadd.f32 %v4529_v21, %v3061_v62  ;;  %v3059_v38 = vld [vmem:[#allocation3 + $0x48] sm:$0xff]  ;;  %v4556_v35 = vpop.f32.mrb[64].mxu0  ;;  %v3468_v9 = vld [vmem:[#allocation3 + $0x20] sm:$0xff] }
 0x34e   : > { %3090 = vst.msk [vmem:[#allocation3 + $0x40] sm:$0xff] %vm1056_vm12, %v3074_v1  ;;  %2864 = vst.msk [vmem:[#allocation3 + $0x68] sm:$0xff] %vm1056_vm12, %v2848_v10  ;;  %v3075_v47 = vadd.f32 %v3059_v38, %v3022_v28  ;;  %v3703_v5 = vpop.f32.mrb[65].mxu0  ;;  %v3471_v22 = vld [vmem:[#allocation3 + $0x38] sm:$0xff] }
 0x34f   : > { %3093 = vst.msk [vmem:[#allocation3 + $0x58] sm:$0xff] %vm1056_vm12, %v3077_v57  ;;  %v4557_v7 = vpop.f32.mrb[66].mxu0  ;;  %v3469_v28 = vld [vmem:[#allocation3 + $0x28] sm:$0xff]  ;;  %v6057_v45 = vld [vmem:[#allocation12] ss:$0 sm:$0xff] }
 0x350   : > { %3091 = vst.msk [vmem:[#allocation3 + $0x48] sm:$0xff] %vm1056_vm12, %v3075_v47  ;;  %v4538_v50 = vpop.f32.mrb[68].mxu1  ;;  %v3706_v8 = vpop.f32.mrb[67].mxu0 }
 0x351   : > { %v3482_v52 = vadd.f32 %v4538_v50, %v3466_v48  ;;  %v3401_v32 = vpop.f32.mrb[69].mxu1 }
 0x352   : > { %v3064_v54 = vld [vmem:[#allocation3 + $0x70] sm:$0xff]  ;;  %v3480_v58 = vadd.f32 %v3464_v53, %v3401_v32  ;;  %v4539_v60 = vpop.f32.mrb[70].mxu1 }
 0x353   : > { %v3080_v51 = vadd.f32 %v4532_v37, %v3064_v54  ;;  %3498 = vst.msk [vmem:[#allocation3 + $0x10] sm:$0xff] %vm1056_vm12, %v3482_v52  ;;  %v3062_v3 = vld [vmem:[#allocation3 + $0x60] sm:$0xff]  ;;  %v3483_v14 = vadd.f32 %v4539_v60, %v3467_v0  ;;  %v3404_v4 = vpop.f32.mrb[71].mxu1 }
 0x354   : > { %v3078_v31 = vadd.f32 %v3062_v3, %v3035_v2  ;;  %3496 = vst.msk [vmem:[#allocation3] sm:$0xff] %vm1056_vm12, %v3480_v58  ;;  %v3065_v63 = vld [vmem:[#allocation3 + $0x78] sm:$0xff]  ;;  %v3481_v6 = vadd.f32 %v3465_v56, %v3404_v4  ;;  %v3474_v37 = vld [vmem:[#allocation3 + $0x50] sm:$0xff] }
 0x355   : > { %3096 = vst.msk [vmem:[#allocation3 + $0x70] sm:$0xff] %vm1056_vm12, %v3080_v51  ;;  %v3081_v40 = vadd.f32 %v4533_v46, %v3065_v63  ;;  %3499 = vst.msk [vmem:[#allocation3 + $0x18] sm:$0xff] %vm1056_vm12, %v3483_v14  ;;  %v3063_v55 = vld [vmem:[#allocation3 + $0x68] sm:$0xff]  ;;  %v4560_v23 = vpop.f32.mrb[68].mxu0  ;;  %v3472_v44 = vld [vmem:[#allocation3 + $0x40] sm:$0xff] }
 0x356   : > { %3094 = vst.msk [vmem:[#allocation3 + $0x60] sm:$0xff] %vm1056_vm12, %v3078_v31  ;;  %v3079_v11 = vadd.f32 %v3063_v55, %v3038_v33  ;;  %3497 = vst.msk [vmem:[#allocation3 + $0x8] sm:$0xff] %vm1056_vm12, %v3481_v6  ;;  %v3719_v29 = vpop.f32.mrb[69].mxu0  ;;  %v3475_v62 = vld [vmem:[#allocation3 + $0x58] sm:$0xff] }
 0x357   : > { %3097 = vst.msk [vmem:[#allocation3 + $0x78] sm:$0xff] %vm1056_vm12, %v3081_v40  ;;  %v4561_v49 = vpop.f32.mrb[70].mxu0  ;;  %v3473_v47 = vld [vmem:[#allocation3 + $0x48] sm:$0xff] }
 0x358   : > { %3095 = vst.msk [vmem:[#allocation3 + $0x68] sm:$0xff] %vm1056_vm12, %v3079_v11  ;;  %v4542_v13 = vpop.f32.mrb[72].mxu1  ;;  %v3722_v41 = vpop.f32.mrb[71].mxu0 }
 0x359   : > { %v3486_v15 = vadd.f32 %v4542_v13, %v3470_v17  ;;  %v3417_v16 = vpop.f32.mrb[73].mxu1 }
 0x35a   : > { %v3768_v18 = vld [vmem:[#allocation3 + $0x10] sm:$0xff]  ;;  %v3484_v61 = vadd.f32 %v3468_v9, %v3417_v16  ;;  %v4543_v20 = vpop.f32.mrb[74].mxu1 }
 0x35b   : > { %3502 = vst.msk [vmem:[#allocation3 + $0x30] sm:$0xff] %vm1056_vm12, %v3486_v15  ;;  %v3784_v26 = vadd.f32 %v4556_v35, %v3768_v18  ;;  %v3766_v21 = vld [vmem:[#allocation3] sm:$0xff]  ;;  %v3487_v19 = vadd.f32 %v4543_v20, %v3471_v22  ;;  %v3420_v27 = vpop.f32.mrb[75].mxu1 }
 0x35c   : > { %3500 = vst.msk [vmem:[#allocation3 + $0x20] sm:$0xff] %vm1056_vm12, %v3484_v61  ;;  %v3782_v12 = vadd.f32 %v3766_v21, %v3703_v5  ;;  %v3769_v25 = vld [vmem:[#allocation3 + $0x18] sm:$0xff]  ;;  %v3485_v59 = vadd.f32 %v3469_v28, %v3420_v27  ;;  %v3478_v40 = vld [vmem:[#allocation3 + $0x70] sm:$0xff] }
 0x35d   : > { %3800 = vst.msk [vmem:[#allocation3 + $0x10] sm:$0xff] %vm1056_vm12, %v3784_v26  ;;  %3503 = vst.msk [vmem:[#allocation3 + $0x38] sm:$0xff] %vm1056_vm12, %v3487_v19  ;;  %v3785_v24 = vadd.f32 %v4557_v7, %v3769_v25  ;;  %v3767_v34 = vld [vmem:[#allocation3 + $0x8] sm:$0xff]  ;;  %v4564_v10 = vpop.f32.mrb[72].mxu0  ;;  %v3476_v13 = vld [vmem:[#allocation3 + $0x60] sm:$0xff] }
 0x35e   : > { %3798 = vst.msk [vmem:[#allocation3] sm:$0xff] %vm1056_vm12, %v3782_v12  ;;  %3501 = vst.msk [vmem:[#allocation3 + $0x28] sm:$0xff] %vm1056_vm12, %v3485_v59  ;;  %v3783_v30 = vadd.f32 %v3767_v34, %v3706_v8  ;;  %v3735_v50 = vpop.f32.mrb[73].mxu0  ;;  %v3479_v18 = vld [vmem:[#allocation3 + $0x78] sm:$0xff] }
 0x35f   : > { %3801 = vst.msk [vmem:[#allocation3 + $0x18] sm:$0xff] %vm1056_vm12, %v3785_v24  ;;  %v4565_v54 = vpop.f32.mrb[74].mxu0  ;;  %v3477_v21 = vld [vmem:[#allocation3 + $0x68] sm:$0xff] }
 0x360   : > { %3799 = vst.msk [vmem:[#allocation3 + $0x8] sm:$0xff] %vm1056_vm12, %v3783_v30  ;;  %v4546_v36 = vpop.f32.mrb[76].mxu1  ;;  %v3738_v51 = vpop.f32.mrb[75].mxu0 }
 0x361   : > { %v3490_v42 = vadd.f32 %v4546_v36, %v3474_v37  ;;  %v3433_v43 = vpop.f32.mrb[77].mxu1 }
 0x362   : > { %v3772_v39 = vld [vmem:[#allocation3 + $0x30] sm:$0xff]  ;;  %v3488_v2 = vadd.f32 %v3472_v44, %v3433_v43  ;;  %v4547_v1 = vpop.f32.mrb[78].mxu1 }
 0x363   : > { %3506 = vst.msk [vmem:[#allocation3 + $0x50] sm:$0xff] %vm1056_vm12, %v3490_v42  ;;  %v3788_v46 = vadd.f32 %v4560_v23, %v3772_v39  ;;  %v3770_v57 = vld [vmem:[#allocation3 + $0x20] sm:$0xff]  ;;  %v3491_v38 = vadd.f32 %v4547_v1, %v3475_v62  ;;  %v3436_v33 = vpop.f32.mrb[79].mxu1 }
 0x364   : > { %v3816_v48 = vld [vmem:[#allocation3 + $0x10] sm:$0xff]  ;;  %3504 = vst.msk [vmem:[#allocation3 + $0x40] sm:$0xff] %vm1056_vm12, %v3488_v2  ;;  %v3786_v52 = vadd.f32 %v3770_v57, %v3719_v29  ;;  %v3773_v32 = vld [vmem:[#allocation3 + $0x38] sm:$0xff]  ;;  %v3489_v53 = vadd.f32 %v3473_v47, %v3436_v33 }
 0x365   : > { %v3839_v58 = vadd.f32 %v6057_v45, %v3816_v48  ;;  %v3814_v60 = vld [vmem:[#allocation3] sm:$0xff]  ;;  %3804 = vst.msk [vmem:[#allocation3 + $0x30] sm:$0xff] %vm1056_vm12, %v3788_v46  ;;  %3507 = vst.msk [vmem:[#allocation3 + $0x58] sm:$0xff] %vm1056_vm12, %v3491_v38  ;;  %v3789_v0 = vadd.f32 %v4561_v49, %v3773_v32  ;;  %v3771_v35 = vld [vmem:[#allocation3 + $0x28] sm:$0xff]  ;;  %v4568_v61 = vpop.f32.mrb[76].mxu0 }
 0x366   : > { %v3837_v3 = vadd.f32 %v6057_v45, %v3814_v60  ;;  %v3817_v14 = vld [vmem:[#allocation3 + $0x18] sm:$0xff]  ;;  %3802 = vst.msk [vmem:[#allocation3 + $0x20] sm:$0xff] %vm1056_vm12, %v3786_v52  ;;  %3505 = vst.msk [vmem:[#allocation3 + $0x48] sm:$0xff] %vm1056_vm12, %v3489_v53  ;;  %v3787_v4 = vadd.f32 %v3771_v35, %v3722_v41  ;;  %v3751_v19 = vpop.f32.mrb[77].mxu0 }
 0x367   : > { %v3855_v56 = vmax.f32 %v3839_v58, 0.0  ;;  %v3840_v5 = vadd.f32 %v6057_v45, %v3817_v14  ;;  %v3815_v31 = vld [vmem:[#allocation3 + $0x8] sm:$0xff]  ;;  %3805 = vst.msk [vmem:[#allocation3 + $0x38] sm:$0xff] %vm1056_vm12, %v3789_v0  ;;  %v4569_v25 = vpop.f32.mrb[78].mxu0 }
 0x368   : > { %v3853_v63 = vmax.f32 %v3837_v3, 0.0  ;;  %v3838_v6 = vadd.f32 %v6057_v45, %v3815_v31  ;;  %3803 = vst.msk [vmem:[#allocation3 + $0x28] sm:$0xff] %vm1056_vm12, %v3787_v4  ;;  %v4550_v7 = vpop.f32.mrb[80].mxu1  ;;  %v3754_v41 = vpop.f32.mrb[79].mxu0 }
 0x369   : > { %3871 = vst.msk [vmem:[%s5519_s28 + $0x10] sm:$0xff] %vm1056_vm12, %v3855_v56  ;;  %v3856_v55 = vmax.f32 %v3840_v5, 0.0  ;;  %v3494_v8 = vadd.f32 %v4550_v7, %v3478_v40  ;;  %v3449_v11 = vpop.f32.mrb[81].mxu1 }
 0x36a   : > { %3869 = vst.msk [vmem:[%s5519_s28] sm:$0xff] %vm1056_vm12, %v3853_v63  ;;  %v3854_v17 = vmax.f32 %v3838_v6, 0.0  ;;  %v3776_v15 = vld [vmem:[#allocation3 + $0x50] sm:$0xff]  ;;  %v3492_v16 = vadd.f32 %v3476_v13, %v3449_v11  ;;  %v4551_v9 = vpop.f32.mrb[82].mxu1 }
 0x36b   : > { %3872 = vst.msk [vmem:[%s5519_s28 + $0x18] sm:$0xff] %vm1056_vm12, %v3856_v55  ;;  %3510 = vst.msk [vmem:[#allocation3 + $0x70] sm:$0xff] %vm1056_vm12, %v3494_v8  ;;  %v3792_v20 = vadd.f32 %v4564_v10, %v3776_v15  ;;  %v3774_v22 = vld [vmem:[#allocation3 + $0x40] sm:$0xff]  ;;  %v3495_v23 = vadd.f32 %v4551_v9, %v3479_v18  ;;  %v3452_v26 = vpop.f32.mrb[83].mxu1 }
 0x36c   : > { %3870 = vst.msk [vmem:[%s5519_s28 + $0x8] sm:$0xff] %vm1056_vm12, %v3854_v17  ;;  %v3820_v27 = vld [vmem:[#allocation3 + $0x30] sm:$0xff]  ;;  %3508 = vst.msk [vmem:[#allocation3 + $0x60] sm:$0xff] %vm1056_vm12, %v3492_v16  ;;  %v3790_v28 = vadd.f32 %v3774_v22, %v3735_v50  ;;  %v3777_v29 = vld [vmem:[#allocation3 + $0x58] sm:$0xff]  ;;  %v3493_v12 = vadd.f32 %v3477_v21, %v3452_v26 }
 0x36d   : > { %v3843_v59 = vadd.f32 %v6057_v45, %v3820_v27  ;;  %v3818_v49 = vld [vmem:[#allocation3 + $0x20] sm:$0xff]  ;;  %3808 = vst.msk [vmem:[#allocation3 + $0x50] sm:$0xff] %vm1056_vm12, %v3792_v20  ;;  %3511 = vst.msk [vmem:[#allocation3 + $0x78] sm:$0xff] %vm1056_vm12, %v3495_v23  ;;  %v3793_v24 = vadd.f32 %v4565_v54, %v3777_v29  ;;  %v3775_v34 = vld [vmem:[#allocation3 + $0x48] sm:$0xff] }
 0x36e   : > { %v3841_v30 = vadd.f32 %v6057_v45, %v3818_v49  ;;  %v3821_v36 = vld [vmem:[#allocation3 + $0x38] sm:$0xff]  ;;  %3806 = vst.msk [vmem:[#allocation3 + $0x40] sm:$0xff] %vm1056_vm12, %v3790_v28  ;;  %3509 = vst.msk [vmem:[#allocation3 + $0x68] sm:$0xff] %vm1056_vm12, %v3493_v12  ;;  %v3791_v37 = vadd.f32 %v3775_v34, %v3738_v51 }
 0x36f   : > { %v3859_v42 = vmax.f32 %v3843_v59, 0.0  ;;  %v3844_v43 = vadd.f32 %v6057_v45, %v3821_v36  ;;  %v3819_v44 = vld [vmem:[#allocation3 + $0x28] sm:$0xff]  ;;  %3809 = vst.msk [vmem:[#allocation3 + $0x58] sm:$0xff] %vm1056_vm12, %v3793_v24 }
 0x370   : > { %v3857_v39 = vmax.f32 %v3841_v30, 0.0  ;;  %v3842_v2 = vadd.f32 %v6057_v45, %v3819_v44  ;;  %3807 = vst.msk [vmem:[#allocation3 + $0x48] sm:$0xff] %vm1056_vm12, %v3791_v37 }
 0x371   : > { %3875 = vst.msk [vmem:[%s5519_s28 + $0x30] sm:$0xff] %vm1056_vm12, %v3859_v42  ;;  %v3860_v1 = vmax.f32 %v3844_v43, 0.0 }
 0x372   : > { %3873 = vst.msk [vmem:[%s5519_s28 + $0x20] sm:$0xff] %vm1056_vm12, %v3857_v39  ;;  %v3858_v62 = vmax.f32 %v3842_v2, 0.0  ;;  %v3780_v10 = vld [vmem:[#allocation3 + $0x70] sm:$0xff] }
 0x373   : > { %3876 = vst.msk [vmem:[%s5519_s28 + $0x38] sm:$0xff] %vm1056_vm12, %v3860_v1  ;;  %v3796_v46 = vadd.f32 %v4568_v61, %v3780_v10  ;;  %v3778_v57 = vld [vmem:[#allocation3 + $0x60] sm:$0xff] }
 0x374   : > { %3874 = vst.msk [vmem:[%s5519_s28 + $0x28] sm:$0xff] %vm1056_vm12, %v3858_v62  ;;  %v3824_v38 = vld [vmem:[#allocation3 + $0x50] sm:$0xff]  ;;  %v3794_v33 = vadd.f32 %v3778_v57, %v3751_v19  ;;  %v3781_v47 = vld [vmem:[#allocation3 + $0x78] sm:$0xff] }
 0x375   : > { %v3847_v50 = vadd.f32 %v6057_v45, %v3824_v38  ;;  %v3822_v48 = vld [vmem:[#allocation3 + $0x40] sm:$0xff]  ;;  %3812 = vst.msk [vmem:[#allocation3 + $0x70] sm:$0xff] %vm1056_vm12, %v3796_v46  ;;  %v3797_v52 = vadd.f32 %v4569_v25, %v3781_v47  ;;  %v3779_v32 = vld [vmem:[#allocation3 + $0x68] sm:$0xff] }
 0x376   : > { %v3845_v53 = vadd.f32 %v6057_v45, %v3822_v48  ;;  %v3825_v54 = vld [vmem:[#allocation3 + $0x58] sm:$0xff]  ;;  %3810 = vst.msk [vmem:[#allocation3 + $0x60] sm:$0xff] %vm1056_vm12, %v3794_v33  ;;  %v3795_v58 = vadd.f32 %v3779_v32, %v3754_v41 }
 0x377   : > { %v3863_v60 = vmax.f32 %v3847_v50, 0.0  ;;  %v3848_v0 = vadd.f32 %v6057_v45, %v3825_v54  ;;  %v3823_v35 = vld [vmem:[#allocation3 + $0x48] sm:$0xff]  ;;  %3813 = vst.msk [vmem:[#allocation3 + $0x78] sm:$0xff] %vm1056_vm12, %v3797_v52 }
 0x378   : > { %v3861_v51 = vmax.f32 %v3845_v53, 0.0  ;;  %v3846_v3 = vadd.f32 %v6057_v45, %v3823_v35  ;;  %3811 = vst.msk [vmem:[#allocation3 + $0x68] sm:$0xff] %vm1056_vm12, %v3795_v58 }
 0x379   : > { %3879 = vst.msk [vmem:[%s5519_s28 + $0x50] sm:$0xff] %vm1056_vm12, %v3863_v60  ;;  %v3864_v14 = vmax.f32 %v3848_v0, 0.0 }
 0x37a   : > { %3877 = vst.msk [vmem:[%s5519_s28 + $0x40] sm:$0xff] %vm1056_vm12, %v3861_v51  ;;  %v3862_v4 = vmax.f32 %v3846_v3, 0.0 }
 0x37b   : > { %3880 = vst.msk [vmem:[%s5519_s28 + $0x58] sm:$0xff] %vm1056_vm12, %v3864_v14 }
 0x37c   : > { %3878 = vst.msk [vmem:[%s5519_s28 + $0x48] sm:$0xff] %vm1056_vm12, %v3862_v4  ;;  %v3828_v56 = vld [vmem:[#allocation3 + $0x70] sm:$0xff] }
 0x37d   : > { %v3851_v5 = vadd.f32 %v6057_v45, %v3828_v56  ;;  %v3826_v31 = vld [vmem:[#allocation3 + $0x60] sm:$0xff] }
 0x37e   : > { %v3849_v63 = vadd.f32 %v6057_v45, %v3826_v31  ;;  %v3829_v6 = vld [vmem:[#allocation3 + $0x78] sm:$0xff] }
 0x37f   : > { %v3867_v7 = vmax.f32 %v3851_v5, 0.0  ;;  %v3852_v40 = vadd.f32 %v6057_v45, %v3829_v6  ;;  %v3827_v55 = vld [vmem:[#allocation3 + $0x68] sm:$0xff] }
 0x380   : > { %v3865_v8 = vmax.f32 %v3849_v63, 0.0  ;;  %v3850_v11 = vadd.f32 %v6057_v45, %v3827_v55 }
 0x381   : > { %3883 = vst.msk [vmem:[%s5519_s28 + $0x70] sm:$0xff] %vm1056_vm12, %v3867_v7  ;;  %v3868_v13 = vmax.f32 %v3852_v40, 0.0 }
 0x382   : > { %3881 = vst.msk [vmem:[%s5519_s28 + $0x60] sm:$0xff] %vm1056_vm12, %v3865_v8  ;;  %v3866_v17 = vmax.f32 %v3850_v11, 0.0 }
 0x383   : > { %3884 = vst.msk [vmem:[%s5519_s28 + $0x78] sm:$0xff] %vm1056_vm12, %v3868_v13 }
 0x384   : > { %3882 = vst.msk [vmem:[%s5519_s28 + $0x68] sm:$0xff] %vm1056_vm12, %v3866_v17 }
 0x385   : > { %4904 = shalt.err (!%p4901_p6)
}
 0x386   : > { %s4905_s10 = scalar_lea.hbm %s6127_s9, 2048  ;;  %s4909_s28 = scalar_lea.hbm %s6243_s13, 8192 }
 0x387   : > { %p4906_p2 = scmp.ne.s32.totalorder %s6127_s9, %s4905_s10  ;;  %p4910_p9 = scmp.lt.u32.totalorder %s6127_s9, %s6243_s13 }
 0x388   : > { %p4911_p8 = scmp.lt.u32.totalorder %s4909_s28, %s4905_s10  ;;  %p4913_p0 = scmp.lt.u32.totalorder %s4905_s10, %s6127_s9 }
 0x389   : > { %p4907_p13 = pnand %p4906_p2, %p5235_p3 }
 0x38a   : > { %p4912_p10 = por %p4911_p8, %p4910_p9 }
 0x38b   : > { %p4908_p4 = pneg %p4907_p13 }
 0x38c   : > { %p4914_p5 = por %p4913_p0, %p4912_p10 }
 0x38e   : > { %p4915_p7 = pnand %p4914_p5, %p4908_p4 }
 0x390   : > { %4918 = shalt.err (!%p4915_p7)
}
 0x391   : > { %s5009_s29 = smov 128   ;;  %s5010_s27 = smov 8  }
 0x392   : > { %4605 = dma.vmem_to_hbm [thread:$0]  (%p5235_p3), %s6129_s11, 2048, %s6127_s9, %s3886_s12, %s5009_s29, %s5009_s29, %s5010_s27  }
 0x393 PF: > { %s6244_s21 = sld [smem:[#allocation18_spill]]  ;;  %s6245_s1 = sld [smem:[#allocation20_spill]] }
 0x394   : > { %p4637_p11 = scmp.ge.s32.totalorder %s4997_s25, 2 }
 0x399   : > { %s3917_s3 = sand.u32 1, %s6244_s21   ;;  %p6246_p1 = scmp.ne.s32.totalorder %s6245_s1, 0 }
 0x39a   : > { %s3918_s14 = scalar_lea.sflag [#allocation6], %s3917_s3 }
 0x39b   : > { %p4625_p12 = pnand %p4637_p11, %p6246_p1 }
 0x39d   : > { %4964 = dma.done.wait (!%p4625_p12), %s3918_s14, 2048  }
 0x39e   : > { %4966 = vsyncadd (!%p4625_p12), %s3918_s14, 4294965248  ;;  %s23_s25 = sadd.s32 1, %s4997_s25   ;;  %s6247_s18 = smov %s4973_s19 }
 0x39f   : > { %p20_p6 = scmp.ge.s32.totalorder %s23_s25, 6   ;;  %s6248_s19 = smov %s4977_s20 }
 0x3a0   : > { %s6249_s20 = smov %s5254_s16  ;;  %s6250_s21 = smov %s4989_s23 }
 0x3a1   : > { %s6251_s22 = smov %s4993_s24  ;;  %s6252_s23 = smov %s6255_s8 }
 0x3a2   : > { %s6253_s24 = smov %s6259_s26  ;;  %22 = sbr.rel (!%p20_p6) target bundleno = 14 (0xe), region = 120 }
 0x3a9   :  { %3923 = vsyncpa [#allocation5], 1 }
 0x3aa   :  { %3925 = vsyncpa [#allocation5 + $0x1], 1 }
 0x3ab   :  { %3926 = vsyncpa [#allocation8], 1 }
 0x3ac   :  { %3927 = vsyncpa [#allocation11], 1 }
 0x3ad   :  { %3928 = vsyncpa [#allocation6], 1 }
 0x3ae   :  { %3930 = vsyncpa [#allocation6 + $0x1], 1 }

</bundles_post_ra>
